<compile_context>
chip_gen: v6e
topology: v6e:2x2x1
jax: 0.10.0
libtpu: 0.0.40
codegen_flags: <defaults>
</compile_context>

<pallas_src>
import functools
import jax
import jax.numpy as jnp
from jax import lax
from jax.experimental import pallas as pl
from jax.experimental.pallas import tpu as pltpu

EPS = 1e-5  # PyTorch BatchNorm2d default eps


# ----------------------------------------------------------------------------- #
# Wrapper-side weight preparation (done once per call; tiny arrays).
# ----------------------------------------------------------------------------- #
def _band_matrices(w_hwio, width):
    """Banded matmul weights for a 3x3 / stride-1 / pad-1 conv in (rows, W*C) layout.

    Returns B with shape (3, W*Cin, W*Cout) such that, for kernel row dy,
      out[r, w*Cout + co] += sum_{wi, ci} X_dy[r, wi*Cin + ci] * B[dy, wi*Cin + ci, w*Cout + co]
    equals the dx-summed conv contribution; taps that fall outside [0, W) are
    dropped from the band, which implements the W-direction zero padding.
    """
    Cin, Cout = w_hwio.shape[2], w_hwio.shape[3]
    wi = jnp.arange(width)[:, None]                      # input column block
    wo = jnp.arange(width)[None, :]                      # output column block
    dx = wi - wo + 1                                     # tap index, valid in [0, 3)
    valid = (dx >= 0) & (dx <= 2)
    blocks = w_hwio[:, jnp.clip(dx, 0, 2)]               # (3, W, W, Cin, Cout)
    blocks = jnp.where(valid[None, :, :, None, None], blocks, 0.0)
    return blocks.transpose(0, 1, 3, 2, 4).reshape(3, width * Cin, width * Cout)


def _blockdiag(w_1x1, width):
    """Block-diagonal weights for a 1x1 / stride-1 conv in (rows, W*C) layout."""
    Cin, Cout = w_1x1.shape
    eye = jnp.eye(width, dtype=w_1x1.dtype)
    blocks = eye[:, :, None, None] * w_1x1[None, None]   # (W, W, Cin, Cout)
    return blocks.transpose(0, 2, 1, 3).reshape(width * Cin, width * Cout)


# ----------------------------------------------------------------------------- #
# Kernel
# ----------------------------------------------------------------------------- #
def residual_block_kernel(x_ref, b1lo_ref, b1c_ref, b1hi_ref, g1_ref, be1_ref,
                          b2_ref, g2_ref, be2_ref, gs_ref, bs_ref, pool_ref,
                          out_ref, xpad_ref, h1pad_ref,
                          *, N, H, W, Cin, Cout, proj):
    f32 = jnp.float32
    NH = N * H
    WCi = W * Cin
    WCo = W * Cout
    inv_count = 1.0 / float(N * H * W)

    # 0/1 matrix that sums the W lane-replicas of each channel and puts the result
    # back in the tiled lane layout (chan_pool[j, j'] = 1 iff same channel).
    chan_pool = pool_ref[...]                                        # (W*Cout, W*Cout) f32

    def batchnorm(y, g_ref_, b_ref_):
        # Training-mode BatchNorm2d with batch statistics; single traversal
        # (sum + sum-of-squares), all statistics in f32.  gamma/beta arrive
        # pre-tiled to (1, W*Cout) lanes from the wrapper.
        s_t = jnp.sum(jnp.dot(y, chan_pool, preferred_element_type=f32),
                      axis=0, keepdims=True)                         # (1, W*Cout)
        ss_t = jnp.sum(jnp.dot(y * y, chan_pool, preferred_element_type=f32),
                       axis=0, keepdims=True)
        mean_t = s_t * inv_count
        var_t = ss_t * inv_count - mean_t * mean_t                    # biased variance
        scale_t = g_ref_[...] * lax.rsqrt(var_t + EPS)
        shift_t = b_ref_[...] - mean_t * scale_t
        return y * scale_t + shift_t

    # ---- stage x with an H-only halo: zero ONLY the two halo rows (W padding is
    #      already folded into the banded weights; no full-buffer zero fill).
    zrow_x = jnp.zeros((N, 1, WCi), xpad_ref.dtype)
    xpad_ref[:, 0:1, :] = zrow_x
    xpad_ref[:, H + 1:H + 2, :] = zrow_x
    xpad_ref[:, 1:H + 1, :] = x_ref[...]

    x_c = x_ref[...].reshape(NH, WCi)                     # dy = 1 rows (== x itself)
    x_lo = xpad_ref[:, 0:H, :].reshape(NH, WCi)           # dy = 0 rows
    x_hi = xpad_ref[:, 2:H + 2, :].reshape(NH, WCi)       # dy = 2 rows

    # ---- conv1: 3 banded matmuls (K = W*Cin, N = W*Cout) on the MXU.
    #      The 1x1 projection shortcut is folded into the center-row matmul
    #      as extra output columns.
    t_c = jnp.dot(x_c, b1c_ref[...], preferred_element_type=f32)     # (NH, WCo[, +WCo])
    acc1 = (jnp.dot(x_lo, b1lo_ref[...], preferred_element_type=f32)
            + jnp.dot(x_hi, b1hi_ref[...], preferred_element_type=f32)
            + t_c[:, :WCo])
    h1 = jnp.maximum(batchnorm(acc1, g1_ref, be1_ref), 0.0)           # BN1 + ReLU (f32)

    # ---- stage h1 (compute dtype) with an H-only halo for conv2.
    zrow_h = jnp.zeros((N, 1, WCo), h1pad_ref.dtype)
    h1pad_ref[:, 0:1, :] = zrow_h
    h1pad_ref[:, H + 1:H + 2, :] = zrow_h
    h1pad_ref[:, 1:H + 1, :] = h1.astype(h1pad_ref.dtype).reshape(N, H, WCo)

    h_lo = h1pad_ref[:, 0:H, :].reshape(NH, WCo)
    h_c = h1pad_ref[:, 1:H + 1, :].reshape(NH, WCo)
    h_hi = h1pad_ref[:, 2:H + 2, :].reshape(NH, WCo)

    # ---- conv2: 3 banded matmuls (K = N = W*Cout), then BN2 (no ReLU yet).
    acc2 = (jnp.dot(h_lo, b2_ref[0], preferred_element_type=f32)
            + jnp.dot(h_c, b2_ref[1], preferred_element_type=f32)
            + jnp.dot(h_hi, b2_ref[2], preferred_element_type=f32))
    left = batchnorm(acc2, g2_ref, be2_ref)

    # ---- shortcut
    if proj:       # 1x1 conv (already computed by the fused conv1 matmul) + BN
        sc = batchnorm(t_c[:, WCo:], gs_ref, bs_ref)
    else:          # identity (Cin == Cout, stride == 1)
        sc = x_c.astype(f32)

    # ---- residual add + final ReLU; lane-dense (N*H, W*Cout) store.
    out_ref[...] = jnp.maximum(left + sc, 0.0)


# ----------------------------------------------------------------------------- #
# Wrapper
# ----------------------------------------------------------------------------- #
def residual_block(x_nchw, params, *, stride=1, compute_dtype=jnp.bfloat16):
    # TODO(synk): stride > 1 (strided-conv spatial subsampling) is not implemented in-kernel.
    assert stride == 1
    N, Cin, H, W = x_nchw.shape
    w1 = params["w1"]                                   # (3, 3, Cin, Cout), HWIO
    Cout = w1.shape[-1]
    proj = (stride != 1) or (Cin != Cout)
    f32 = jnp.float32
    WCo = W * Cout

    # Lane-dense activation layout: NCHW -> NHWC -> (N, H, W*Cin); no jnp.pad.
    x = jnp.transpose(x_nchw, (0, 2, 3, 1)).reshape(N, H, W * Cin).astype(compute_dtype)

    # Banded conv weights (W-direction zero padding folded into the band).
    b1 = _band_matrices(w1.astype(f32), W)                      # (3, W*Cin, W*Cout)
    b2 = _band_matrices(params["w2"].astype(f32), W)            # (3, W*Cout, W*Cout)
    b1_lo, b1_c, b1_hi = b1[0], b1[1], b1[2]

    def tile_c(v):  # per-channel vector -> lane-tiled (1, W*Cout) f32
        return jnp.tile(v.reshape(1, -1).astype(f32), (1, W))

    if proj:
        ws = params["ws"].reshape(Cin, Cout).astype(f32)
        # Fold the 1x1 projection shortcut into the conv1 center-row matmul.
        b1_c = jnp.concatenate([b1_c, _blockdiag(ws, W)], axis=1)   # (W*Cin, 2*W*Cout)
        gs_t, bs_t = tile_c(params["gs"]), tile_c(params["bs"])
    else:            # dummies (unused by the identity-shortcut kernel variant)
        gs_t = jnp.zeros((1, WCo), f32)
        bs_t = jnp.zeros((1, WCo), f32)

    # Per-channel pooling matrix for BN statistics (sums the W lane replicas).
    chan_pool = jnp.tile(jnp.eye(Cout, dtype=f32), (W, W))          # (W*Cout, W*Cout)

    kernel = functools.partial(residual_block_kernel,
                               N=N, H=H, W=W, Cin=Cin, Cout=Cout, proj=proj)
    out2d = pl.pallas_call(
        kernel,
        out_shape=jax.ShapeDtypeStruct((N * H, WCo), f32),
        in_specs=[pl.BlockSpec(memory_space=pltpu.MemorySpace.VMEM)] * 12,
        out_specs=pl.BlockSpec(memory_space=pltpu.MemorySpace.VMEM),
        scratch_shapes=[pltpu.VMEM((N, H + 2, W * Cin), compute_dtype),
                        pltpu.VMEM((N, H + 2, WCo), compute_dtype)],
    )(x,
      b1_lo.astype(compute_dtype), b1_c.astype(compute_dtype), b1_hi.astype(compute_dtype),
      tile_c(params["g1"]), tile_c(params["b1"]),
      b2.astype(compute_dtype), tile_c(params["g2"]), tile_c(params["b2"]),
      gs_t, bs_t, chan_pool)

    out = out2d.reshape(N, H, W, Cout)
    return jnp.transpose(out, (0, 3, 1, 2))             # back to NCHW


# ----------------------------------------------------------------------------- #
# Pure-JAX reference (training-mode BatchNorm, HIGHEST-precision convs)
# ----------------------------------------------------------------------------- #
def residual_block_ref(x_nchw, params, *, stride=1):
    x = jnp.transpose(x_nchw, (0, 2, 3, 1)).astype(jnp.float32)
    Cin = x.shape[-1]
    Cout = params["w1"].shape[-1]
    dn = ("NHWC", "HWIO", "NHWC")

    def bn(h, g, b):
        mean = jnp.mean(h, axis=(0, 1, 2), keepdims=True)
        var = jnp.mean((h - mean) ** 2, axis=(0, 1, 2), keepdims=True)
        return (h - mean) * lax.rsqrt(var + EPS) * g.reshape(1, 1, 1, -1) \
               + b.reshape(1, 1, 1, -1)

    conv = functools.partial(lax.conv_general_dilated,
                             window_strides=(stride, stride),
                             dimension_numbers=dn,
                             precision=lax.Precision.HIGHEST)
    h = conv(x, params["w1"], padding="SAME")
    h = jnp.maximum(bn(h, params["g1"], params["b1"]), 0.0)
    h = conv(h, params["w2"], padding="SAME")
    left = bn(h, params["g2"], params["b2"])

    if stride != 1 or Cin != Cout:
        sc = bn(conv(x, params["ws"], padding="VALID"), params["gs"], params["bs"])
    else:
        sc = x
    out = jnp.maximum(left + sc, 0.0)
    return jnp.transpose(out, (0, 3, 1, 2))


if __name__ == "__main__":
    key = jax.random.PRNGKey(0)
    N, Cin, H, W, Cout = 2, 8, 16, 16, 16
    keys = jax.random.split(key, 12)

    def randp(k, shape, scale=0.2):
        return scale * jax.random.normal(k, shape, jnp.float32)

    x = jax.random.normal(keys[0], (N, Cin, H, W), jnp.float32)
    params = {
        "w1": randp(keys[1], (3, 3, Cin, Cout)),
        "g1": 1.0 + randp(keys[2], (Cout,), 0.1),
        "b1": randp(keys[3], (Cout,), 0.1),
        "w2": randp(keys[4], (3, 3, Cout, Cout)),
        "g2": 1.0 + randp(keys[5], (Cout,), 0.1),
        "b2": randp(keys[6], (Cout,), 0.1),
        "ws": randp(keys[7], (1, 1, Cin, Cout)),     # 1x1 projection shortcut
        "gs": 1.0 + randp(keys[8], (Cout,), 0.1),
        "bs": randp(keys[9], (Cout,), 0.1),
    }

    # Case 1: projection shortcut (inchannel != outchannel), default bf16 MXU inputs.
    # Tolerance accounts for bf16 matmul inputs (f32 accumulation) vs. the
    # HIGHEST-precision f32 reference.
    out = jax.block_until_ready(residual_block(x, params))
    ref = residual_block_ref(x, params)
    assert out.shape == (N, Cout, H, W)
    if not bool(jnp.allclose(out, ref, atol=5e-2, rtol=5e-2)):
        raise AssertionError(
            f"projection-shortcut mismatch, max abs err={float(jnp.max(jnp.abs(out - ref)))}")

    # Case 2: identity shortcut (inchannel == outchannel), f32 compute path (tight check).
    x2 = jax.random.normal(keys[10], (N, Cout, H, W), jnp.float32)
    params2 = dict(params)
    params2["w1"] = randp(keys[11], (3, 3, Cout, Cout))
    out2 = jax.block_until_ready(
        residual_block(x2, params2, compute_dtype=jnp.float32))
    ref2 = residual_block_ref(x2, params2)
    if not bool(jnp.allclose(out2, ref2, atol=2e-2, rtol=2e-2)):
        raise AssertionError(
            f"identity-shortcut mismatch, max abs err={float(jnp.max(jnp.abs(out2 - ref2)))}")

    print("KERNEL_OK")
</pallas_src>

<mosaic_0001>
module attributes {stable_mosaic.version = 11 : i64} {
  func.func @residual_block_kernel(%arg0: memref<2x16x128xbf16, #tpu.memory_space<vmem>>, %arg1: memref<128x256xbf16, #tpu.memory_space<vmem>>, %arg2: memref<128x512xbf16, #tpu.memory_space<vmem>>, %arg3: memref<128x256xbf16, #tpu.memory_space<vmem>>, %arg4: memref<1x256xf32, #tpu.memory_space<vmem>>, %arg5: memref<1x256xf32, #tpu.memory_space<vmem>>, %arg6: memref<3x256x256xbf16, #tpu.memory_space<vmem>>, %arg7: memref<1x256xf32, #tpu.memory_space<vmem>>, %arg8: memref<1x256xf32, #tpu.memory_space<vmem>>, %arg9: memref<1x256xf32, #tpu.memory_space<vmem>>, %arg10: memref<1x256xf32, #tpu.memory_space<vmem>>, %arg11: memref<256x256xf32, #tpu.memory_space<vmem>>, %arg12: memref<32x256xf32, #tpu.memory_space<vmem>>, %arg13: memref<2x18x128xbf16, #tpu.memory_space<vmem>>, %arg14: memref<2x18x256xbf16, #tpu.memory_space<vmem>>) attributes {dimension_semantics = [], scalar_prefetch = 0 : i64, scratch_operands = 2 : i64, tpu.core_type = #tpu.core_type<tc>} {
    %c0 = arith.constant 0 : index
    %c0_0 = arith.constant 0 : index
    %0 = vector.load %arg11[%c0, %c0_0] : memref<256x256xf32, #tpu.memory_space<vmem>>, vector<256x256xf32>
    %cst = arith.constant 0.000000e+00 : bf16
    %1 = vector.broadcast %cst : bf16 to vector<2x1x128xbf16>
    %c0_1 = arith.constant 0 : index
    %c0_2 = arith.constant 0 : index
    %c0_3 = arith.constant 0 : index
    %2 = vector.load %arg13[%c0_1, %c0_2, %c0_3] : memref<2x18x128xbf16, #tpu.memory_space<vmem>>, vector<2x1x128xbf16>
    tpu.vector_store %arg13[%c0_1, %c0_2, %c0_3], %1 {strides = array<i32>} : memref<2x18x128xbf16, #tpu.memory_space<vmem>>, vector<2x1x128xbf16>,
    %c0_4 = arith.constant 0 : index
    %c17 = arith.constant 17 : index
    %c0_5 = arith.constant 0 : index
    %3 = vector.load %arg13[%c0_4, %c17, %c0_5] : memref<2x18x128xbf16, #tpu.memory_space<vmem>>, vector<2x1x128xbf16>
    tpu.vector_store %arg13[%c0_4, %c17, %c0_5], %1 {strides = array<i32>} : memref<2x18x128xbf16, #tpu.memory_space<vmem>>, vector<2x1x128xbf16>,
    %c0_6 = arith.constant 0 : index
    %c0_7 = arith.constant 0 : index
    %c0_8 = arith.constant 0 : index
    %4 = vector.load %arg0[%c0_6, %c0_7, %c0_8] : memref<2x16x128xbf16, #tpu.memory_space<vmem>>, vector<2x16x128xbf16>
    %c0_9 = arith.constant 0 : index
    %c1 = arith.constant 1 : index
    %c0_10 = arith.constant 0 : index
    %5 = vector.load %arg13[%c0_9, %c1, %c0_10] : memref<2x18x128xbf16, #tpu.memory_space<vmem>>, vector<2x16x128xbf16>
    tpu.vector_store %arg13[%c0_9, %c1, %c0_10], %4 {strides = array<i32>} : memref<2x18x128xbf16, #tpu.memory_space<vmem>>, vector<2x16x128xbf16>,
    %c0_11 = arith.constant 0 : index
    %c0_12 = arith.constant 0 : index
    %c0_13 = arith.constant 0 : index
    %6 = vector.load %arg0[%c0_11, %c0_12, %c0_13] : memref<2x16x128xbf16, #tpu.memory_space<vmem>>, vector<2x16x128xbf16>
    %7 = vector.shape_cast %6 : vector<2x16x128xbf16> to vector<32x128xbf16>
    %c0_14 = arith.constant 0 : index
    %c0_15 = arith.constant 0 : index
    %c0_16 = arith.constant 0 : index
    %8 = vector.load %arg13[%c0_14, %c0_15, %c0_16] : memref<2x18x128xbf16, #tpu.memory_space<vmem>>, vector<2x16x128xbf16>
    %9 = vector.shape_cast %8 : vector<2x16x128xbf16> to vector<32x128xbf16>
    %c0_17 = arith.constant 0 : index
    %c2 = arith.constant 2 : index
    %c0_18 = arith.constant 0 : index
    %10 = vector.load %arg13[%c0_17, %c2, %c0_18] : memref<2x18x128xbf16, #tpu.memory_space<vmem>>, vector<2x16x128xbf16>
    %11 = vector.shape_cast %10 : vector<2x16x128xbf16> to vector<32x128xbf16>
    %c0_19 = arith.constant 0 : index
    %c0_20 = arith.constant 0 : index
    %12 = vector.load %arg2[%c0_19, %c0_20] : memref<128x512xbf16, #tpu.memory_space<vmem>>, vector<128x512xbf16>
    %cst_21 = arith.constant dense<0.000000e+00> : vector<32x512xf32>
    %13 = tpu.matmul %7, %12, %cst_21 {dimension_numbers = #tpu.dot_dimension_numbers<[1], [0], [0], [1], [0, 0, 1, 1], [], []>} : vector<32x128xbf16>, vector<128x512xbf16>, vector<32x512xf32> -> vector<32x512xf32>
    %c0_22 = arith.constant 0 : index
    %c0_23 = arith.constant 0 : index
    %14 = vector.load %arg1[%c0_22, %c0_23] : memref<128x256xbf16, #tpu.memory_space<vmem>>, vector<128x256xbf16>
    %cst_24 = arith.constant dense<0.000000e+00> : vector<32x256xf32>
    %15 = tpu.matmul %9, %14, %cst_24 {dimension_numbers = #tpu.dot_dimension_numbers<[1], [0], [0], [1], [0, 0, 1, 1], [], []>} : vector<32x128xbf16>, vector<128x256xbf16>, vector<32x256xf32> -> vector<32x256xf32>
    %c0_25 = arith.constant 0 : index
    %c0_26 = arith.constant 0 : index
    %16 = vector.load %arg3[%c0_25, %c0_26] : memref<128x256xbf16, #tpu.memory_space<vmem>>, vector<128x256xbf16>
    %cst_27 = arith.constant dense<0.000000e+00> : vector<32x256xf32>
    %17 = tpu.matmul %11, %16, %cst_27 {dimension_numbers = #tpu.dot_dimension_numbers<[1], [0], [0], [1], [0, 0, 1, 1], [], []>} : vector<32x128xbf16>, vector<128x256xbf16>, vector<32x256xf32> -> vector<32x256xf32>
    %18 = arith.addf %15, %17 : vector<32x256xf32>
    %19 = vector.extract_strided_slice %13 {offsets = [0, 0], sizes = [32, 256], strides = [1, 1]} : vector<32x512xf32> to vector<32x256xf32>
    %20 = arith.addf %18, %19 : vector<32x256xf32>
    %cst_28 = arith.constant dense<0.000000e+00> : vector<32x256xf32>
    %21 = tpu.matmul %20, %0, %cst_28 {dimension_numbers = #tpu.dot_dimension_numbers<[1], [0], [0], [1], [0, 0, 1, 1], [], []>} : vector<32x256xf32>, vector<256x256xf32>, vector<32x256xf32> -> vector<32x256xf32>
    %cst_29 = arith.constant dense<0.000000e+00> : vector<256xf32>
    %22 = vector.multi_reduction <add>, %21, %cst_29 [0] : vector<32x256xf32> to vector<256xf32>
    %23 = vector.shape_cast %22 : vector<256xf32> to vector<1x256xf32>
    %24 = arith.mulf %20, %20 : vector<32x256xf32>
    %cst_30 = arith.constant dense<0.000000e+00> : vector<32x256xf32>
    %25 = tpu.matmul %24, %0, %cst_30 {dimension_numbers = #tpu.dot_dimension_numbers<[1], [0], [0], [1], [0, 0, 1, 1], [], []>} : vector<32x256xf32>, vector<256x256xf32>, vector<32x256xf32> -> vector<32x256xf32>
    %cst_31 = arith.constant dense<0.000000e+00> : vector<256xf32>
    %26 = vector.multi_reduction <add>, %25, %cst_31 [0] : vector<32x256xf32> to vector<256xf32>
    %27 = vector.shape_cast %26 : vector<256xf32> to vector<1x256xf32>
    %cst_32 = arith.constant 0.001953125 : f32
    %28 = vector.broadcast %cst_32 : f32 to vector<1x256xf32>
    %29 = arith.mulf %23, %28 : vector<1x256xf32>
    %cst_33 = arith.constant 0.001953125 : f32
    %30 = vector.broadcast %cst_33 : f32 to vector<1x256xf32>
    %31 = arith.mulf %27, %30 : vector<1x256xf32>
    %32 = arith.mulf %29, %29 : vector<1x256xf32>
    %33 = arith.subf %31, %32 : vector<1x256xf32>
    %c0_34 = arith.constant 0 : index
    %c0_35 = arith.constant 0 : index
    %34 = vector.load %arg4[%c0_34, %c0_35] : memref<1x256xf32, #tpu.memory_space<vmem>>, vector<1x256xf32>
    %cst_36 = arith.constant 9.99999974E-6 : f32
    %35 = vector.broadcast %cst_36 : f32 to vector<1x256xf32>
    %36 = arith.addf %33, %35 : vector<1x256xf32>
    %37 = math.rsqrt %36 : vector<1x256xf32>
    %38 = arith.mulf %34, %37 : vector<1x256xf32>
    %c0_37 = arith.constant 0 : index
    %c0_38 = arith.constant 0 : index
    %39 = vector.load %arg5[%c0_37, %c0_38] : memref<1x256xf32, #tpu.memory_space<vmem>>, vector<1x256xf32>
    %40 = arith.mulf %29, %38 : vector<1x256xf32>
    %41 = arith.subf %39, %40 : vector<1x256xf32>
    %42 = vector.broadcast %38 : vector<1x256xf32> to vector<32x256xf32>
    %43 = arith.mulf %20, %42 : vector<32x256xf32>
    %44 = vector.broadcast %41 : vector<1x256xf32> to vector<32x256xf32>
    %45 = arith.addf %43, %44 : vector<32x256xf32>
    %cst_39 = arith.constant 0.000000e+00 : f32
    %46 = vector.broadcast %cst_39 : f32 to vector<32x256xf32>
    %47 = arith.maximumf %45, %46 : vector<32x256xf32>
    %cst_40 = arith.constant 0.000000e+00 : bf16
    %48 = vector.broadcast %cst_40 : bf16 to vector<2x1x256xbf16>
    %c0_41 = arith.constant 0 : index
    %c0_42 = arith.constant 0 : index
    %c0_43 = arith.constant 0 : index
    %49 = vector.load %arg14[%c0_41, %c0_42, %c0_43] : memref<2x18x256xbf16, #tpu.memory_space<vmem>>, vector<2x1x256xbf16>
    tpu.vector_store %arg14[%c0_41, %c0_42, %c0_43], %48 {strides = array<i32>} : memref<2x18x256xbf16, #tpu.memory_space<vmem>>, vector<2x1x256xbf16>,
    %c0_44 = arith.constant 0 : index
    %c17_45 = arith.constant 17 : index
    %c0_46 = arith.constant 0 : index
    %50 = vector.load %arg14[%c0_44, %c17_45, %c0_46] : memref<2x18x256xbf16, #tpu.memory_space<vmem>>, vector<2x1x256xbf16>
    tpu.vector_store %arg14[%c0_44, %c17_45, %c0_46], %48 {strides = array<i32>} : memref<2x18x256xbf16, #tpu.memory_space<vmem>>, vector<2x1x256xbf16>,
    %51 = arith.truncf %47 : vector<32x256xf32> to vector<32x256xbf16>
    %52 = vector.shape_cast %51 : vector<32x256xbf16> to vector<2x16x256xbf16>
    %c0_47 = arith.constant 0 : index
    %c1_48 = arith.constant 1 : index
    %c0_49 = arith.constant 0 : index
    %53 = vector.load %arg14[%c0_47, %c1_48, %c0_49] : memref<2x18x256xbf16, #tpu.memory_space<vmem>>, vector<2x16x256xbf16>
    tpu.vector_store %arg14[%c0_47, %c1_48, %c0_49], %52 {strides = array<i32>} : memref<2x18x256xbf16, #tpu.memory_space<vmem>>, vector<2x16x256xbf16>,
    %c0_50 = arith.constant 0 : index
    %c0_51 = arith.constant 0 : index
    %c0_52 = arith.constant 0 : index
    %54 = vector.load %arg14[%c0_50, %c0_51, %c0_52] : memref<2x18x256xbf16, #tpu.memory_space<vmem>>, vector<2x16x256xbf16>
    %55 = vector.shape_cast %54 : vector<2x16x256xbf16> to vector<32x256xbf16>
    %c0_53 = arith.constant 0 : index
    %c1_54 = arith.constant 1 : index
    %c0_55 = arith.constant 0 : index
    %56 = vector.load %arg14[%c0_53, %c1_54, %c0_55] : memref<2x18x256xbf16, #tpu.memory_space<vmem>>, vector<2x16x256xbf16>
    %57 = vector.shape_cast %56 : vector<2x16x256xbf16> to vector<32x256xbf16>
    %c0_56 = arith.constant 0 : index
    %c2_57 = arith.constant 2 : index
    %c0_58 = arith.constant 0 : index
    %58 = vector.load %arg14[%c0_56, %c2_57, %c0_58] : memref<2x18x256xbf16, #tpu.memory_space<vmem>>, vector<2x16x256xbf16>
    %59 = vector.shape_cast %58 : vector<2x16x256xbf16> to vector<32x256xbf16>
    %c0_59 = arith.constant 0 : index
    %c0_60 = arith.constant 0 : index
    %c0_61 = arith.constant 0 : index
    %60 = vector.load %arg6[%c0_59, %c0_60, %c0_61] : memref<3x256x256xbf16, #tpu.memory_space<vmem>>, vector<1x256x256xbf16>
    %61 = vector.shape_cast %60 : vector<1x256x256xbf16> to vector<256x256xbf16>
    %cst_62 = arith.constant dense<0.000000e+00> : vector<32x256xf32>
    %62 = tpu.matmul %55, %61, %cst_62 {dimension_numbers = #tpu.dot_dimension_numbers<[1], [0], [0], [1], [0, 0, 1, 1], [], []>} : vector<32x256xbf16>, vector<256x256xbf16>, vector<32x256xf32> -> vector<32x256xf32>
    %c1_63 = arith.constant 1 : index
    %c0_64 = arith.constant 0 : index
    %c0_65 = arith.constant 0 : index
    %63 = vector.load %arg6[%c1_63, %c0_64, %c0_65] : memref<3x256x256xbf16, #tpu.memory_space<vmem>>, vector<1x256x256xbf16>
    %64 = vector.shape_cast %63 : vector<1x256x256xbf16> to vector<256x256xbf16>
    %cst_66 = arith.constant dense<0.000000e+00> : vector<32x256xf32>
    %65 = tpu.matmul %57, %64, %cst_66 {dimension_numbers = #tpu.dot_dimension_numbers<[1], [0], [0], [1], [0, 0, 1, 1], [], []>} : vector<32x256xbf16>, vector<256x256xbf16>, vector<32x256xf32> -> vector<32x256xf32>
    %66 = arith.addf %62, %65 : vector<32x256xf32>
    %c2_67 = arith.constant 2 : index
    %c0_68 = arith.constant 0 : index
    %c0_69 = arith.constant 0 : index
    %67 = vector.load %arg6[%c2_67, %c0_68, %c0_69] : memref<3x256x256xbf16, #tpu.memory_space<vmem>>, vector<1x256x256xbf16>
    %68 = vector.shape_cast %67 : vector<1x256x256xbf16> to vector<256x256xbf16>
    %cst_70 = arith.constant dense<0.000000e+00> : vector<32x256xf32>
    %69 = tpu.matmul %59, %68, %cst_70 {dimension_numbers = #tpu.dot_dimension_numbers<[1], [0], [0], [1], [0, 0, 1, 1], [], []>} : vector<32x256xbf16>, vector<256x256xbf16>, vector<32x256xf32> -> vector<32x256xf32>
    %70 = arith.addf %66, %69 : vector<32x256xf32>
    %cst_71 = arith.constant dense<0.000000e+00> : vector<32x256xf32>
    %71 = tpu.matmul %70, %0, %cst_71 {dimension_numbers = #tpu.dot_dimension_numbers<[1], [0], [0], [1], [0, 0, 1, 1], [], []>} : vector<32x256xf32>, vector<256x256xf32>, vector<32x256xf32> -> vector<32x256xf32>
    %cst_72 = arith.constant dense<0.000000e+00> : vector<256xf32>
    %72 = vector.multi_reduction <add>, %71, %cst_72 [0] : vector<32x256xf32> to vector<256xf32>
    %73 = vector.shape_cast %72 : vector<256xf32> to vector<1x256xf32>
    %74 = arith.mulf %70, %70 : vector<32x256xf32>
    %cst_73 = arith.constant dense<0.000000e+00> : vector<32x256xf32>
    %75 = tpu.matmul %74, %0, %cst_73 {dimension_numbers = #tpu.dot_dimension_numbers<[1], [0], [0], [1], [0, 0, 1, 1], [], []>} : vector<32x256xf32>, vector<256x256xf32>, vector<32x256xf32> -> vector<32x256xf32>
    %cst_74 = arith.constant dense<0.000000e+00> : vector<256xf32>
    %76 = vector.multi_reduction <add>, %75, %cst_74 [0] : vector<32x256xf32> to vector<256xf32>
    %77 = vector.shape_cast %76 : vector<256xf32> to vector<1x256xf32>
    %cst_75 = arith.constant 0.001953125 : f32
    %78 = vector.broadcast %cst_75 : f32 to vector<1x256xf32>
    %79 = arith.mulf %73, %78 : vector<1x256xf32>
    %cst_76 = arith.constant 0.001953125 : f32
    %80 = vector.broadcast %cst_76 : f32 to vector<1x256xf32>
    %81 = arith.mulf %77, %80 : vector<1x256xf32>
    %82 = arith.mulf %79, %79 : vector<1x256xf32>
    %83 = arith.subf %81, %82 : vector<1x256xf32>
    %c0_77 = arith.constant 0 : index
    %c0_78 = arith.constant 0 : index
    %84 = vector.load %arg7[%c0_77, %c0_78] : memref<1x256xf32, #tpu.memory_space<vmem>>, vector<1x256xf32>
    %cst_79 = arith.constant 9.99999974E-6 : f32
    %85 = vector.broadcast %cst_79 : f32 to vector<1x256xf32>
    %86 = arith.addf %83, %85 : vector<1x256xf32>
    %87 = math.rsqrt %86 : vector<1x256xf32>
    %88 = arith.mulf %84, %87 : vector<1x256xf32>
    %c0_80 = arith.constant 0 : index
    %c0_81 = arith.constant 0 : index
    %89 = vector.load %arg8[%c0_80, %c0_81] : memref<1x256xf32, #tpu.memory_space<vmem>>, vector<1x256xf32>
    %90 = arith.mulf %79, %88 : vector<1x256xf32>
    %91 = arith.subf %89, %90 : vector<1x256xf32>
    %92 = vector.broadcast %88 : vector<1x256xf32> to vector<32x256xf32>
    %93 = arith.mulf %70, %92 : vector<32x256xf32>
    %94 = vector.broadcast %91 : vector<1x256xf32> to vector<32x256xf32>
    %95 = arith.addf %93, %94 : vector<32x256xf32>
    %96 = vector.extract_strided_slice %13 {offsets = [0, 256], sizes = [32, 256], strides = [1, 1]} : vector<32x512xf32> to vector<32x256xf32>
    %cst_82 = arith.constant dense<0.000000e+00> : vector<32x256xf32>
    %97 = tpu.matmul %96, %0, %cst_82 {dimension_numbers = #tpu.dot_dimension_numbers<[1], [0], [0], [1], [0, 0, 1, 1], [], []>} : vector<32x256xf32>, vector<256x256xf32>, vector<32x256xf32> -> vector<32x256xf32>
    %cst_83 = arith.constant dense<0.000000e+00> : vector<256xf32>
    %98 = vector.multi_reduction <add>, %97, %cst_83 [0] : vector<32x256xf32> to vector<256xf32>
    %99 = vector.shape_cast %98 : vector<256xf32> to vector<1x256xf32>
    %100 = arith.mulf %96, %96 : vector<32x256xf32>
    %cst_84 = arith.constant dense<0.000000e+00> : vector<32x256xf32>
    %101 = tpu.matmul %100, %0, %cst_84 {dimension_numbers = #tpu.dot_dimension_numbers<[1], [0], [0], [1], [0, 0, 1, 1], [], []>} : vector<32x256xf32>, vector<256x256xf32>, vector<32x256xf32> -> vector<32x256xf32>
    %cst_85 = arith.constant dense<0.000000e+00> : vector<256xf32>
    %102 = vector.multi_reduction <add>, %101, %cst_85 [0] : vector<32x256xf32> to vector<256xf32>
    %103 = vector.shape_cast %102 : vector<256xf32> to vector<1x256xf32>
    %cst_86 = arith.constant 0.001953125 : f32
    %104 = vector.broadcast %cst_86 : f32 to vector<1x256xf32>
    %105 = arith.mulf %99, %104 : vector<1x256xf32>
    %cst_87 = arith.constant 0.001953125 : f32
    %106 = vector.broadcast %cst_87 : f32 to vector<1x256xf32>
    %107 = arith.mulf %103, %106 : vector<1x256xf32>
    %108 = arith.mulf %105, %105 : vector<1x256xf32>
    %109 = arith.subf %107, %108 : vector<1x256xf32>
    %c0_88 = arith.constant 0 : index
    %c0_89 = arith.constant 0 : index
    %110 = vector.load %arg9[%c0_88, %c0_89] : memref<1x256xf32, #tpu.memory_space<vmem>>, vector<1x256xf32>
    %cst_90 = arith.constant 9.99999974E-6 : f32
    %111 = vector.broadcast %cst_90 : f32 to vector<1x256xf32>
    %112 = arith.addf %109, %111 : vector<1x256xf32>
    %113 = math.rsqrt %112 : vector<1x256xf32>
    %114 = arith.mulf %110, %113 : vector<1x256xf32>
    %c0_91 = arith.constant 0 : index
    %c0_92 = arith.constant 0 : index
    %115 = vector.load %arg10[%c0_91, %c0_92] : memref<1x256xf32, #tpu.memory_space<vmem>>, vector<1x256xf32>
    %116 = arith.mulf %105, %114 : vector<1x256xf32>
    %117 = arith.subf %115, %116 : vector<1x256xf32>
    %118 = vector.broadcast %114 : vector<1x256xf32> to vector<32x256xf32>
    %119 = arith.mulf %96, %118 : vector<32x256xf32>
    %120 = vector.broadcast %117 : vector<1x256xf32> to vector<32x256xf32>
    %121 = arith.addf %119, %120 : vector<32x256xf32>
    %122 = arith.addf %95, %121 : vector<32x256xf32>
    %cst_93 = arith.constant 0.000000e+00 : f32
    %123 = vector.broadcast %cst_93 : f32 to vector<32x256xf32>
    %124 = arith.maximumf %122, %123 : vector<32x256xf32>
    %c0_94 = arith.constant 0 : index
    %c0_95 = arith.constant 0 : index
    %125 = vector.load %arg12[%c0_94, %c0_95] : memref<32x256xf32, #tpu.memory_space<vmem>>, vector<32x256xf32>
    tpu.vector_store %arg12[%c0_94, %c0_95], %124 {strides = array<i32>} : memref<32x256xf32, #tpu.memory_space<vmem>>, vector<32x256xf32>,
    return
  }
}

</mosaic_0001>

<bundles_post_ra>
// kernel: tpu_custom_call.1
= control target key start
LH: loop header
LB: loop body
LE: loop exit
PB: predicated region body
PF: predicated region fallthrough
CT: control target
= control target key end

     0   :  { %17 = vsyncpa [#allocation5], 0  ;;  %s4458_s0 = inlined_call_operand.hbm [shape: bf16[2,16,128], index: 0, kind: input, shape index: {}]   ;;  %s4459_s1 = inlined_call_operand.hbm [shape: bf16[128,256], index: 1, kind: input, shape index: {}]   ;;  %s4460_s2 = inlined_call_operand.hbm [shape: bf16[128,512], index: 2, kind: input, shape index: {}]   ;;  %s4461_s3 = inlined_call_operand.hbm [shape: bf16[128,256], index: 3, kind: input, shape index: {}]   ;;  %s4462_s4 = inlined_call_operand.vmem [shape: f32[1,256], index: 4, kind: input, shape index: {}]   ;;  %s4463_s5 = inlined_call_operand.vmem [shape: f32[1,256], index: 5, kind: input, shape index: {}]   ;;  %s4464_s6 = inlined_call_operand.hbm [shape: bf16[3,256,256], index: 6, kind: input, shape index: {}]   ;;  %s4465_s7 = inlined_call_operand.vmem [shape: f32[1,256], index: 7, kind: input, shape index: {}]   ;;  %s4466_s8 = inlined_call_operand.vmem [shape: f32[1,256], index: 8, kind: input, shape index: {}]   ;;  %s4467_s9 = inlined_call_operand.vmem [shape: f32[1,256], index: 9, kind: input, shape index: {}]   ;;  %s4468_s10 = inlined_call_operand.vmem [shape: f32[1,256], index: 10, kind: input, shape index: {}]   ;;  %s4469_s11 = inlined_call_operand.hbm [shape: f32[256,256], index: 11, kind: input, shape index: {}]   ;;  %s4470_s12 = inlined_call_operand.hbm [shape: f32[32,256], index: 12, kind: output, shape index: {}]  }
   0x1   :  { %18 = vsyncpa [#allocation8], 0 }
   0x2   :  { %19 = vsyncpa [#allocation11], 0 }
   0x3   :  { %20 = vsyncpa [#allocation14], 0 }
   0x4   :  { %21 = vsyncpa [#allocation6], 0  ;;  %s3576_s21 = smov [#allocation7]  }
   0x5   :  { %s39_s22 = sshll.u32 %s3576_s21, 4  ;;  %s40_s22 = int_to_ptr.vmem [resolvable:$true] %s39_s22 }
   0x6   :  { %s3434_s23 = scalar_lea.vmem %s40_s22, 2048  ;;  %p3439_p1 = scmp.lt.s32.totalorder %s40_s22, %s40_s22 }
   0x7   :  { %p3435_p0 = scmp.ne.s32.totalorder %s40_s22, %s3434_s23  ;;  %p3440_p2 = scmp.lt.s32.totalorder %s3434_s23, %s3434_s23 }
   0x9   :  { %p3441_p3 = por %p3440_p2, %p3439_p1 }
   0xb   :  { %p3442_p4 = pnand %p3441_p3, %p3435_p0 }
   0xd   :  { %3445 = shalt.err (!%p3442_p4)
}
   0xe   :  { %s3577_s24 = smov 128   ;;  %s3578_s25 = smov 8  }
   0xf   :  { %45 = dma.hbm_to_vmem [thread:$0]  %s4459_s1, 2048, %s40_s22, [#allocation8], %s3577_s24, %s3577_s24, %s3578_s25  }
  0x10   :  { %s3579_s28 = smov [#allocation10]   ;;  %s3580_s30 = smov [#allocation4]  }
  0x11   :  { %s63_s29 = sshll.u32 %s3579_s28, 4  ;;  %s27_s13 = sshll.u32 %s3580_s30, 4  ;;  %s64_s29 = int_to_ptr.vmem [resolvable:$true] %s63_s29  ;;  %s28_s13 = int_to_ptr.vmem [resolvable:$true] %s27_s13 }
  0x12   :  { %s3454_s14 = scalar_lea.vmem %s64_s29, 2048  ;;  %p3459_p6 = scmp.lt.s32.totalorder %s64_s29, %s64_s29 }
  0x13   :  { %p3455_p5 = scmp.ne.s32.totalorder %s64_s29, %s3454_s14  ;;  %p3460_p7 = scmp.lt.s32.totalorder %s3454_s14, %s3454_s14 }
  0x15   :  { %p3461_p8 = por %p3460_p7, %p3459_p6 }
  0x17   :  { %p3462_p9 = pnand %p3461_p8, %p3455_p5 }
  0x19   :  { %3465 = shalt.err (!%p3462_p9)
}
  0x1a   :  { %69 = dma.hbm_to_vmem [thread:$0]  %s4461_s3, 2048, %s64_s29, [#allocation11], %s3577_s24, %s3577_s24, %s3578_s25  }
  0x1b   :  { %s3474_s1 = scalar_lea.vmem %s28_s13, 256  ;;  %p3479_p11 = scmp.lt.s32.totalorder %s28_s13, %s28_s13 }
  0x1c   :  { %p3475_p10 = scmp.ne.s32.totalorder %s28_s13, %s3474_s1  ;;  %p3480_p12 = scmp.lt.s32.totalorder %s3474_s1, %s3474_s1 }
  0x1e   :  { %p3481_p13 = por %p3480_p12, %p3479_p11 }
  0x20   :  { %p3482_p0 = pnand %p3481_p13, %p3475_p10 }
  0x22   :  { %3485 = shalt.err (!%p3482_p0)
}
  0x23   :  { %s3581_s17 = smov 64   ;;  %s3582_s18 = smov 4  }
  0x24   :  { %33 = dma.hbm_to_vmem [thread:$0]  %s4458_s0, 256, %s28_s13, [#allocation5], %s3581_s17, %s3581_s17, %s3582_s18  }
  0x25   :  { %s3583_s21 = smov [#allocation9]  }
  0x26   :  { %s51_s22 = sshll.u32 %s3583_s21, 4  ;;  %s52_s22 = int_to_ptr.vmem [resolvable:$true] %s51_s22 }
  0x27   :  { %s3494_s23 = scalar_lea.vmem %s52_s22, 4096  ;;  %p3499_p2 = scmp.lt.s32.totalorder %s52_s22, %s52_s22 }
  0x28   :  { %p3495_p1 = scmp.ne.s32.totalorder %s52_s22, %s3494_s23  ;;  %p3500_p3 = scmp.lt.s32.totalorder %s3494_s23, %s3494_s23 }
  0x2a   :  { %p3501_p4 = por %p3500_p3, %p3499_p2 }
  0x2c   :  { %p3502_p5 = pnand %p3501_p4, %p3495_p1 }
  0x2e   :  { %3505 = shalt.err (!%p3502_p5)
}
  0x2f   :  { %s3584_s3 = smov 256   ;;  %s3585_s26 = smov 16  }
  0x30   :  { %57 = dma.hbm_to_vmem [thread:$0]  %s4460_s2, 4096, %s52_s22, [#allocation8], %s3584_s3, %s3584_s3, %s3585_s26  }
  0x31   :  { %s3586_s0 = smov [#allocation12]   ;;  %s3587_s30 = smov [#allocation13]  }
  0x32   :  { %s79_s29 = sshll.u32 %s3586_s0, 4  ;;  %s99_s13 = sshll.u32 %s3587_s30, 4  ;;  %s80_s29 = int_to_ptr.vmem [resolvable:$true] %s79_s29  ;;  %s100_s13 = int_to_ptr.vmem [resolvable:$true] %s99_s13 }
  0x33   :  { %s3514_s14 = scalar_lea.vmem %s80_s29, 12288  ;;  %p3519_p7 = scmp.lt.s32.totalorder %s80_s29, %s80_s29 }
  0x34   :  { %p3515_p6 = scmp.ne.s32.totalorder %s80_s29, %s3514_s14  ;;  %p3520_p8 = scmp.lt.s32.totalorder %s3514_s14, %s3514_s14 }
  0x36   :  { %p3521_p9 = por %p3520_p8, %p3519_p7 }
  0x38   :  { %p3522_p10 = pnand %p3521_p9, %p3515_p6 }
  0x3a   :  { %3525 = shalt.err (!%p3522_p10)
}
  0x3b   :  { %85 = dma.hbm_to_vmem [thread:$0]  %s4464_s6, 12288, %s80_s29, [#allocation11], %s3577_s24, %s3577_s24, %s3578_s25  }
  0x3c   :  { %s3534_s2 = scalar_lea.vmem %s100_s13, 8192  ;;  %p3539_p12 = scmp.lt.s32.totalorder %s100_s13, %s100_s13 }
  0x3d   :  { %p3535_p11 = scmp.ne.s32.totalorder %s100_s13, %s3534_s2  ;;  %p3540_p13 = scmp.lt.s32.totalorder %s3534_s2, %s3534_s2 }
  0x3f   :  { %p3541_p0 = por %p3540_p13, %p3539_p12 }
  0x41   :  { %p3542_p1 = pnand %p3541_p0, %p3535_p11 }
  0x43   :  { %3545 = shalt.err (!%p3542_p1)
}
  0x44   :  { %105 = dma.hbm_to_vmem [thread:$0]  %s4469_s11, 8192, %s100_s13, [#allocation14], %s3584_s3, %s3584_s3, %s3585_s26  }
  0x45   :  { %3566 = dma.done.wait [#allocation5], 256  }
  0x46   :  { %3567 = vsyncadd [#allocation5], 4294967040 }
  0x47   :  { %3568 = dma.done.wait [#allocation8], 6144  }
  0x48   :  { %3569 = vsyncadd [#allocation8], 4294961152 }
  0x49   :  { %3570 = dma.done.wait [#allocation11], 14336  }
  0x4a   :  { %3571 = vsyncadd [#allocation11], 4294952960 }
  0x4b   :  { %3572 = dma.done.wait [#allocation14], 8192  }
  0x4c   :  { %3573 = vsyncadd [#allocation14], 4294959104  ;;  %v3588_v0 = vmov 0   ;;  %v3106_v1 = vld [vmem:[#allocation9 + $0xe4] ss:$16 sps:$4 sm:$0xff]   ;;  %vm189_vm0 = vcmask 1040384  }
  0x4d   :  { %539 = vmatprep.mubr.bf16.mxu1 %v3588_v0  ;;  %765 = vmatprep.mubr.bf16.mxu0 %v3588_v0  ;;  %v3108_v2 = vld [vmem:[#allocation9 + $0xe0] ss:$16 sps:$4 sm:$0xff]   ;;  %v3109_v3 = vld [vmem:[#allocation9 + $0xc4] ss:$16 sps:$4 sm:$0xff]   ;;  %v3133_v21 = vld [vmem:[#allocation9 + $0xec] ss:$16 sps:$4 sm:$0xff]  }
  0x4e   :  { %507 = vmatprep.subr.bf16.mxu1 %v3106_v1  ;;  %v3111_v4 = vld [vmem:[#allocation9 + $0xc0] ss:$16 sps:$4 sm:$0xff]   ;;  %v3112_v5 = vld [vmem:[#allocation9 + $0xa4] ss:$16 sps:$4 sm:$0xff]   ;;  %v3131_v26 = vld [vmem:[#allocation9 + $0xe8] ss:$16 sps:$4 sm:$0xff]  }
  0x4f   :  { %508 = vmatpush1.bf16.msra.mxu1 %v3108_v2  ;;  %v3114_v6 = vld [vmem:[#allocation9 + $0xa0] ss:$16 sps:$4 sm:$0xff]   ;;  %v3115_v7 = vld [vmem:[#allocation9 + $0x84] ss:$16 sps:$4 sm:$0xff]   ;;  %v3136_v27 = vld [vmem:[#allocation9 + $0xcc] ss:$16 sps:$4 sm:$0xff]  }
  0x50   :  { %509 = vmatprep.subr.bf16.mxu1 %v3109_v3  ;;  %v3117_v8 = vld [vmem:[#allocation9 + $0x80] ss:$16 sps:$4 sm:$0xff]   ;;  %v3118_v9 = vld [vmem:[#allocation9 + $0x64] ss:$16 sps:$4 sm:$0xff]   ;;  %vm190_vm1 = vsmask.f32 256 }
  0x51   :  { %v3120_v10 = vld [vmem:[#allocation9 + $0x60] ss:$16 sps:$4 sm:$0xff]   ;;  %v3121_v11 = vld [vmem:[#allocation9 + $0x44] ss:$16 sps:$4 sm:$0xff]   ;;  %v3134_v30 = vld [vmem:[#allocation9 + $0xc8] ss:$16 sps:$4 sm:$0xff]  }
  0x52   :  { %v3123_v12 = vld [vmem:[#allocation9 + $0x40] ss:$16 sps:$4 sm:$0xff]   ;;  %v3124_v13 = vld [vmem:[#allocation9 + $0x24] ss:$16 sps:$4 sm:$0xff]   ;;  %v3139_v31 = vld [vmem:[#allocation9 + $0xac] ss:$16 sps:$4 sm:$0xff]  }
  0x53   :  { %510 = vmatpush1.bf16.msra.mxu1 %v3111_v4  ;;  %v3126_v14 = vld [vmem:[#allocation9 + $0x20] ss:$16 sps:$4 sm:$0xff]   ;;  %v3153_v15 = vld [vmem:[#allocation10 + $0x74] ss:$8 sps:$4 sm:$0xff]   ;;  %v3159_v18 = vld [vmem:[#allocation10 + $0x64] ss:$8 sps:$4 sm:$0xff]  }
  0x54   :  { %511 = vmatprep.subr.bf16.mxu1 %v3112_v5  ;;  %v3155_v16 = vld [vmem:[#allocation10 + $0x70] ss:$8 sps:$4 sm:$0xff]   ;;  %v3127_v17 = vld [vmem:[#allocation9 + $0x4] ss:$16 sps:$4 sm:$0xff]   ;;  %733 = vmatprep.subr.bf16.mxu0 %v3153_v15  ;;  %v3161_v19 = vld [vmem:[#allocation10 + $0x60] ss:$8 sps:$4 sm:$0xff]  }
  0x55   :  { %734 = vmatpush1.bf16.msra.mxu0 %v3155_v16  ;;  %v3129_v20 = vld [vmem:[#allocation9] ss:$16 sps:$4 sm:$0xff]   ;;  %v3165_v22 = vld [vmem:[#allocation10 + $0x54] ss:$8 sps:$4 sm:$0xff]   ;;  %v3171_v25 = vld [vmem:[#allocation10 + $0x44] ss:$8 sps:$4 sm:$0xff]  }
  0x56   :  { %735 = vmatprep.subr.bf16.mxu0 %v3159_v18  ;;  %v3691_v23 = vld [vmem:[#allocation4] sm:$0xff]   ;;  %v3173_v28 = vld [vmem:[#allocation10 + $0x40] ss:$8 sps:$4 sm:$0xff]   ;;  %vm3697_vm2 = vmand %vm189_vm0, %vm190_vm1  ;;  %vm198_vm3 = vsmask.f32 7938  ;;  %vm252_vm6 = vcmask 1043456  }
  0x57   :  { %512 = vmatpush1.bf16.msra.mxu1 %v3114_v6  ;;  %v3167_v24 = vld [vmem:[#allocation10 + $0x50] ss:$8 sps:$4 sm:$0xff]   ;;  %v3177_v29 = vld [vmem:[#allocation10 + $0x34] ss:$8 sps:$4 sm:$0xff]   ;;  %v3183_v35 = vld [vmem:[#allocation10 + $0x24] ss:$8 sps:$4 sm:$0xff]  }
  0x58   :  { %513 = vmatprep.subr.bf16.mxu1 %v3115_v7  ;;  %v3701_v33 = vld [vmem:[#allocation4 + $0x8] sm:$0xff]   ;;  %vm3705_vm4 = vmand %vm189_vm0, %vm198_vm3  ;;  %vm210_vm5 = vsmask.f32 4368  ;;  %v3185_v40 = vld [vmem:[#allocation10 + $0x20] ss:$8 sps:$4 sm:$0xff]   ;;  %vm286_vm7 = vcmask 1042432  }
  0x59   :  { %736 = vmatpush1.bf16.msra.mxu0 %v3161_v19  ;;  %v3179_v34 = vld [vmem:[#allocation10 + $0x30] ss:$8 sps:$4 sm:$0xff]   ;;  %v3142_v37 = vld [vmem:[#allocation9 + $0x8c] ss:$16 sps:$4 sm:$0xff]   ;;  %vm287_vm8 = vcmask 1046532   ;;  %vm3717_vm9 = vmor %vm190_vm1, %vm210_vm5  ;;  %vm1259_vm12 = vcmask 1044484  }
  0x5a   :  { %737 = vmatprep.subr.bf16.mxu0 %v3165_v22  ;;  %v3137_v36 = vld [vmem:[#allocation9 + $0xa8] ss:$16 sps:$4 sm:$0xff]   ;;  %v3145_v41 = vld [vmem:[#allocation9 + $0x6c] ss:$16 sps:$4 sm:$0xff]   ;;  %v200_v45 = vld [vmem:[#allocation2 + $0x8] sm:$0x1] }
  0x5b   :  { %514 = vmatpush1.bf16.msra.mxu1 %v3117_v8  ;;  %v3140_v39 = vld [vmem:[#allocation9 + $0x88] ss:$16 sps:$4 sm:$0xff]   ;;  %v3189_v42 = vld [vmem:[#allocation10 + $0x14] ss:$8 sps:$4 sm:$0xff]   ;;  %v201_v47 = vsel %vm3705_vm4, 0, %v200_v45  ;;  %vm3727_vm10 = vmand %vm252_vm6, %vm198_vm3  ;;  %vm1338_vm3 = vcmask 1047556  }
  0x5c   :  { %515 = vmatprep.subr.bf16.mxu1 %v3118_v9  ;;  %v3191_v43 = vld [vmem:[#allocation10 + $0x10] ss:$8 sps:$4 sm:$0xff]   ;;  %v192_v44 = vld [vmem:[#allocation2] sm:$0x1]  ;;  %v207_v49 = vld [vmem:[#allocation4 + $0x4] sm:$0xf] }
  0x5d   :  { %738 = vmatpush1.bf16.msra.mxu0 %v3167_v24  ;;  %v193_v46 = vsel %vm3697_vm2, 0, %v192_v44  ;;  %v206_v48 = vld [vmem:[#allocation4] sm:$0xf]  ;;  %v3143_v50 = vld [vmem:[#allocation9 + $0x68] ss:$16 sps:$4 sm:$0xff]   ;;  %v221_v53 = vshrl.u32 %v207_v49, 16  ;;  %vm3739_vm11 = vmor %vm286_vm7, %vm287_vm8 }
  0x5e   :  { %739 = vmatprep.subr.bf16.mxu0 %v3171_v25  ;;  %194 = vst [vmem:[#allocation2] sm:$0x1] %v193_v46  ;;  %202 = vst [vmem:[#allocation2 + $0x8] sm:$0x1] %v201_v47  ;;  %v213_v51 = vshrl.u32 %v206_v48, 16  ;;  %v216_v52 = vshll.u32 %v206_v48, 16 }
  0x5f   :  { %516 = vmatpush1.bf16.msra.mxu1 %v3120_v10  ;;  %v224_v54 = vshll.u32 %v207_v49, 16  ;;  %v3149_v55 = vld [vmem:[#allocation9 + $0x4c] ss:$16 sps:$4 sm:$0xff]   ;;  %v195_v57 = vld [vmem:[#allocation2 + $0xc] sm:$0x1]  ;;  %v223_v61 = vrot.slane %v221_v53, 7 }
  0x60   :  { %517 = vmatprep.subr.bf16.mxu1 %v3121_v11  ;;  %v3195_v56 = vld [vmem:[#allocation10 + $0x4] ss:$8 sps:$4 sm:$0xff]   ;;  %v3197_v58 = vld [vmem:[#allocation10] ss:$8 sps:$4 sm:$0xff]   ;;  %v215_v60 = vrot.slane %v213_v51, 7  ;;  %v196_v62 = vsel %vm3697_vm2, 0, %v195_v57 }
  0x61   :  { %740 = vmatpush1.bf16.msra.mxu0 %v3173_v28  ;;  %v203_v63 = vld [vmem:[#allocation2 + $0x14] sm:$0x1]  ;;  %197 = vst [vmem:[#allocation2 + $0xc] sm:$0x1] %v196_v62  ;;  %v208_v2 = vld [vmem:[#allocation4 + $0x8] sm:$0xf]  ;;  %v226_v7 = vor.u32 %v224_v54, %v223_v61 }
  0x62   :  { %741 = vmatprep.subr.bf16.mxu0 %v3177_v29  ;;  %v204_v1 = vsel %vm3705_vm4, 0, %v203_v63  ;;  %v209_v3 = vld [vmem:[#allocation4 + $0xc] sm:$0xf]  ;;  %v3147_v4 = vld [vmem:[#allocation9 + $0x48] ss:$16 sps:$4 sm:$0xff]   ;;  %v218_v5 = vor.u32 %v216_v52, %v215_v60  ;;  %v219_v6 = vrot.slane %v215_v60, 4 }
  0x63   :  { %518 = vmatpush1.bf16.msra.mxu1 %v3123_v12  ;;  %v228_v8 = vrot.slane %v223_v61, 4  ;;  %205 = vst [vmem:[#allocation2 + $0x14] sm:$0x1] %v204_v1  ;;  %v3152_v9 = vld [vmem:[#allocation9 + $0x2c] ss:$16 sps:$4 sm:$0xff]   ;;  %v230_v11 = vshrl.u32 %v208_v2, 16 }
  0x64   :  { %519 = vmatprep.subr.bf16.mxu1 %v3124_v13  ;;  %v233_v12 = vshll.u32 %v208_v2, 16  ;;  %v238_v13 = vshrl.u32 %v209_v3, 16  ;;  %v227_v15 = vsel %vm3717_vm9, %v219_v6, %v226_v7  ;;  %v3158_v25 = vld [vmem:[#allocation9 + $0xc] ss:$16 sps:$4 sm:$0xff]   ;;  %v3168_v53 = vld [vmem:[#allocation7 + $0x60] ss:$8 sps:$4 sm:$0xff]  }
  0x65   :  { %742 = vmatpush1.bf16.msra.mxu0 %v3179_v34  ;;  %v254_v16 = vld [vmem:[#allocation2] sm:$0xf]  ;;  %257 = vst [vmem:[#allocation2 + $0x4] sm:$0xf] %v227_v15  ;;  %v232_v18 = vrot.slane %v230_v11, 7 }
  0x66   :  { %743 = vmatprep.subr.bf16.mxu0 %v3183_v35  ;;  %v240_v19 = vrot.slane %v238_v13, 7  ;;  %v3170_v48 = vld [vmem:[#allocation7 + $0x64] ss:$8 sps:$4 sm:$0xff]   ;;  %v3174_v62 = vld [vmem:[#allocation7 + $0x50] ss:$8 sps:$4 sm:$0xff]  }
  0x67   :  { %520 = vmatpush1.bf16.msra.mxu1 %v3126_v14  ;;  %v241_v14 = vshll.u32 %v209_v3, 16  ;;  %v3182_v2 = vld [vmem:[#allocation7 + $0x44] ss:$8 sps:$4 sm:$0xff]   ;;  %v3180_v3 = vld [vmem:[#allocation7 + $0x40] ss:$8 sps:$4 sm:$0xff]  }
  0x68   :  { %521 = vmatprep.subr.bf16.mxu1 %v3127_v17  ;;  %v258_v17 = vld [vmem:[#allocation2 + $0x8] sm:$0x1]  ;;  %v245_v29 = vrot.slane %v240_v19, 4  ;;  %v3194_v6 = vld [vmem:[#allocation7 + $0x24] ss:$8 sps:$4 sm:$0xff]  }
  0x69   :  { %744 = vmatpush1.bf16.msra.mxu0 %v3185_v40  ;;  %v259_v22 = vsel %vm3697_vm2, %v228_v8, %v258_v17  ;;  %v243_v28 = vor.u32 %v241_v14, %v240_v19  ;;  %v3192_v7 = vld [vmem:[#allocation7 + $0x20] ss:$8 sps:$4 sm:$0xff]   ;;  %v3200_v8 = vld [vmem:[#allocation7 + $0x14] ss:$8 sps:$4 sm:$0xff]   ;;  %v3204_v11 = vld [vmem:[#allocation7 + $0x4] ss:$8 sps:$4 sm:$0xff]  }
  0x6a   :  { %745 = vmatprep.subr.bf16.mxu0 %v3189_v42  ;;  %260 = vst [vmem:[#allocation2 + $0x8] sm:$0x1] %v259_v22  ;;  %v265_v35 = vld [vmem:[#allocation2 + $0x14] sm:$0x1]  ;;  %v3162_v42 = vld [vmem:[#allocation7 + $0x70] ss:$8 sps:$4 sm:$0xff]  }
  0x6b   :  { %522 = vmatpush1.bf16.msra.mxu1 %v3129_v20  ;;  %v3150_v20 = vld [vmem:[#allocation9 + $0x28] ss:$16 sps:$4 sm:$0xff]   ;;  %v155_v17 = vld [vmem:[#allocation13 + $0xf0] sm:$0xff]  ;;  %v153_v19 = vld [vmem:[#allocation13 + $0xe0] sm:$0xff]  ;;  %vm1260_vm13 = vsmask.f32 4352 }
  0x6c   :  { %560 = vmatprep.subr.bf16.mxu1 %v3133_v21  ;;  %v255_v21 = vsel %vm3727_vm10, %v218_v5, %v254_v16  ;;  %v273_v40 = vld [vmem:[#allocation2 + $0x4] sm:$0xf]  ;;  %v3186_v5 = vld [vmem:[#allocation7 + $0x30] ss:$8 sps:$4 sm:$0xff]   ;;  %v149_v22 = vld [vmem:[#allocation13 + $0xc0] sm:$0xff] }
  0x6d   :  { %746 = vmatpush1.bf16.msra.mxu0 %v3191_v43  ;;  %256 = vst [vmem:[#allocation2] sm:$0xf] %v255_v21  ;;  %v3763_v16 = vld [vmem:[#allocation13 + $0xf8] sm:$0xff]  ;;  %v151_v21 = vld [vmem:[#allocation13 + $0xd0] sm:$0xff]  ;;  %vm1261_vm14 = vmand %vm1259_vm12, %vm1260_vm13  ;;  %vm1269_vm15 = vsmask.f32 7954 }
  0x6e   :  { %540 = vmatmul.mubr.bf16.vlgmr.msra.gmra.mxu1 %v3691_v23  ;;  %747 = vmatprep.subr.bf16.mxu0 %v3195_v56  ;;  %vm3826_vm0 = vmor %vm1261_vm14, %vm3697_vm2  ;;  %v3278_v32 = vld [vmem:[#allocation12 + $0x1c0] ss:$8 sps:$4 sm:$0xff]   ;;  %v3298_v38 = vld [vmem:[#allocation12 + $0x194] ss:$8 sps:$4 sm:$0xff]   ;;  %vm1361_vm6 = vsmask.f32 3328 }
  0x6f   :  { %561 = vmatpush1.bf16.msra.mxu1 %v3131_v26  ;;  %549 = vmatprep.mubr.bf16.mxu1 %v3588_v0  ;;  %v235_v26 = vor.u32 %v233_v12, %v232_v18  ;;  %vm3834_vm1 = vmand %vm1259_vm12, %vm1269_vm15  ;;  %vm1362_vm7 = vsmask.f32 7440 }
  0x70   :  { %562 = vmatprep.subr.bf16.mxu1 %v3136_v27  ;;  %v236_v27 = vrot.slane %v232_v18, 4  ;;  %v154_v18 = vld [vmem:[#allocation13 + $0xe8] sm:$0xff]  ;;  %vm3930_vm8 = vmor %vm1361_vm6, %vm1362_vm7 }
  0x71   :  { %748 = vmatpush1.bf16.msra.mxu0 %v3197_v58  ;;  %v277_v44 = vld [vmem:[#allocation2 + $0x8] sm:$0x1]  ;;  %v3176_v58 = vld [vmem:[#allocation7 + $0x54] ss:$8 sps:$4 sm:$0xff]  }
  0x72   :  { %v294_v47 = vrot.slane %v277_v44, 5  ;;  %937 = vmatprep.subr.mxu0 %v3763_v16  ;;  %v132_v44 = vld [vmem:[#allocation13 + $0x38] sm:$0xff] }
  0x73   :  { %563 = vmatpush1.bf16.msra.mxu1 %v3134_v30  ;;  %v261_v30 = vld [vmem:[#allocation2 + $0xc] sm:$0xf] }
  0x74   :  { %564 = vmatprep.subr.bf16.mxu1 %v3139_v31  ;;  %v244_v31 = vsel %vm3717_vm9, %v236_v27, %v243_v28  ;;  %v262_v34 = vsel %vm3727_vm10, %v235_v26, %v261_v30  ;;  %v276_v43 = vld [vmem:[#allocation2] sm:$0xe]  ;;  %v147_v26 = vld [vmem:[#allocation13 + $0xb0] sm:$0xff]  ;;  %v145_v28 = vld [vmem:[#allocation13 + $0xa0] sm:$0xff] }
  0x75   :  { %263 = vst [vmem:[#allocation2 + $0xc] sm:$0xf] %v262_v34  ;;  %264 = vst [vmem:[#allocation2 + $0x10] sm:$0xf] %v244_v31  ;;  %v2901_v45 = vrot.slane %v276_v43, 9  ;;  %v146_v27 = vld [vmem:[#allocation13 + $0xa8] sm:$0xff] }
  0x76   :  { %550 = vmatmul.mubr.bf16.gmra.mxu1 %v3701_v33  ;;  %v272_v12 = vld [vmem:[#allocation2] sm:$0xf]  ;;  %v143_v30 = vld [vmem:[#allocation13 + $0x90] sm:$0xff]  ;;  %v141_v34 = vld [vmem:[#allocation13 + $0x80] sm:$0xff] }
  0x77   :  { %565 = vmatpush1.bf16.msra.mxu1 %v3137_v36  ;;  %592 = vmatprep.mubr.bf16.mxu1 %v3588_v0  ;;  %v3156_v36 = vld [vmem:[#allocation9 + $0x8] ss:$16 sps:$4 sm:$0xff]   ;;  %v2955_v13 = vcombine.low %v272_v12, %v273_v40  ;;  %v133_v43 = vld [vmem:[#allocation13 + $0x40] sm:$0xff] }
  0x78   :  { %566 = vmatprep.subr.bf16.mxu1 %v3142_v37  ;;  %v266_v37 = vsel %vm3697_vm2, %v245_v29, %v265_v35  ;;  %v144_v29 = vld [vmem:[#allocation13 + $0x98] sm:$0xff]  ;;  %v142_v31 = vld [vmem:[#allocation13 + $0x88] sm:$0xff]  ;;  %vm1271_vm2 = vmor %vm3834_vm1, %vm3705_vm4 }
  0x79   :  { %267 = vst [vmem:[#allocation2 + $0x14] sm:$0x1] %v266_v37  ;;  %v140_v35 = vld [vmem:[#allocation13 + $0x78] sm:$0xff]  ;;  %v138_v37 = vld [vmem:[#allocation13 + $0x68] sm:$0xff]  ;;  %vm3875_vm4 = vmand %vm1338_vm3, %vm1269_vm15 }
  0x7a   :  { %v166_v12 = vld [vmem:[#allocation13 + $0x148] sm:$0xff]  ;;  %vm1340_vm5 = vmor %vm3875_vm4, %vm3727_vm10 }
  0x7b   :  { %567 = vmatpush1.bf16.msra.mxu1 %v3140_v39  ;;  %v3164_v39 = vld [vmem:[#allocation7 + $0x74] ss:$8 sps:$4 sm:$0xff]  }
  0x7c   :  { %568 = vmatprep.subr.bf16.mxu1 %v3145_v41  ;;  %v291_v41 = vrot.slane %v273_v40, 5  ;;  %v275_v51 = vld [vmem:[#allocation2 + $0x10] sm:$0xf]  ;;  %v278_v52 = vld [vmem:[#allocation2 + $0xc] sm:$0xe] }
  0x7d   :  { %v2902_v56 = vrot.slane %v278_v52, 9  ;;  %v298_v57 = vrot.slane %v275_v51, 5  ;;  %v274_v14 = vld [vmem:[#allocation2 + $0xc] sm:$0xf]  ;;  %v136_v40 = vld [vmem:[#allocation13 + $0x58] sm:$0xff] }
  0x7e   :  { %v293_v46 = vrot.slane %v291_v41, 4  ;;  %v292_v49 = vsel %vm3739_vm11, %v2901_v45, %v291_v41  ;;  %v2956_v15 = vcombine.low %v274_v14, %v275_v51  ;;  %v135_v41 = vld [vmem:[#allocation13 + $0x50] sm:$0xff]  ;;  %v125_v51 = vld [vmem:[#allocation13] sm:$0xff]  ;;  %v188_v52 = vld [vmem:[#allocation13 + $0x1f8] sm:$0xff] }
  0x7f   :  { %569 = vmatpush1.bf16.msra.mxu1 %v3143_v50  ;;  %v300_v61 = vrot.slane %v298_v57, 4  ;;  %v299_v63 = vsel %vm3739_vm11, %v2902_v56, %v298_v57  ;;  %v131_v45 = vld [vmem:[#allocation13 + $0x30] sm:$0xff]  ;;  %v184_v56 = vld [vmem:[#allocation13 + $0x1d8] sm:$0xff] }
  0x80   :  { %570 = vmatprep.subr.bf16.mxu1 %v3149_v55  ;;  %v295_v50 = vsel %vm3739_vm11, %v293_v46, %v294_v47  ;;  %v279_v55 = vld [vmem:[#allocation2 + $0x14] sm:$0x1]  ;;  %v130_v46 = vld [vmem:[#allocation13 + $0x28] sm:$0xff]  ;;  %v129_v47 = vld [vmem:[#allocation13 + $0x20] sm:$0xff] }
  0x81   :  { %v2937_v54 = vcombine.low %v292_v49, %v295_v50  ;;  %v301_v60 = vrot.slane %v279_v55, 5  ;;  %v127_v49 = vld [vmem:[#allocation13 + $0x10] sm:$0xff]  ;;  %v126_v50 = vld [vmem:[#allocation13 + $0x8] sm:$0xff]  ;;  %v185_v55 = vld [vmem:[#allocation13 + $0x1e0] sm:$0xff] }
  0x82   :  { %v183_v57 = vld [vmem:[#allocation13 + $0x1d0] sm:$0xff] }
  0x83   :  { %571 = vmatpush1.bf16.msra.mxu1 %v3147_v4  ;;  %766 = vmatmul.mubr.bf16.vlgmr.msra.gmra.mxu0 %v2937_v54  ;;  %v302_v1 = vsel %vm3739_vm11, %v300_v61, %v301_v60  ;;  %v3188_v4 = vld [vmem:[#allocation7 + $0x34] ss:$8 sps:$4 sm:$0xff]   ;;  %v186_v54 = vld [vmem:[#allocation13 + $0x1e8] sm:$0xff]  ;;  %v181_v60 = vld [vmem:[#allocation13 + $0x1c0] sm:$0xff] }
  0x84   :  { %572 = vmatprep.subr.bf16.mxu1 %v3152_v9  ;;  %775 = vmatprep.mubr.bf16.mxu0 %v3588_v0  ;;  %v3198_v9 = vld [vmem:[#allocation7 + $0x10] ss:$8 sps:$4 sm:$0xff]  }
  0x85   :  { %938 = vmatpush1.msra.mxu0 %v155_v17  ;;  %v180_v61 = vld [vmem:[#allocation13 + $0x1b8] sm:$0xff]  ;;  %v163_v14 = vld [vmem:[#allocation13 + $0x130] sm:$0xff] }
  0x86   :  { %939 = vmatprep.subr.mxu0 %v154_v18 }
  0x87   :  { %573 = vmatpush1.bf16.msra.mxu1 %v3150_v20  ;;  %v152_v20 = vld [vmem:[#allocation13 + $0xd8] sm:$0xff]  ;;  %940 = vmatpush1.msra.mxu0 %v153_v19 }
  0x88   :  { %574 = vmatprep.subr.bf16.mxu1 %v3158_v25  ;;  %941 = vmatprep.subr.mxu0 %v152_v20  ;;  %v148_v25 = vld [vmem:[#allocation13 + $0xb8] sm:$0xff] }
  0x89   :  { %942 = vmatpush1.msra.mxu0 %v151_v21 }
  0x8b   :  { %575 = vmatpush1.bf16.msra.mxu1 %v3156_v36  ;;  %v139_v36 = vld [vmem:[#allocation13 + $0x70] sm:$0xff] }
  0x8c   :  { %876 = vmatprep.subr.bf16.mxu1 %v3164_v39  ;;  %v137_v39 = vld [vmem:[#allocation13 + $0x60] sm:$0xff] }
  0x8e   :  { %593 = vmatmul.mubr.bf16.vlgmr.msra.gmra.mxu1 %v3691_v23  ;;  %v2938_v23 = vcombine.low %v299_v63, %v302_v1  ;;  %v178_v63 = vld [vmem:[#allocation13 + $0x1a8] sm:$0xff]  ;;  %v177_v1 = vld [vmem:[#allocation13 + $0x1a0] sm:$0xff] }
  0x8f   :  { %877 = vmatpush1.bf16.msra.mxu1 %v3162_v42  ;;  %602 = vmatprep.mubr.bf16.mxu1 %v3588_v0  ;;  %v134_v42 = vld [vmem:[#allocation13 + $0x48] sm:$0xff] }
  0x90   :  { %878 = vmatprep.subr.bf16.mxu1 %v3170_v48  ;;  %776 = vmatmul.mubr.bf16.gmra.mxu0 %v2938_v23  ;;  %v128_v48 = vld [vmem:[#allocation13 + $0x18] sm:$0xff]  ;;  %v175_v23 = vld [vmem:[#allocation13 + $0x190] sm:$0xff] }
  0x93   :  { %879 = vmatpush1.bf16.msra.mxu1 %v3168_v53  ;;  %v187_v53 = vld [vmem:[#allocation13 + $0x1f0] sm:$0xff] }
  0x94   :  { %880 = vmatprep.subr.bf16.mxu1 %v3176_v58  ;;  %v182_v58 = vld [vmem:[#allocation13 + $0x1c8] sm:$0xff] }
  0x96   :  { %603 = vmatmul.mubr.bf16.gmra.mxu1 %v3701_v33  ;;  %v3202_v33 = vld [vmem:[#allocation7] ss:$8 sps:$4 sm:$0xff]  }
  0x97   :  { %881 = vmatpush1.bf16.msra.mxu1 %v3174_v62  ;;  %908 = vmatprep.mubr.bf16.mxu1 %v3588_v0  ;;  %v179_v62 = vld [vmem:[#allocation13 + $0x1b0] sm:$0xff] }
  0x98   :  { %882 = vmatprep.subr.bf16.mxu1 %v3182_v2  ;;  %v176_v2 = vld [vmem:[#allocation13 + $0x198] sm:$0xff] }
  0x9b   :  { %883 = vmatpush1.bf16.msra.mxu1 %v3180_v3  ;;  %v174_v3 = vld [vmem:[#allocation13 + $0x188] sm:$0xff] }
  0x9c   :  { %884 = vmatprep.subr.bf16.mxu1 %v3188_v4  ;;  %v173_v4 = vld [vmem:[#allocation13 + $0x180] sm:$0xff] }
  0x9f   :  { %885 = vmatpush1.bf16.msra.mxu1 %v3186_v5  ;;  %v172_v5 = vld [vmem:[#allocation13 + $0x178] sm:$0xff] }
  0xa0   :  { %886 = vmatprep.subr.bf16.mxu1 %v3194_v6  ;;  %v171_v6 = vld [vmem:[#allocation13 + $0x170] sm:$0xff] }
  0xa3   :  { %887 = vmatpush1.bf16.msra.mxu1 %v3192_v7  ;;  %v170_v7 = vld [vmem:[#allocation13 + $0x168] sm:$0xff] }
  0xa4   :  { %888 = vmatprep.subr.bf16.mxu1 %v3200_v8  ;;  %v169_v8 = vld [vmem:[#allocation13 + $0x160] sm:$0xff] }
  0xa7   :  { %889 = vmatpush1.bf16.msra.mxu1 %v3198_v9  ;;  %v168_v9 = vld [vmem:[#allocation13 + $0x158] sm:$0xff] }
  0xa8   :  { %890 = vmatprep.subr.bf16.mxu1 %v3204_v11  ;;  %v167_v11 = vld [vmem:[#allocation13 + $0x150] sm:$0xff] }
  0xab   :  { %891 = vmatpush1.bf16.msra.mxu1 %v3202_v33  ;;  %v165_v33 = vld [vmem:[#allocation13 + $0x140] sm:$0xff] }
  0xac   :  { %1052 = vmatprep.subr.mxu1 %v3763_v16 }
  0xae   :  { %909 = vmatmul.mubr.bf16.vlgmr.msra.gmra.mxu1 %v2955_v13  ;;  %v164_v13 = vld [vmem:[#allocation13 + $0x138] sm:$0xff] }
  0xaf   :  { %918 = vmatprep.mubr.bf16.mxu1 %v3588_v0  ;;  %1053 = vmatpush1.msra.mxu1 %v155_v17  ;;  %v150_v0 = vld [vmem:[#allocation13 + $0xc8] sm:$0xff]  ;;  %v161_v17 = vld [vmem:[#allocation13 + $0x120] sm:$0xff] }
  0xb0   :  { %1054 = vmatprep.subr.mxu1 %v154_v18  ;;  %943 = vmatprep.subr.mxu0 %v150_v0  ;;  %v160_v18 = vld [vmem:[#allocation13 + $0x118] sm:$0xff] }
  0xb1   :  { %1055 = vmatpush1.msra.mxu1 %v153_v19  ;;  %944 = vmatpush1.msra.mxu0 %v149_v22  ;;  %v159_v19 = vld [vmem:[#allocation13 + $0x110] sm:$0xff] }
  0xb2   :  { %1056 = vmatprep.subr.mxu1 %v152_v20  ;;  %945 = vmatprep.subr.mxu0 %v148_v25  ;;  %v158_v20 = vld [vmem:[#allocation13 + $0x108] sm:$0xff] }
  0xb3   :  { %1057 = vmatpush1.msra.mxu1 %v151_v21  ;;  %946 = vmatpush1.msra.mxu0 %v147_v26  ;;  %v157_v21 = vld [vmem:[#allocation13 + $0x100] sm:$0xff] }
  0xb4   :  { %1058 = vmatprep.subr.mxu1 %v150_v0  ;;  %947 = vmatprep.subr.mxu0 %v146_v27 }
  0xb5   :  { %1059 = vmatpush1.msra.mxu1 %v149_v22  ;;  %948 = vmatpush1.msra.mxu0 %v145_v28 }
  0xb6   :  { %919 = vmatmul.mubr.bf16.gmra.mxu1 %v2956_v15  ;;  %1060 = vmatprep.subr.mxu1 %v148_v25  ;;  %v162_v15 = vld [vmem:[#allocation13 + $0x128] sm:$0xff] }
  0xb7   :  { %1061 = vmatpush1.msra.mxu1 %v147_v26  ;;  %949 = vmatprep.subr.mxu0 %v144_v29 }
  0xb8   :  { %1062 = vmatprep.subr.mxu1 %v146_v27  ;;  %950 = vmatpush1.msra.mxu0 %v143_v30 }
  0xb9   :  { %1063 = vmatpush1.msra.mxu1 %v145_v28  ;;  %951 = vmatprep.subr.mxu0 %v142_v31 }
  0xba   :  { %1064 = vmatprep.subr.mxu1 %v144_v29  ;;  %952 = vmatpush1.msra.mxu0 %v141_v34 }
  0xbb   :  { %1065 = vmatpush1.msra.mxu1 %v143_v30  ;;  %953 = vmatprep.subr.mxu0 %v140_v35 }
  0xbc   :  { %1066 = vmatprep.subr.mxu1 %v142_v31  ;;  %954 = vmatpush1.msra.mxu0 %v139_v36 }
  0xbd   :  { %1067 = vmatpush1.msra.mxu1 %v141_v34  ;;  %955 = vmatprep.subr.mxu0 %v138_v37 }
  0xbe   :  { %1068 = vmatprep.subr.mxu1 %v140_v35  ;;  %956 = vmatpush1.msra.mxu0 %v137_v39 }
  0xbf   :  { %1069 = vmatpush1.msra.mxu1 %v139_v36  ;;  %957 = vmatprep.subr.mxu0 %v136_v40 }
  0xc0   :  { %1070 = vmatprep.subr.mxu1 %v138_v37  ;;  %958 = vmatpush1.msra.mxu0 %v135_v41 }
  0xc1   :  { %1071 = vmatpush1.msra.mxu1 %v137_v39  ;;  %959 = vmatprep.subr.mxu0 %v134_v42 }
  0xc2   :  { %1072 = vmatprep.subr.mxu1 %v136_v40  ;;  %960 = vmatpush1.msra.mxu0 %v133_v43 }
  0xc3   :  { %1073 = vmatpush1.msra.mxu1 %v135_v41  ;;  %961 = vmatprep.subr.mxu0 %v132_v44 }
  0xc4   :  { %1074 = vmatprep.subr.mxu1 %v134_v42  ;;  %962 = vmatpush1.msra.mxu0 %v131_v45 }
  0xc5   :  { %1075 = vmatpush1.msra.mxu1 %v133_v43  ;;  %963 = vmatprep.subr.mxu0 %v130_v46 }
  0xc6   :  { %1076 = vmatprep.subr.mxu1 %v132_v44  ;;  %964 = vmatpush1.msra.mxu0 %v129_v47 }
  0xc7   :  { %1077 = vmatpush1.msra.mxu1 %v131_v45  ;;  %965 = vmatprep.subr.mxu0 %v128_v48 }
  0xc8   :  { %1078 = vmatprep.subr.mxu1 %v130_v46  ;;  %966 = vmatpush1.msra.mxu0 %v127_v49 }
  0xc9   :  { %1079 = vmatpush1.msra.mxu1 %v129_v47  ;;  %967 = vmatprep.subr.mxu0 %v126_v50 }
  0xca   :  { %1080 = vmatprep.subr.mxu1 %v128_v48  ;;  %968 = vmatpush1.msra.mxu0 %v125_v51 }
  0xcb   :  { %1081 = vmatpush1.msra.mxu1 %v127_v49  ;;  %969 = vmatprep.subr.mxu0 %v188_v52 }
  0xcc   :  { %1082 = vmatprep.subr.mxu1 %v126_v50  ;;  %970 = vmatpush2.msra.mxu0 %v187_v53 }
  0xcd   :  { %1083 = vmatpush1.msra.mxu1 %v125_v51  ;;  %971 = vmatprep.subr.mxu0 %v186_v54 }
  0xce   :  { %1084 = vmatprep.subr.mxu1 %v188_v52  ;;  %972 = vmatpush2.msra.mxu0 %v185_v55 }
  0xcf   :  { %1085 = vmatpush2.msra.mxu1 %v187_v53  ;;  %973 = vmatprep.subr.mxu0 %v184_v56 }
  0xd0   :  { %1086 = vmatprep.subr.mxu1 %v186_v54  ;;  %974 = vmatpush2.msra.mxu0 %v183_v57 }
  0xd1   :  { %1087 = vmatpush2.msra.mxu1 %v185_v55  ;;  %975 = vmatprep.subr.mxu0 %v182_v58 }
  0xd2   :  { %1088 = vmatprep.subr.mxu1 %v184_v56  ;;  %976 = vmatpush2.msra.mxu0 %v181_v60 }
  0xd3   :  { %1089 = vmatpush2.msra.mxu1 %v183_v57  ;;  %977 = vmatprep.subr.mxu0 %v180_v61 }
  0xd4   :  { %1090 = vmatprep.subr.mxu1 %v182_v58  ;;  %978 = vmatpush2.msra.mxu0 %v179_v62 }
  0xd5   :  { %1091 = vmatpush2.msra.mxu1 %v181_v60  ;;  %979 = vmatprep.subr.mxu0 %v178_v63 }
  0xd6   :  { %1092 = vmatprep.subr.mxu1 %v180_v61  ;;  %980 = vmatpush2.msra.mxu0 %v177_v1 }
  0xd7   :  { %1093 = vmatpush2.msra.mxu1 %v179_v62  ;;  %981 = vmatprep.subr.mxu0 %v176_v2 }
  0xd8   :  { %1094 = vmatprep.subr.mxu1 %v178_v63  ;;  %982 = vmatpush2.msra.mxu0 %v175_v23 }
  0xd9   :  { %1095 = vmatpush2.msra.mxu1 %v177_v1  ;;  %983 = vmatprep.subr.mxu0 %v174_v3 }
  0xda   :  { %1096 = vmatprep.subr.mxu1 %v176_v2  ;;  %984 = vmatpush2.msra.mxu0 %v173_v4 }
  0xdb   :  { %1097 = vmatpush2.msra.mxu1 %v175_v23  ;;  %985 = vmatprep.subr.mxu0 %v172_v5 }
  0xdc   :  { %1098 = vmatprep.subr.mxu1 %v174_v3  ;;  %986 = vmatpush2.msra.mxu0 %v171_v6 }
  0xdd   :  { %1099 = vmatpush2.msra.mxu1 %v173_v4  ;;  %987 = vmatprep.subr.mxu0 %v170_v7 }
  0xde   :  { %1100 = vmatprep.subr.mxu1 %v172_v5  ;;  %988 = vmatpush2.msra.mxu0 %v169_v8 }
  0xdf   :  { %1101 = vmatpush2.msra.mxu1 %v171_v6  ;;  %989 = vmatprep.subr.mxu0 %v168_v9 }
  0xe0   :  { %1102 = vmatprep.subr.mxu1 %v170_v7  ;;  %990 = vmatpush2.msra.mxu0 %v167_v11 }
  0xe1   :  { %1103 = vmatpush2.msra.mxu1 %v169_v8  ;;  %991 = vmatprep.subr.mxu0 %v166_v12 }
  0xe2   :  { %1104 = vmatprep.subr.mxu1 %v168_v9  ;;  %992 = vmatpush2.msra.mxu0 %v165_v33 }
  0xe3   :  { %1105 = vmatpush2.msra.mxu1 %v167_v11  ;;  %993 = vmatprep.subr.mxu0 %v164_v13 }
  0xe4   :  { %1106 = vmatprep.subr.mxu1 %v166_v12  ;;  %994 = vmatpush2.msra.mxu0 %v163_v14 }
  0xe5   :  { %1107 = vmatpush2.msra.mxu1 %v165_v33  ;;  %995 = vmatprep.subr.mxu0 %v162_v15 }
  0xe6   :  { %1108 = vmatprep.subr.mxu1 %v164_v13  ;;  %996 = vmatpush2.msra.mxu0 %v161_v17 }
  0xe7   :  { %1109 = vmatpush2.msra.mxu1 %v163_v14  ;;  %997 = vmatprep.subr.mxu0 %v160_v18 }
  0xe8   :  { %1110 = vmatprep.subr.mxu1 %v162_v15  ;;  %998 = vmatpush2.msra.mxu0 %v159_v19 }
  0xe9   :  { %1111 = vmatpush2.msra.mxu1 %v161_v17  ;;  %999 = vmatprep.subr.mxu0 %v158_v20 }
  0xea   :  { %1112 = vmatprep.subr.mxu1 %v160_v18  ;;  %1000 = vmatpush2.msra.mxu0 %v157_v21 }
  0xeb   :  { %1113 = vmatpush2.msra.mxu1 %v159_v19 }
  0xec   :  { %1114 = vmatprep.subr.mxu1 %v158_v20  ;;  %v3208_v20 = vld [vmem:[#allocation12 + $0x74] ss:$8 sps:$4 sm:$0xff]  }
  0xed   :  { %1115 = vmatpush2.msra.mxu1 %v157_v21  ;;  %v3206_v21 = vld [vmem:[#allocation12 + $0x70] ss:$8 sps:$4 sm:$0xff]  }
  0xee   :  { %1906 = vmatprep.subr.bf16.mxu1 %v3208_v20  ;;  %v3268_v20 = vld [vmem:[#allocation12 + $0x1e4] ss:$8 sps:$4 sm:$0xff]  }
 0x12e   :  { %v541_v0 = vpop.f32.mrf.mxu1 }
 0x130   :  { %v543_v22 = vpop.f32.mrf.mxu1 }
 0x132   :  { %v545_v25 = vpop.f32.mrf.mxu1 }
 0x134   :  { %v547_v26 = vpop.f32.mrf.mxu1 }
 0x136   :  { %v551_v27 = vpop.f32.mrf.mxu1 }
 0x138   :  { %v553_v28 = vpop.f32.mrf.mxu1 }
 0x13a   :  { %v555_v29 = vpop.f32.mrf.mxu1 }
 0x13c   :  { %v557_v30 = vpop.f32.mrf.mxu1 }
 0x143   :  { %v767_v39 = vpop.f32.mrf.mxu0 }
 0x145   :  { %v769_v41 = vpop.f32.mrf.mxu0 }
 0x147   :  { %v771_v43 = vpop.f32.mrf.mxu0 }
 0x149   :  { %v773_v45 = vpop.f32.mrf.mxu0 }
 0x14e   :  { %v3767_v31 = vpop.f32.mrf.mxu1 }
 0x14f   :  { %4541 = vst [vmem:[#allocation21_spill] sm:$0xff] %v3767_v31  ;;  %v4102_v31 = vld [vmem:[#allocation13 + $0x148] sm:$0xff] }
 0x150   :  { %v3769_v34 = vpop.f32.mrf.mxu1  ;;  %v777_v48 = vpop.f32.mrf.mxu0  ;;  %4573 = vst [vmem:[#allocation45_spill] sm:$0xff] %v4102_v31 }
 0x151   :  { %4542 = vst [vmem:[#allocation22_spill] sm:$0xff] %v3769_v34  ;;  %v4105_v34 = vld [vmem:[#allocation13 + $0x140] sm:$0xff] }
 0x152   :  { %v3771_v35 = vpop.f32.mrf.mxu1  ;;  %v779_v55 = vpop.f32.mrf.mxu0  ;;  %4574 = vst [vmem:[#allocation46_spill] sm:$0xff] %v4105_v34 }
 0x153   :  { %4543 = vst [vmem:[#allocation23_spill] sm:$0xff] %v3771_v35  ;;  %v4096_v35 = vld [vmem:[#allocation13 + $0x158] sm:$0xff] }
 0x154   :  { %v3773_v36 = vpop.f32.mrf.mxu1  ;;  %v781_v2 = vpop.f32.mrf.mxu0  ;;  %4571 = vst [vmem:[#allocation43_spill] sm:$0xff] %v4096_v35 }
 0x155   :  { %4544 = vst [vmem:[#allocation24_spill] sm:$0xff] %v3773_v36  ;;  %v4099_v36 = vld [vmem:[#allocation13 + $0x150] sm:$0xff] }
 0x156   :  { %v3775_v37 = vpop.f32.mrf.mxu1  ;;  %v783_v11 = vpop.f32.mrf.mxu0  ;;  %4572 = vst [vmem:[#allocation44_spill] sm:$0xff] %v4099_v36 }
 0x157   :  { %4545 = vst [vmem:[#allocation25_spill] sm:$0xff] %v3775_v37  ;;  %v4090_v37 = vld [vmem:[#allocation13 + $0x168] sm:$0xff] }
 0x158   :  { %v3777_v40 = vpop.f32.mrf.mxu1  ;;  %4569 = vst [vmem:[#allocation41_spill] sm:$0xff] %v4090_v37 }
 0x159   :  { %4546 = vst [vmem:[#allocation26_spill] sm:$0xff] %v3777_v40  ;;  %v4093_v40 = vld [vmem:[#allocation13 + $0x160] sm:$0xff] }
 0x15a   :  { %v3779_v42 = vpop.f32.mrf.mxu1  ;;  %4570 = vst [vmem:[#allocation42_spill] sm:$0xff] %v4093_v40 }
 0x15b   :  { %4547 = vst [vmem:[#allocation27_spill] sm:$0xff] %v3779_v42  ;;  %v4084_v42 = vld [vmem:[#allocation13 + $0x178] sm:$0xff] }
 0x15c   :  { %v3781_v44 = vpop.f32.mrf.mxu1  ;;  %4567 = vst [vmem:[#allocation39_spill] sm:$0xff] %v4084_v42 }
 0x15d   :  { %4548 = vst [vmem:[#allocation28_spill] sm:$0xff] %v3781_v44  ;;  %v4087_v44 = vld [vmem:[#allocation13 + $0x170] sm:$0xff] }
 0x15e   :  { %4568 = vst [vmem:[#allocation40_spill] sm:$0xff] %v4087_v44 }
 0x16e   :  { %v910_v46 = vpop.f32.mrf.mxu1 }
 0x16f   :  { %v911_v47 = vadd.f32 %v910_v46, %v767_v39  ;;  %v3220_v39 = vld [vmem:[#allocation12 + $0x164] ss:$8 sps:$4 sm:$0xff]   ;;  %v3226_v46 = vld [vmem:[#allocation12 + $0x154] ss:$8 sps:$4 sm:$0xff]  }
 0x170   :  { %v912_v49 = vpop.f32.mrf.mxu1 }
 0x171   :  { %v913_v50 = vadd.f32 %v912_v49, %v769_v41  ;;  %v3783_v51 = vadd.f32 %v911_v47, %v541_v0  ;;  %v3211_v0 = vld [vmem:[#allocation12 + $0x64] ss:$8 sps:$4 sm:$0xff]   ;;  %v3229_v41 = vld [vmem:[#allocation12 + $0x34] ss:$8 sps:$4 sm:$0xff]   ;;  %v3233_v49 = vld [vmem:[#allocation12 + $0x20] ss:$8 sps:$4 sm:$0xff]  }
 0x172   :  { %v914_v52 = vpop.f32.mrf.mxu1  ;;  %v3235_v47 = vld [vmem:[#allocation12 + $0x24] ss:$8 sps:$4 sm:$0xff]  }
 0x173   :  { %v3785_v53 = vadd.f32 %v913_v50, %v543_v22  ;;  %v915_v54 = vadd.f32 %v914_v52, %v771_v43  ;;  %v1044_v60 = vmul.f32 %v3783_v51, %v3783_v51  ;;  %v3209_v22 = vld [vmem:[#allocation12 + $0x60] ss:$8 sps:$4 sm:$0xff]   ;;  %v3232_v50 = vld [vmem:[#allocation12 + $0x144] ss:$8 sps:$4 sm:$0xff]   ;;  %v3241_v52 = vld [vmem:[#allocation12 + $0x14] ss:$8 sps:$4 sm:$0xff]  }
 0x174   :  { %v916_v56 = vpop.f32.mrf.mxu1  ;;  %v3218_v43 = vld [vmem:[#allocation12 + $0x160] ss:$8 sps:$4 sm:$0xff]  }
 0x175   :  { %v917_v57 = vadd.f32 %v916_v56, %v773_v45  ;;  %1001 = vmatprep.mubr.f32.mxu0 %v3785_v53  ;;  %v1045_v58 = vmul.f32 %v3785_v53, %v3785_v53  ;;  %v3792_v61 = vadd.f32 %v915_v54, %v545_v25  ;;  %v3217_v25 = vld [vmem:[#allocation12 + $0x54] ss:$8 sps:$4 sm:$0xff]   ;;  %v3227_v45 = vld [vmem:[#allocation12 + $0x30] ss:$8 sps:$4 sm:$0xff]   ;;  %v3230_v54 = vld [vmem:[#allocation12 + $0x140] ss:$8 sps:$4 sm:$0xff]  }
 0x176   :  { %v920_v62 = vpop.f32.mrf.mxu1  ;;  %1002 = vmatmul.mubr.f32.vlgmr.msra.gmra.mxu0 %v3783_v51  ;;  %v3238_v56 = vld [vmem:[#allocation12 + $0x134] ss:$8 sps:$4 sm:$0xff]  }
 0x177   :  { %v3795_v63 = vadd.f32 %v917_v57, %v547_v26  ;;  %v921_v1 = vadd.f32 %v920_v62, %v777_v48  ;;  %1116 = vmatprep.mubr.f32.mxu1 %v1045_v58  ;;  %v1046_v7 = vmul.f32 %v3792_v61, %v3792_v61  ;;  %v3215_v26 = vld [vmem:[#allocation12 + $0x50] ss:$8 sps:$4 sm:$0xff]   ;;  %v3247_v57 = vld [vmem:[#allocation12 + $0x4] ss:$8 sps:$4 sm:$0xff]  }
 0x178   :  { %v922_v23 = vpop.f32.mrf.mxu1  ;;  %1117 = vmatmul.mubr.f32.vlgmr.msra.gmra.mxu1 %v1044_v60  ;;  %v3224_v48 = vld [vmem:[#allocation12 + $0x150] ss:$8 sps:$4 sm:$0xff]   ;;  %v3245_v60 = vld [vmem:[#allocation12] ss:$8 sps:$4 sm:$0xff]   ;;  %v3244_v62 = vld [vmem:[#allocation12 + $0x124] ss:$8 sps:$4 sm:$0xff]  }
 0x179   :  { %v923_v3 = vadd.f32 %v922_v23, %v779_v55  ;;  %1007 = vmatprep.mubr.f32.mxu0 %v3795_v63  ;;  %v1047_v4 = vmul.f32 %v3795_v63, %v3795_v63  ;;  %v3800_v5 = vadd.f32 %v921_v1, %v551_v27  ;;  %1907 = vmatpush1.bf16.msra.mxu1 %v3206_v21  ;;  %v3214_v27 = vld [vmem:[#allocation12 + $0x174] ss:$8 sps:$4 sm:$0xff]   ;;  %v3239_v55 = vld [vmem:[#allocation12 + $0x10] ss:$8 sps:$4 sm:$0xff]   ;;  %v3242_v1 = vld [vmem:[#allocation12 + $0x120] ss:$8 sps:$4 sm:$0xff]  }
 0x17a   :  { %v924_v6 = vpop.f32.mrf.mxu1  ;;  %1008 = vmatmul.mubr.f32.gmra.mxu0 %v3792_v61  ;;  %1908 = vmatprep.subr.bf16.mxu1 %v3211_v0  ;;  %v3236_v58 = vld [vmem:[#allocation12 + $0x130] ss:$8 sps:$4 sm:$0xff]   ;;  %v3253_v23 = vld [vmem:[#allocation12 + $0xf4] ss:$8 sps:$4 sm:$0xff]   ;;  %v3266_v0 = vld [vmem:[#allocation12 + $0x1e0] ss:$8 sps:$4 sm:$0xff]  }
 0x17b   :  { %v3805_v8 = vadd.f32 %v923_v3, %v553_v28  ;;  %v925_v9 = vadd.f32 %v924_v6, %v781_v2  ;;  %1122 = vmatprep.mubr.f32.mxu1 %v1047_v4  ;;  %v1048_v15 = vmul.f32 %v3800_v5, %v3800_v5  ;;  %v3223_v28 = vld [vmem:[#allocation12 + $0x44] ss:$8 sps:$4 sm:$0xff]   ;;  %1675 = vmatprep.subr.bf16.mxu0 %v3214_v27  ;;  %v3251_v2 = vld [vmem:[#allocation12 + $0xf0] ss:$8 sps:$4 sm:$0xff]   ;;  %v3250_v3 = vld [vmem:[#allocation12 + $0x114] ss:$8 sps:$4 sm:$0xff]  }
 0x17c   :  { %v926_v12 = vpop.f32.mrf.mxu1  ;;  %1123 = vmatmul.mubr.f32.gmra.mxu1 %v1046_v7  ;;  %v3259_v4 = vld [vmem:[#allocation12 + $0xe4] ss:$8 sps:$4 sm:$0xff]   ;;  %v3248_v6 = vld [vmem:[#allocation12 + $0x110] ss:$8 sps:$4 sm:$0xff]   ;;  %v3257_v7 = vld [vmem:[#allocation12 + $0xe0] ss:$8 sps:$4 sm:$0xff]  }
 0x17d   :  { %v927_v33 = vadd.f32 %v926_v12, %v783_v11  ;;  %1013 = vmatprep.mubr.f32.mxu0 %v3805_v8  ;;  %v1049_v13 = vmul.f32 %v3805_v8, %v3805_v8  ;;  %v3810_v14 = vadd.f32 %v925_v9, %v555_v29  ;;  %1909 = vmatpush1.bf16.msra.mxu1 %v3209_v22  ;;  %v3212_v29 = vld [vmem:[#allocation12 + $0x170] ss:$8 sps:$4 sm:$0xff]   ;;  %v3256_v9 = vld [vmem:[#allocation12 + $0x104] ss:$8 sps:$4 sm:$0xff]   ;;  %v3265_v11 = vld [vmem:[#allocation12 + $0xd4] ss:$8 sps:$4 sm:$0xff]  }
 0x17e   :  { %1014 = vmatmul.mubr.f32.gmra.mxu0 %v3800_v5  ;;  %1910 = vmatprep.subr.bf16.mxu1 %v3217_v25  ;;  %v3254_v12 = vld [vmem:[#allocation12 + $0x100] ss:$8 sps:$4 sm:$0xff]   ;;  %v3277_v21 = vld [vmem:[#allocation12 + $0xb4] ss:$8 sps:$4 sm:$0xff]   ;;  %v3275_v22 = vld [vmem:[#allocation12 + $0xb0] ss:$8 sps:$4 sm:$0xff]  }
 0x17f   :  { %v3815_v17 = vadd.f32 %v927_v33, %v557_v30  ;;  %1128 = vmatprep.mubr.f32.mxu1 %v1049_v13  ;;  %v1050_v19 = vmul.f32 %v3810_v14, %v3810_v14  ;;  %v3221_v30 = vld [vmem:[#allocation12 + $0x40] ss:$8 sps:$4 sm:$0xff]   ;;  %1676 = vmatpush1.bf16.msra.mxu0 %v3212_v29  ;;  %v3263_v33 = vld [vmem:[#allocation12 + $0xd0] ss:$8 sps:$4 sm:$0xff]   ;;  %v3262_v13 = vld [vmem:[#allocation12 + $0x1f4] ss:$8 sps:$4 sm:$0xff]  }
 0x180   :  { %1129 = vmatmul.mubr.f32.gmra.mxu1 %v1048_v15  ;;  %1677 = vmatprep.subr.bf16.mxu0 %v3220_v39  ;;  %v3271_v15 = vld [vmem:[#allocation12 + $0xc4] ss:$8 sps:$4 sm:$0xff]   ;;  %v3274_v25 = vld [vmem:[#allocation12 + $0x1d4] ss:$8 sps:$4 sm:$0xff]   ;;  %v3281_v29 = vld [vmem:[#allocation12 + $0xa0] ss:$8 sps:$4 sm:$0xff]  }
 0x181   :  { %1019 = vmatprep.mubr.f32.mxu0 %v3815_v17  ;;  %v1051_v18 = vmul.f32 %v3815_v17, %v3815_v17  ;;  %1911 = vmatpush1.bf16.msra.mxu1 %v3215_v26  ;;  %v3283_v26 = vld [vmem:[#allocation12 + $0xa4] ss:$8 sps:$4 sm:$0xff]  }
 0x182   :  { %1020 = vmatmul.mubr.f32.gmra.mxu0 %v3810_v14  ;;  %1912 = vmatprep.subr.bf16.mxu1 %v3223_v28  ;;  %v3272_v28 = vld [vmem:[#allocation12 + $0x1d0] ss:$8 sps:$4 sm:$0xff]  }
 0x183   :  { %1134 = vmatprep.mubr.f32.mxu1 %v1051_v18  ;;  %1678 = vmatpush1.bf16.msra.mxu0 %v3218_v43  ;;  %v3260_v18 = vld [vmem:[#allocation12 + $0x1f0] ss:$8 sps:$4 sm:$0xff]  }
 0x184   :  { %1135 = vmatmul.mubr.f32.gmra.mxu1 %v1050_v19  ;;  %1679 = vmatprep.subr.bf16.mxu0 %v3226_v46  ;;  %v3269_v19 = vld [vmem:[#allocation12 + $0xc0] ss:$8 sps:$4 sm:$0xff]   ;;  %v1266_v43 = vld [vmem:[#allocation3 + $0x10] sm:$0x11]  ;;  %v1272_v46 = vld [vmem:[#allocation3 + $0x18] sm:$0x11] }
 0x185   :  { %1913 = vmatpush1.bf16.msra.mxu1 %v3221_v30  ;;  %v1263_v30 = vld [vmem:[#allocation3 + $0x20] sm:$0x11] }
 0x186   :  { %1914 = vmatprep.subr.bf16.mxu1 %v3229_v41  ;;  %v1264_v39 = vsel %vm3826_vm0, 0, %v1263_v30 }
 0x187   :  { %1680 = vmatpush1.bf16.msra.mxu0 %v3224_v48  ;;  %1265 = vst [vmem:[#allocation3 + $0x20] sm:$0x11] %v1264_v39  ;;  %v3287_v48 = vld [vmem:[#allocation12 + $0x90] ss:$8 sps:$4 sm:$0xff]  }
 0x188   :  { %1681 = vmatprep.subr.bf16.mxu0 %v3232_v50  ;;  %v3295_v50 = vld [vmem:[#allocation12 + $0x84] ss:$8 sps:$4 sm:$0xff]  }
 0x189   :  { %1915 = vmatpush1.bf16.msra.mxu1 %v3227_v45  ;;  %v3280_v45 = vld [vmem:[#allocation12 + $0x1c4] ss:$8 sps:$4 sm:$0xff]  }
 0x18a   :  { %1916 = vmatprep.subr.bf16.mxu1 %v3235_v47  ;;  %v3286_v47 = vld [vmem:[#allocation12 + $0x1b4] ss:$8 sps:$4 sm:$0xff]  }
 0x18b   :  { %1682 = vmatpush1.bf16.msra.mxu0 %v3230_v54  ;;  %v1275_v54 = vld [vmem:[#allocation3] sm:$0x11] }
 0x18c   :  { %1683 = vmatprep.subr.bf16.mxu0 %v3238_v56  ;;  %v1273_v56 = vsel %vm1271_vm2, 0, %v1272_v46 }
 0x18d   :  { %1917 = vmatpush1.bf16.msra.mxu1 %v3233_v49  ;;  %v3289_v49 = vld [vmem:[#allocation12 + $0x94] ss:$8 sps:$4 sm:$0xff]   ;;  %1274 = vst [vmem:[#allocation3 + $0x18] sm:$0x11] %v1273_v56 }
 0x18e   :  { %1918 = vmatprep.subr.bf16.mxu1 %v3241_v52  ;;  %v1267_v52 = vsel %vm3826_vm0, 0, %v1266_v43 }
 0x18f   :  { %1684 = vmatpush1.bf16.msra.mxu0 %v3236_v58  ;;  %1268 = vst [vmem:[#allocation3 + $0x10] sm:$0x11] %v1267_v52  ;;  %v3292_v58 = vld [vmem:[#allocation12 + $0x1a4] ss:$8 sps:$4 sm:$0xff]  }
 0x190   :  { %1685 = vmatprep.subr.bf16.mxu0 %v3244_v62  ;;  %v3290_v62 = vld [vmem:[#allocation12 + $0x1a0] ss:$8 sps:$4 sm:$0xff]  }
 0x191   :  { %1919 = vmatpush1.bf16.msra.mxu1 %v3239_v55  ;;  %v3284_v55 = vld [vmem:[#allocation12 + $0x1b0] ss:$8 sps:$4 sm:$0xff]  }
 0x192   :  { %1920 = vmatprep.subr.bf16.mxu1 %v3247_v57  ;;  %v1276_v57 = vsel %vm1271_vm2, 0, %v1275_v54 }
 0x193   :  { %1686 = vmatpush1.bf16.msra.mxu0 %v3242_v1  ;;  %1277 = vst [vmem:[#allocation3] sm:$0x11] %v1276_v57  ;;  %v3296_v1 = vld [vmem:[#allocation12 + $0x190] ss:$8 sps:$4 sm:$0xff]  }
 0x194   :  { %1687 = vmatprep.subr.bf16.mxu0 %v3250_v3  ;;  %v3304_v3 = vld [vmem:[#allocation12 + $0x274] ss:$8 sps:$4 sm:$0xff]  }
 0x195   :  { %1921 = vmatpush1.bf16.msra.mxu1 %v3245_v60  ;;  %v3293_v60 = vld [vmem:[#allocation12 + $0x80] ss:$8 sps:$4 sm:$0xff]  }
 0x196   :  { %1922 = vmatprep.subr.bf16.mxu1 %v3253_v23  ;;  %v3299_v23 = vld [vmem:[#allocation12 + $0x180] ss:$8 sps:$4 sm:$0xff]  }
 0x197   :  { %1688 = vmatpush1.bf16.msra.mxu0 %v3248_v6 }
 0x198   :  { %1689 = vmatprep.subr.bf16.mxu0 %v3256_v9 }
 0x199   :  { %1923 = vmatpush2.bf16.msra.mxu1 %v3251_v2  ;;  %v3301_v2 = vld [vmem:[#allocation12 + $0x184] ss:$8 sps:$4 sm:$0xff]  }
 0x19a   :  { %1924 = vmatprep.subr.bf16.mxu1 %v3259_v4 }
 0x19b   :  { %1690 = vmatpush1.bf16.msra.mxu0 %v3254_v12 }
 0x19c   :  { %1691 = vmatprep.subr.bf16.mxu0 %v3262_v13 }
 0x19d   :  { %1925 = vmatpush2.bf16.msra.mxu1 %v3257_v7 }
 0x19e   :  { %1926 = vmatprep.subr.bf16.mxu1 %v3265_v11 }
 0x19f   :  { %1692 = vmatpush2.bf16.msra.mxu0 %v3260_v18 }
 0x1a0   :  { %1693 = vmatprep.subr.bf16.mxu0 %v3268_v20 }
 0x1a1   :  { %1927 = vmatpush2.bf16.msra.mxu1 %v3263_v33 }
 0x1a2   :  { %1928 = vmatprep.subr.bf16.mxu1 %v3271_v15 }
 0x1a3   :  { %1694 = vmatpush2.bf16.msra.mxu0 %v3266_v0 }
 0x1a4   :  { %1695 = vmatprep.subr.bf16.mxu0 %v3274_v25 }
 0x1a5   :  { %1929 = vmatpush2.bf16.msra.mxu1 %v3269_v19 }
 0x1a6   :  { %1930 = vmatprep.subr.bf16.mxu1 %v3277_v21 }
 0x1a7   :  { %1696 = vmatpush2.bf16.msra.mxu0 %v3272_v28 }
 0x1a8   :  { %1697 = vmatprep.subr.bf16.mxu0 %v3280_v45 }
 0x1a9   :  { %1931 = vmatpush2.bf16.msra.mxu1 %v3275_v22 }
 0x1aa   :  { %1932 = vmatprep.subr.bf16.mxu1 %v3283_v26 }
 0x1ab   :  { %1698 = vmatpush2.bf16.msra.mxu0 %v3278_v32 }
 0x1ac   :  { %1699 = vmatprep.subr.bf16.mxu0 %v3286_v47 }
 0x1ad   :  { %1933 = vmatpush2.bf16.msra.mxu1 %v3281_v29 }
 0x1ae   :  { %1934 = vmatprep.subr.bf16.mxu1 %v3289_v49 }
 0x1af   :  { %1700 = vmatpush2.bf16.msra.mxu0 %v3284_v55 }
 0x1b0   :  { %1701 = vmatprep.subr.bf16.mxu0 %v3292_v58 }
 0x1b1   :  { %1935 = vmatpush2.bf16.msra.mxu1 %v3287_v48 }
 0x1b2   :  { %1936 = vmatprep.subr.bf16.mxu1 %v3295_v50 }
 0x1b3   :  { %1702 = vmatpush2.bf16.msra.mxu0 %v3290_v62 }
 0x1b4   :  { %1703 = vmatprep.subr.bf16.mxu0 %v3298_v38 }
 0x1b5   :  { %1937 = vmatpush2.bf16.msra.mxu1 %v3293_v60 }
 0x1b6   :  { %2229 = vmatprep.subr.mxu1 %v3763_v16 }
 0x1b7   :  { %1704 = vmatpush2.bf16.msra.mxu0 %v3296_v1 }
 0x1b8   :  { %1705 = vmatprep.subr.bf16.mxu0 %v3301_v2 }
 0x1bb   :  { %1706 = vmatpush2.bf16.msra.mxu0 %v3299_v23 }
 0x1bc   :  { %2168 = vmatprep.subr.bf16.mxu0 %v3304_v3 }
 0x236   :  { %v1003_v4 = vpop.f32.mrf.mxu0 }
 0x238   :  { %v1005_v6 = vpop.f32.mrf.mxu0  ;;  %v1118_v7 = vpop.f32.mrf.mxu1 }
 0x23a   :  { %v1009_v9 = vpop.f32.mrf.mxu0  ;;  %v1120_v11 = vpop.f32.mrf.mxu1 }
 0x23b   :  { %v1026_v16 = vadd.f32 %v1009_v9, %v1003_v4 }
 0x23c   :  { %v1011_v12 = vpop.f32.mrf.mxu0  ;;  %v1124_v33 = vpop.f32.mrf.mxu1 }
 0x23d   :  { %v1035_v20 = vadd.f32 %v1011_v12, %v1005_v6  ;;  %v1141_v21 = vadd.f32 %v1124_v33, %v1118_v7 }
 0x23e   :  { %v1015_v13 = vpop.f32.mrf.mxu0  ;;  %v1126_v15 = vpop.f32.mrf.mxu1 }
 0x23f   :  { %v1027_v0 = vadd.f32 %v1026_v16, %v1015_v13  ;;  %v1150_v26 = vadd.f32 %v1126_v15, %v1120_v11 }
 0x240   :  { %v1017_v18 = vpop.f32.mrf.mxu0  ;;  %v1130_v19 = vpop.f32.mrf.mxu1 }
 0x241   :  { %v1036_v28 = vadd.f32 %v1035_v20, %v1017_v18  ;;  %v1142_v29 = vadd.f32 %v1141_v21, %v1130_v19 }
 0x242   :  { %v1021_v22 = vpop.f32.mrf.mxu0  ;;  %v1132_v25 = vpop.f32.mrf.mxu1 }
 0x243   :  { %v1028_v30 = vadd.f32 %v1027_v0, %v1021_v22  ;;  %v1151_v32 = vadd.f32 %v1150_v26, %v1132_v25 }
 0x244   :  { %v1023_v39 = vpop.f32.mrf.mxu0  ;;  %v1136_v41 = vpop.f32.mrf.mxu1 }
 0x245   :  { %v1029_v43 = vrot.slane %v1028_v30, 4  ;;  %v1037_v45 = vadd.f32 %v1036_v28, %v1023_v39  ;;  %v1143_v46 = vadd.f32 %v1142_v29, %v1136_v41  ;;  %v3589_v28 = vmov 1966171168  }
 0x246   :  { %v1138_v47 = vpop.f32.mrf.mxu1  ;;  %v1176_v29 = vunpack.c.l.s4 %v3589_v28 }
 0x247   :  { %v1030_v48 = vadd.f32 %v1029_v43, %v1028_v30  ;;  %v1038_v49 = vrot.slane %v1037_v45, 4  ;;  %v1144_v50 = vrot.slane %v1143_v46, 4  ;;  %v1152_v52 = vadd.f32 %v1151_v32, %v1138_v47 }
 0x248   :  { %v1178_v30 = vlaneseq  ;;  %v1177_v39 = vunpack.c.0.s8 %v1176_v29 }
 0x249   :  { %v1031_v54 = vrot.slane %v1030_v48, 2  ;;  %v1039_v55 = vadd.f32 %v1038_v49, %v1037_v45  ;;  %v1145_v56 = vadd.f32 %v1144_v50, %v1143_v46  ;;  %v1153_v57 = vrot.slane %v1152_v52, 4 }
 0x24a   :  { %v1179_v41 = vshrl.u32 %v1178_v30, 7 }
 0x24b   :  { %v1032_v58 = vadd.f32 %v1031_v54, %v1030_v48  ;;  %v1040_v60 = vrot.slane %v1039_v55, 2  ;;  %v1146_v62 = vrot.slane %v1145_v56, 2  ;;  %v1154_v38 = vadd.f32 %v1153_v57, %v1152_v52  ;;  %v1167_v48 = vld [vmem:[%s4462_s4] sm:$0x3] }
 0x24c   :  { %v3845_v32 = vsub.s32 %v1177_v39, %v1179_v41  ;;  %v3852_v50 = vsub.s32 0, %v1179_v41  ;;  %v3854_v52 = vsub.s32 1, %v1179_v41 }
 0x24d   :  { %v1033_v1 = vrot.slane %v1032_v58, 1  ;;  %v1041_v2 = vadd.f32 %v1040_v60, %v1039_v55  ;;  %v1147_v23 = vadd.f32 %v1146_v62, %v1145_v56  ;;  %v1155_v3 = vrot.slane %v1154_v38, 2 }
 0x24e   :  { %4553 = vst [vmem:[#allocation29_spill] sm:$0xff] %v3845_v32  ;;  %4554 = vst [vmem:[#allocation30_spill] sm:$0xff] %v3852_v50 }
 0x24f   :  { %v1034_v4 = vadd.f32 %v1033_v1, %v1032_v58  ;;  %v1042_v6 = vrot.slane %v1041_v2, 1  ;;  %v1148_v7 = vrot.slane %v1147_v23, 1  ;;  %v1156_v9 = vadd.f32 %v1155_v3, %v1154_v38  ;;  %4555 = vst [vmem:[#allocation31_spill] sm:$0xff] %v3854_v52  ;;  %v1191_v38 = vld [vmem:[%s4463_s5] sm:$0x3] }
 0x251   :  { %v1159_v11 = vmul.f32 0.001953125, %v1034_v4  ;;  %v1043_v12 = vadd.f32 %v1042_v6, %v1041_v2  ;;  %v1149_v33 = vadd.f32 %v1148_v7, %v1147_v23  ;;  %v1157_v13 = vrot.slane %v1156_v9, 1 }
 0x253   :  { %v1163_v15 = vmul.f32 %v1159_v11, %v1159_v11  ;;  %v1160_v16 = vmul.f32 0.001953125, %v1043_v12  ;;  %v1161_v18 = vmul.f32 0.001953125, %v1149_v33  ;;  %v1158_v19 = vadd.f32 %v1157_v13, %v1156_v9 }
 0x255   :  { %v1164_v20 = vmul.f32 %v1160_v16, %v1160_v16  ;;  %v1165_v21 = vsub.f32 %v1161_v18, %v1163_v15  ;;  %v1162_v0 = vmul.f32 0.001953125, %v1158_v19 }
 0x257   :  { %v1168_v22 = vadd.f32 1e-05, %v1165_v21  ;;  %v1166_v25 = vsub.f32 %v1162_v0, %v1164_v20 }
 0x259   :  { %v1169_v26 = vadd.f32 1e-05, %v1166_v25  ;;  %3350 = vrsqrt.f32 %v1168_v22 }
 0x25b   :  { %3352 = vrsqrt.f32 %v1169_v26 }
 0x266   :  { %v3351_v43 = vpop.eup %3350 }
 0x268   :  { %v3353_v45 = vpop.eup %3352 }
 0x269   :  { %v1174_v46 = vcombine.low %v3351_v43, %v3353_v45 }
 0x26b   :  { %v1181_v47 = vrot.slane %v1174_v46, %v3845_v32 }
 0x26d   :  { %v1188_v49 = vrot.slane %v1181_v47, %v3845_v32 }
 0x26f   :  { %v1190_v54 = vmul.f32 %v1188_v49, %v1167_v48 }
 0x271   :  { %v1196_v55 = vrot.slane %v1190_v54, %v3852_v50  ;;  %v1200_v56 = vrot.slane %v1190_v54, %v3854_v52  ;;  %v1341_v54 = vld [vmem:[#allocation3 + $0x20] sm:$0xff] }
 0x273   :  { %v1203_v57 = vmul.f32 %v1196_v55, %v1159_v11  ;;  %v1204_v58 = vmul.f32 %v1200_v56, %v1160_v16  ;;  %v1224_v23 = vmul.f32 %v1196_v55, %v3783_v51  ;;  %v1225_v3 = vmul.f32 %v1200_v56, %v3785_v53 }
 0x274   :  { %v1226_v4 = vmul.f32 %v1196_v55, %v3792_v61  ;;  %v1227_v6 = vmul.f32 %v1200_v56, %v3795_v63  ;;  %v1228_v11 = vmul.f32 %v1196_v55, %v3800_v5  ;;  %v1229_v12 = vmul.f32 %v1200_v56, %v3805_v8 }
 0x275   :  { %v1207_v60 = vcombine.low %v1203_v57, %v1204_v58  ;;  %v1230_v33 = vmul.f32 %v1196_v55, %v3810_v14  ;;  %v1231_v13 = vmul.f32 %v1200_v56, %v3815_v17 }
 0x277   :  { %v1214_v62 = vrot.slane %v1207_v60, %v3845_v32  ;;  %v1345_v60 = vld [vmem:[#allocation3 + $0x18] sm:$0x11] }
 0x279   :  { %v1221_v1 = vrot.slane %v1214_v62, %v3845_v32  ;;  %v4081_v32 = vld [vmem:[#allocation13 + $0x180] sm:$0xff] }
 0x27a   :  { %4566 = vst [vmem:[#allocation38_spill] sm:$0xff] %v4081_v32 }
 0x27b   :  { %v1223_v2 = vsub.f32 %v1191_v38, %v1221_v1 }
 0x27d   :  { %v1236_v7 = vrot.slane %v1223_v2, %v3852_v50  ;;  %v1240_v9 = vrot.slane %v1223_v2, %v3854_v52  ;;  %v4075_v52 = vld [vmem:[#allocation13 + $0x190] sm:$0xff]  ;;  %v4078_v50 = vld [vmem:[#allocation13 + $0x188] sm:$0xff] }
 0x27e   :  { %4564 = vst [vmem:[#allocation36_spill] sm:$0xff] %v4075_v52  ;;  %4565 = vst [vmem:[#allocation37_spill] sm:$0xff] %v4078_v50 }
 0x27f   :  { %v1243_v51 = vadd.f32 %v1236_v7, %v1224_v23  ;;  %v1244_v15 = vadd.f32 %v1240_v9, %v1225_v3  ;;  %v1245_v53 = vadd.f32 %v1236_v7, %v1226_v4  ;;  %v1246_v16 = vadd.f32 %v1240_v9, %v1227_v6  ;;  %v1348_v6 = vld [vmem:[#allocation3 + $0x10] sm:$0xff] }
 0x280   :  { %v1247_v18 = vadd.f32 %v1236_v7, %v1228_v11  ;;  %v1248_v61 = vadd.f32 %v1240_v9, %v1229_v12  ;;  %v1249_v19 = vadd.f32 %v1236_v7, %v1230_v33  ;;  %v1250_v63 = vadd.f32 %v1240_v9, %v1231_v13 }
 0x281   :  { %v1251_v20 = vmax.f32 %v1243_v51, 0.0  ;;  %v1252_v21 = vmax.f32 %v1244_v15, 0.0  ;;  %v1253_v0 = vmax.f32 %v1245_v53, 0.0  ;;  %v1254_v22 = vmax.f32 %v1246_v16, 0.0 }
 0x282   :  { %v1255_v25 = vmax.f32 %v1247_v18, 0.0  ;;  %v1256_v5 = vmax.f32 %v1248_v61, 0.0  ;;  %v1257_v26 = vmax.f32 %v1249_v19, 0.0  ;;  %v1258_v8 = vmax.f32 %v1250_v63, 0.0  ;;  %v1352_v19 = vld [vmem:[#allocation3] sm:$0x11] }
 0x283   :  { %v3087_v28 = vpack.c.bf16 %v1252_v21, %v1251_v20  ;;  %v3088_v14 = vpack.c.bf16 %v1254_v22, %v1253_v0 }
 0x284   :  { %v3089_v29 = vpack.c.bf16 %v1256_v5, %v1255_v25  ;;  %v3090_v17 = vpack.c.bf16 %v1258_v8, %v1257_v26  ;;  %v3911_v26 = vld [vmem:[#allocation13 + $0xf0] sm:$0xff] }
 0x285   :  { %v1299_v30 = vshrl.u32 %v3087_v28, 16  ;;  %v1307_v39 = vshrl.u32 %v3088_v14, 16  ;;  %v1302_v46 = vshll.u32 %v3087_v28, 16  ;;  %v1310_v49 = vshll.u32 %v3088_v14, 16 }
 0x286   :  { %v1316_v43 = vshrl.u32 %v3089_v29, 16  ;;  %v1324_v45 = vshrl.u32 %v3090_v17, 16  ;;  %v1319_v55 = vshll.u32 %v3089_v29, 16  ;;  %v1327_v58 = vshll.u32 %v3090_v17, 16  ;;  %v3915_v17 = vld [vmem:[#allocation13 + $0xe8] sm:$0xff] }
 0x287   :  { %v1301_v47 = vrot.slane %v1299_v30, 7  ;;  %v1309_v48 = vrot.slane %v1307_v39, 7  ;;  %v3918_v30 = vld [vmem:[#allocation13 + $0xe0] sm:$0xff] }
 0x288   :  { %v1318_v56 = vrot.slane %v1316_v43, 7  ;;  %v1326_v57 = vrot.slane %v1324_v45, 7  ;;  %v3923_v45 = vld [vmem:[#allocation13 + $0xd8] sm:$0xff] }
 0x289   :  { %v1304_v62 = vor.u32 %v1302_v46, %v1301_v47  ;;  %v1305_v38 = vrot.slane %v1301_v47, 4  ;;  %v1312_v1 = vor.u32 %v1310_v49, %v1309_v48  ;;  %v1314_v2 = vrot.slane %v1309_v48, 4  ;;  %v3927_v48 = vld [vmem:[#allocation13 + $0xd0] sm:$0xff] }
 0x28a   :  { %v1321_v23 = vor.u32 %v1319_v55, %v1318_v56  ;;  %v1322_v3 = vrot.slane %v1318_v56, 4  ;;  %v1329_v4 = vor.u32 %v1327_v58, %v1326_v57  ;;  %v1331_v11 = vrot.slane %v1326_v57, 4  ;;  %v3935_v56 = vld [vmem:[#allocation13 + $0xc8] sm:$0xff] }
 0x28b   :  { %v3885_v7 = vsel %vm3717_vm9, %v1305_v38, %v1312_v1  ;;  %v1342_v9 = vsel %vm1340_vm5, %v1304_v62, %v1341_v54  ;;  %v1346_v12 = vsel %vm3826_vm0, %v1314_v2, %v1345_v60  ;;  %v3938_v60 = vld [vmem:[#allocation13 + $0xc0] sm:$0xff]  ;;  %v3941_v38 = vld [vmem:[#allocation13 + $0xb8] sm:$0xff] }
 0x28c   :  { %1343 = vst [vmem:[#allocation3 + $0x20] sm:$0xff] %v1342_v9  ;;  %v1365_v33 = vshrl.u32 %v1342_v9, 16  ;;  %v1368_v13 = vshll.u32 %v1342_v9, 16  ;;  %v3016_v51 = vcombine.high %v1342_v9, %v3885_v7  ;;  %v3015_v15 = vcombine.low %v1342_v9, %v3885_v7  ;;  %1347 = vst [vmem:[#allocation3 + $0x18] sm:$0x11] %v1346_v12 }
 0x28d   :  { %v3898_v53 = vsel %vm3717_vm9, %v1322_v3, %v1329_v4  ;;  %v1349_v16 = vsel %vm1340_vm5, %v1321_v23, %v1348_v6  ;;  %v1374_v18 = vshll.u32 %v3885_v7, 16  ;;  %v1378_v61 = vshrl.u32 %v3885_v7, 16  ;;  %v3950_v3 = vld [vmem:[#allocation13 + $0xb0] sm:$0xff] }
 0x28e   :  { %1938 = vmatprep.mubr.bf16.mxu1 %v3016_v51  ;;  %1350 = vst [vmem:[#allocation3 + $0x10] sm:$0xff] %v1349_v16  ;;  %v1389_v63 = vshrl.u32 %v1349_v16, 16  ;;  %v1392_v20 = vshll.u32 %v1349_v16, 16  ;;  %v3018_v21 = vcombine.high %v1349_v16, %v3898_v53  ;;  %v1367_v59 = vrot.slane %v1365_v33, 4  ;;  %v3302_v9 = vld [vmem:[#allocation12 + $0x270] ss:$8 sps:$4 sm:$0xff]  }
 0x28f   :  { %1939 = vmatmul.mubr.bf16.vlgmr.msra.gmra.mxu1 %v3015_v15  ;;  %v1370_v0 = vrot.slane %v1368_v13, 5  ;;  %v1376_v22 = vrot.slane %v1374_v18, 5  ;;  %v1380_v25 = vrot.slane %v1378_v61, 4  ;;  %v1353_v10 = vsel %vm3826_vm0, %v1331_v11, %v1352_v19  ;;  %v3954_v13 = vld [vmem:[#allocation13 + $0xa8] sm:$0xff]  ;;  %v3961_v19 = vld [vmem:[#allocation13 + $0x98] sm:$0xff] }
 0x290   :  { %1948 = vmatprep.mubr.bf16.mxu1 %v3018_v21  ;;  %v1398_v5 = vshll.u32 %v3898_v53, 16  ;;  %2230 = vmatpush1.msra.mxu1 %v3911_v26  ;;  %1354 = vst [vmem:[#allocation3] sm:$0x11] %v1353_v10  ;;  %v1391_v28 = vrot.slane %v1389_v63, 4  ;;  %v1394_v14 = vrot.slane %v1392_v20, 5  ;;  %v1402_v29 = vshrl.u32 %v3898_v53, 16 }
 0x291   :  { %v1371_v8 = vor.u32 %v1370_v0, %v1367_v59  ;;  %2231 = vmatprep.subr.mxu1 %v3915_v17  ;;  %v1381_v27 = vor.u32 %v1380_v25, %v1376_v22  ;;  %v3017_v54 = vcombine.low %v1349_v16, %v3898_v53  ;;  %v3307_v51 = vld [vmem:[#allocation12 + $0x264] ss:$8 sps:$4 sm:$0xff]   ;;  %v1422_v15 = vrot.slane %v3885_v7, 5  ;;  %v3965_v21 = vld [vmem:[#allocation13 + $0x90] sm:$0xff]  ;;  %v3305_v0 = vld [vmem:[#allocation12 + $0x260] ss:$8 sps:$4 sm:$0xff]  }
 0x292   :  { %2232 = vmatpush1.msra.mxu1 %v3918_v30  ;;  %v1400_v41 = vrot.slane %v1398_v5, 5  ;;  %v1404_v43 = vrot.slane %v1402_v29, 4  ;;  %v1395_v55 = vor.u32 %v1394_v14, %v1391_v28  ;;  %v3958_v16 = vld [vmem:[#allocation13 + $0xa0] sm:$0xff]  ;;  %v3310_v10 = vld [vmem:[#allocation12 + $0x254] ss:$8 sps:$4 sm:$0xff]  }
 0x293   :  { %v3921_v39 = vld [vmem:[#allocation3 + $0x18] sm:$0x11]  ;;  %2233 = vmatprep.subr.mxu1 %v3923_v45  ;;  %v1372_v46 = vrot.slane %v1371_v8, 4  ;;  %v1382_v57 = vrot.slane %v1381_v27, 4  ;;  %v1412_v33 = vld [vmem:[#allocation3 + $0x20] sm:$0xee] }
 0x294   :  { %v1384_v47 = vshll.u32 %v3921_v39, 16  ;;  %2234 = vmatpush1.msra.mxu1 %v3927_v48  ;;  %v1405_v62 = vor.u32 %v1404_v43, %v1400_v41  ;;  %v1396_v11 = vrot.slane %v1395_v55, 4  ;;  %v2977_v63 = vrot.slane %v1412_v33, 9  ;;  %v3975_v8 = vld [vmem:[#allocation13 + $0x80] sm:$0xff]  ;;  %v3978_v28 = vld [vmem:[#allocation13 + $0x78] sm:$0xff]  ;;  %v3989_v27 = vld [vmem:[#allocation13 + $0x70] sm:$0xff] }
 0x295   :  { %2235 = vmatprep.subr.mxu1 %v3935_v56  ;;  %v1377_v1 = vsel %vm3930_vm8, %v1372_v46, %v1376_v22  ;;  %v1425_v20 = vrot.slane %v3921_v39, 5  ;;  %v3972_v22 = vld [vmem:[#allocation13 + $0x88] sm:$0xff]  ;;  %v1424_v5 = vrot.slane %v1422_v15, 4  ;;  %v3308_v39 = vld [vmem:[#allocation12 + $0x250] ss:$8 sps:$4 sm:$0xff]  }
 0x296   :  { %v1386_v58 = vrot.slane %v1384_v47, 5  ;;  %2236 = vmatpush1.msra.mxu1 %v3938_v60  ;;  %v1406_v18 = vrot.slane %v1405_v62, 4  ;;  %v1401_v7 = vsel %vm3930_vm8, %v1396_v11, %v1400_v41  ;;  %v3983_v14 = vsel %vm3739_vm11, %v2977_v63, %v1422_v15  ;;  %v3992_v41 = vld [vmem:[#allocation13 + $0x68] sm:$0xff]  ;;  %v3995_v47 = vld [vmem:[#allocation13 + $0x60] sm:$0xff]  ;;  %v4003_v55 = vld [vmem:[#allocation13 + $0x50] sm:$0xff] }
 0x297   :  { %1949 = vmatmul.mubr.bf16.gmra.mxu1 %v3017_v54  ;;  %2237 = vmatprep.subr.mxu1 %v3941_v38  ;;  %v3948_v23 = vld [vmem:[#allocation3] sm:$0x11]  ;;  %v3987_v29 = vsel %vm3739_vm11, %v1424_v5, %v1425_v20  ;;  %v4000_v54 = vld [vmem:[#allocation13 + $0x58] sm:$0xff]  ;;  %v4006_v62 = vld [vmem:[#allocation13 + $0x48] sm:$0xff] }
 0x298   :  { %v1387_v2 = vsel %vm3930_vm8, %v1382_v57, %v1386_v58  ;;  %2238 = vmatpush1.msra.mxu1 %v3950_v3  ;;  %v1408_v12 = vshll.u32 %v3948_v23, 16  ;;  %v3313_v46 = vld [vmem:[#allocation12 + $0x244] ss:$8 sps:$4 sm:$0xff]   ;;  %v3052_v49 = vcombine.high %v3983_v14, %v3987_v29  ;;  %v3311_v57 = vld [vmem:[#allocation12 + $0x240] ss:$8 sps:$4 sm:$0xff]   ;;  %v4024_v33 = vld [vmem:[#allocation13 + $0x18] sm:$0xff] }
 0x299   :  { %v2979_v4 = vcombine.low %v1377_v1, %v1387_v2  ;;  %v2980_v6 = vcombine.high %v1377_v1, %v1387_v2  ;;  %2239 = vmatprep.subr.mxu1 %v3954_v13  ;;  %v3316_v58 = vld [vmem:[#allocation12 + $0x234] ss:$8 sps:$4 sm:$0xff]   ;;  %v4009_v1 = vld [vmem:[#allocation13 + $0x40] sm:$0xff]  ;;  %v4018_v11 = vld [vmem:[#allocation13 + $0x28] sm:$0xff] }
 0x29a   :  { %2240 = vmatpush1.msra.mxu1 %v3958_v16  ;;  %v1410_v61 = vrot.slane %v1408_v12, 5  ;;  %v4012_v2 = vld [vmem:[#allocation13 + $0x38] sm:$0xff]  ;;  %v4021_v12 = vld [vmem:[#allocation13 + $0x20] sm:$0xff]  ;;  %v4027_v15 = vld [vmem:[#allocation13 + $0x10] sm:$0xff] }
 0x29b   :  { %1707 = vmatprep.mubr.bf16.mxu0 %v2980_v6  ;;  %2241 = vmatprep.subr.mxu1 %v3961_v19  ;;  %v4015_v6 = vld [vmem:[#allocation13 + $0x30] sm:$0xff]  ;;  %v4033_v63 = vld [vmem:[#allocation13] sm:$0xff]  ;;  %v4036_v20 = vld [vmem:[#allocation13 + $0x1f8] sm:$0xff] }
 0x29c   :  { %1708 = vmatmul.mubr.bf16.vlgmr.msra.gmra.mxu0 %v2979_v4  ;;  %2242 = vmatpush1.msra.mxu1 %v3965_v21  ;;  %v1411_v59 = vsel %vm3930_vm8, %v1406_v18, %v1410_v61  ;;  %v3314_v4 = vld [vmem:[#allocation12 + $0x230] ss:$8 sps:$4 sm:$0xff]   ;;  %v3322_v18 = vld [vmem:[#allocation12 + $0x214] ss:$8 sps:$4 sm:$0xff]   ;;  %v4030_v61 = vld [vmem:[#allocation13 + $0x8] sm:$0xff] }
 0x29d   :  { %2169 = vmatpush1.bf16.msra.mxu0 %v3302_v9  ;;  %2243 = vmatprep.subr.mxu1 %v3972_v22  ;;  %v2982_v25 = vcombine.high %v1401_v7, %v1411_v59  ;;  %v2981_v43 = vcombine.low %v1401_v7, %v1411_v59  ;;  %v3319_v9 = vld [vmem:[#allocation12 + $0x224] ss:$8 sps:$4 sm:$0xff]   ;;  %v3320_v7 = vld [vmem:[#allocation12 + $0x210] ss:$8 sps:$4 sm:$0xff]  }
 0x29e   :  { %2170 = vmatprep.subr.bf16.mxu0 %v3307_v51  ;;  %2244 = vmatpush1.msra.mxu1 %v3975_v8  ;;  %v3317_v51 = vld [vmem:[#allocation12 + $0x220] ss:$8 sps:$4 sm:$0xff]   ;;  %v4039_v59 = vld [vmem:[#allocation13 + $0x1f0] sm:$0xff]  ;;  %v4048_v5 = vld [vmem:[#allocation13 + $0x1d8] sm:$0xff] }
 0x29f   :  { %2245 = vmatprep.subr.mxu1 %v3978_v28  ;;  %1717 = vmatprep.mubr.bf16.mxu0 %v2982_v25  ;;  %v4042_v25 = vld [vmem:[#allocation13 + $0x1e8] sm:$0xff] }
 0x2a0   :  { %2246 = vmatpush1.msra.mxu1 %v3989_v27 }
 0x2a1   :  { %2171 = vmatpush1.bf16.msra.mxu0 %v3305_v0  ;;  %2247 = vmatprep.subr.mxu1 %v3992_v41  ;;  %v3325_v0 = vld [vmem:[#allocation12 + $0x204] ss:$8 sps:$4 sm:$0xff]  }
 0x2a2   :  { %2172 = vmatprep.subr.bf16.mxu0 %v3310_v10  ;;  %2248 = vmatpush1.msra.mxu1 %v3995_v47  ;;  %v4045_v10 = vld [vmem:[#allocation13 + $0x1e0] sm:$0xff] }
 0x2a3   :  { %2249 = vmatprep.subr.mxu1 %v4000_v54 }
 0x2a4   :  { %1718 = vmatmul.mubr.bf16.gmra.mxu0 %v2981_v43  ;;  %2250 = vmatpush1.msra.mxu1 %v4003_v55  ;;  %v4051_v43 = vld [vmem:[#allocation13 + $0x1d0] sm:$0xff] }
 0x2a5   :  { %2173 = vmatpush1.bf16.msra.mxu0 %v3308_v39  ;;  %2200 = vmatprep.mubr.bf16.mxu0 %v3052_v49  ;;  %v3323_v39 = vld [vmem:[#allocation12 + $0x200] ss:$8 sps:$4 sm:$0xff]  }
 0x2a6   :  { %2174 = vmatprep.subr.bf16.mxu0 %v3313_v46  ;;  %2251 = vmatprep.subr.mxu1 %v4006_v62  ;;  %v3328_v46 = vld [vmem:[#allocation12 + $0x2f4] ss:$8 sps:$4 sm:$0xff]   ;;  %v4054_v49 = vld [vmem:[#allocation13 + $0x1c8] sm:$0xff] }
 0x2a7   :  { %2252 = vmatpush1.msra.mxu1 %v4009_v1 }
 0x2a8   :  { %2253 = vmatprep.subr.mxu1 %v4012_v2 }
 0x2a9   :  { %2175 = vmatpush1.bf16.msra.mxu0 %v3311_v57  ;;  %2254 = vmatpush1.msra.mxu1 %v4015_v6  ;;  %v4057_v57 = vld [vmem:[#allocation13 + $0x1c0] sm:$0xff] }
 0x2aa   :  { %2176 = vmatprep.subr.bf16.mxu0 %v3316_v58  ;;  %2255 = vmatprep.subr.mxu1 %v4018_v11  ;;  %v4060_v58 = vld [vmem:[#allocation13 + $0x1b8] sm:$0xff] }
 0x2ab   :  { %2256 = vmatpush1.msra.mxu1 %v4021_v12 }
 0x2ac   :  { %2257 = vmatprep.subr.mxu1 %v4024_v33 }
 0x2ad   :  { %2177 = vmatpush1.bf16.msra.mxu0 %v3314_v4  ;;  %2258 = vmatpush1.msra.mxu1 %v4027_v15  ;;  %v3326_v4 = vld [vmem:[#allocation12 + $0x2f0] ss:$8 sps:$4 sm:$0xff]  }
 0x2ae   :  { %2178 = vmatprep.subr.bf16.mxu0 %v3319_v9  ;;  %2259 = vmatprep.subr.mxu1 %v4030_v61  ;;  %v4063_v9 = vld [vmem:[#allocation13 + $0x1b0] sm:$0xff] }
 0x2af   :  { %2260 = vmatpush1.msra.mxu1 %v4033_v63  ;;  %4560 = vst [vmem:[#allocation32_spill] sm:$0xff] %v4063_v9 }
 0x2b0   :  { %2261 = vmatprep.subr.mxu1 %v4036_v20 }
 0x2b1   :  { %2179 = vmatpush1.bf16.msra.mxu0 %v3317_v51  ;;  %2262 = vmatpush2.msra.mxu1 %v4039_v59  ;;  %v3331_v51 = vld [vmem:[#allocation12 + $0x2e4] ss:$8 sps:$4 sm:$0xff]  }
 0x2b2   :  { %2180 = vmatprep.subr.bf16.mxu0 %v3322_v18  ;;  %2263 = vmatprep.subr.mxu1 %v4042_v25  ;;  %v4066_v18 = vld [vmem:[#allocation13 + $0x1a8] sm:$0xff] }
 0x2b3   :  { %2264 = vmatpush2.msra.mxu1 %v4045_v10  ;;  %4561 = vst [vmem:[#allocation33_spill] sm:$0xff] %v4066_v18 }
 0x2b4   :  { %2265 = vmatprep.subr.mxu1 %v4048_v5 }
 0x2b5   :  { %2181 = vmatpush1.bf16.msra.mxu0 %v3320_v7  ;;  %2266 = vmatpush2.msra.mxu1 %v4051_v43  ;;  %v4069_v7 = vld [vmem:[#allocation13 + $0x1a0] sm:$0xff] }
 0x2b6   :  { %2182 = vmatprep.subr.bf16.mxu0 %v3325_v0  ;;  %2267 = vmatprep.subr.mxu1 %v4054_v49  ;;  %4562 = vst [vmem:[#allocation34_spill] sm:$0xff] %v4069_v7  ;;  %v4072_v0 = vld [vmem:[#allocation13 + $0x198] sm:$0xff] }
 0x2b7   :  { %2268 = vmatpush2.msra.mxu1 %v4057_v57  ;;  %4563 = vst [vmem:[#allocation35_spill] sm:$0xff] %v4072_v0 }
 0x2b8   :  { %2269 = vmatprep.subr.mxu1 %v4060_v58 }
 0x2b9   :  { %2183 = vmatpush1.bf16.msra.mxu0 %v3323_v39  ;;  %2270 = vmatpush2.msra.mxu1 %v4063_v9  ;;  %v3329_v39 = vld [vmem:[#allocation12 + $0x2e0] ss:$8 sps:$4 sm:$0xff]  }
 0x2ba   :  { %2184 = vmatprep.subr.bf16.mxu0 %v3328_v46  ;;  %2271 = vmatprep.subr.mxu1 %v4066_v18  ;;  %v3334_v46 = vld [vmem:[#allocation12 + $0x2d4] ss:$8 sps:$4 sm:$0xff]  }
 0x2bb   :  { %2272 = vmatpush2.msra.mxu1 %v4069_v7 }
 0x2bc   :  { %2273 = vmatprep.subr.mxu1 %v4072_v0 }
 0x2bd   :  { %2185 = vmatpush2.bf16.msra.mxu0 %v3326_v4  ;;  %2274 = vmatpush2.msra.mxu1 %v4075_v52  ;;  %v3332_v4 = vld [vmem:[#allocation12 + $0x2d0] ss:$8 sps:$4 sm:$0xff]  }
 0x2be   :  { %2186 = vmatprep.subr.bf16.mxu0 %v3331_v51  ;;  %2275 = vmatprep.subr.mxu1 %v4078_v50  ;;  %v3337_v51 = vld [vmem:[#allocation12 + $0x2c4] ss:$8 sps:$4 sm:$0xff]  }
 0x2bf   :  { %2276 = vmatpush2.msra.mxu1 %v4081_v32 }
 0x2c0   :  { %2277 = vmatprep.subr.mxu1 %v4084_v42 }
 0x2c1   :  { %2187 = vmatpush2.bf16.msra.mxu0 %v3329_v39  ;;  %2278 = vmatpush2.msra.mxu1 %v4087_v44  ;;  %v3335_v39 = vld [vmem:[#allocation12 + $0x2c0] ss:$8 sps:$4 sm:$0xff]   ;;  %v1432_v44 = vrot.slane %v3948_v23, 5 }
 0x2c2   :  { %2188 = vmatprep.subr.bf16.mxu0 %v3334_v46  ;;  %2279 = vmatprep.subr.mxu1 %v4090_v37  ;;  %v3340_v46 = vld [vmem:[#allocation12 + $0x2b4] ss:$8 sps:$4 sm:$0xff]   ;;  %v3349_v37 = vld [vmem:[#allocation12 + $0x284] ss:$8 sps:$4 sm:$0xff]  }
 0x2c3   :  { %2280 = vmatpush2.msra.mxu1 %v4093_v40  ;;  %v4108_v40 = vld [vmem:[#allocation13 + $0x138] sm:$0xff]  ;;  %v4591_v23 = vld [vmem:[#allocation46_spill] sm:$0xff] }
 0x2c4   :  { %2281 = vmatprep.subr.mxu1 %v4096_v35  ;;  %4575 = vst [vmem:[#allocation47_spill] sm:$0xff] %v4108_v40  ;;  %v4111_v35 = vld [vmem:[#allocation13 + $0x130] sm:$0xff] }
 0x2c5   :  { %2189 = vmatpush2.bf16.msra.mxu0 %v3332_v4  ;;  %2282 = vmatpush2.msra.mxu1 %v4099_v36  ;;  %v3338_v4 = vld [vmem:[#allocation12 + $0x2b0] ss:$8 sps:$4 sm:$0xff]   ;;  %4576 = vst [vmem:[#allocation48_spill] sm:$0xff] %v4111_v35  ;;  %v4114_v36 = vld [vmem:[#allocation13 + $0x128] sm:$0xff] }
 0x2c6   :  { %2190 = vmatprep.subr.bf16.mxu0 %v3337_v51  ;;  %2283 = vmatprep.subr.mxu1 %v4102_v31  ;;  %v3343_v51 = vld [vmem:[#allocation12 + $0x2a4] ss:$8 sps:$4 sm:$0xff]   ;;  %4577 = vst [vmem:[#allocation49_spill] sm:$0xff] %v4114_v36 }
 0x2c7   :  { %2284 = vmatpush2.msra.mxu1 %v4105_v34  ;;  %v4117_v31 = vld [vmem:[#allocation13 + $0x120] sm:$0xff]  ;;  %v4120_v34 = vld [vmem:[#allocation13 + $0x118] sm:$0xff] }
 0x2c8   :  { %2285 = vmatprep.subr.mxu1 %v4108_v40  ;;  %4578 = vst [vmem:[#allocation50_spill] sm:$0xff] %v4117_v31  ;;  %4579 = vst [vmem:[#allocation51_spill] sm:$0xff] %v4120_v34  ;;  %v4123_v40 = vld [vmem:[#allocation13 + $0x110] sm:$0xff] }
 0x2c9   :  { %2191 = vmatpush2.bf16.msra.mxu0 %v3335_v39  ;;  %2286 = vmatpush2.msra.mxu1 %v4111_v35  ;;  %v3341_v39 = vld [vmem:[#allocation12 + $0x2a0] ss:$8 sps:$4 sm:$0xff]   ;;  %4580 = vst [vmem:[#allocation52_spill] sm:$0xff] %v4123_v40 }
 0x2ca   :  { %2192 = vmatprep.subr.bf16.mxu0 %v3340_v46  ;;  %2287 = vmatprep.subr.mxu1 %v4114_v36  ;;  %v3346_v46 = vld [vmem:[#allocation12 + $0x294] ss:$8 sps:$4 sm:$0xff]   ;;  %v4126_v35 = vld [vmem:[#allocation13 + $0x108] sm:$0xff]  ;;  %v4129_v36 = vld [vmem:[#allocation13 + $0x100] sm:$0xff] }
 0x2cb   :  { %2288 = vmatpush2.msra.mxu1 %v4117_v31  ;;  %4581 = vst [vmem:[#allocation53_spill] sm:$0xff] %v4126_v35  ;;  %4582 = vst [vmem:[#allocation54_spill] sm:$0xff] %v4129_v36  ;;  %v4132_v31 = vld [vmem:[#allocation13 + $0xf8] sm:$0xff] }
 0x2cc   :  { %2289 = vmatprep.subr.mxu1 %v4120_v34  ;;  %v1413_v34 = vld [vmem:[#allocation3 + $0x10] sm:$0xee] }
 0x2cd   :  { %2193 = vmatpush2.bf16.msra.mxu0 %v3338_v4  ;;  %2290 = vmatpush2.msra.mxu1 %v4123_v40  ;;  %v3344_v4 = vld [vmem:[#allocation12 + $0x290] ss:$8 sps:$4 sm:$0xff]   ;;  %v2978_v40 = vrot.slane %v1413_v34, 9  ;;  %v4583_v34 = vld [vmem:[#allocation38_spill] sm:$0xff] }
 0x2ce   :  { %2194 = vmatprep.subr.bf16.mxu0 %v3343_v51  ;;  %2291 = vmatprep.subr.mxu1 %v4126_v35  ;;  %v1429_v51 = vrot.slane %v3898_v53, 5  ;;  %v3347_v35 = vld [vmem:[#allocation12 + $0x280] ss:$8 sps:$4 sm:$0xff]  }
 0x2cf   :  { %2292 = vmatpush2.msra.mxu1 %v4129_v36 }
 0x2d0   :  { %2543 = vmatprep.subr.mxu1 %v4132_v31  ;;  %v1431_v42 = vrot.slane %v1429_v51, 4  ;;  %v1430_v36 = vsel %vm3739_vm11, %v2978_v40, %v1429_v51  ;;  %v4587_v40 = vld [vmem:[#allocation42_spill] sm:$0xff]  ;;  %v4596_v51 = vld [vmem:[#allocation51_spill] sm:$0xff] }
 0x2d1   :  { %2195 = vmatpush2.bf16.msra.mxu0 %v3341_v39  ;;  %v3051_v39 = vcombine.low %v3983_v14, %v3987_v29  ;;  %v4592_v14 = vld [vmem:[#allocation47_spill] sm:$0xff]  ;;  %v4593_v29 = vld [vmem:[#allocation48_spill] sm:$0xff] }
 0x2d2   :  { %2196 = vmatprep.subr.bf16.mxu0 %v3346_v46  ;;  %v1433_v32 = vsel %vm3739_vm11, %v1431_v42, %v1432_v44  ;;  %v4588_v42 = vld [vmem:[#allocation43_spill] sm:$0xff]  ;;  %v4589_v44 = vld [vmem:[#allocation44_spill] sm:$0xff]  ;;  %v4594_v46 = vld [vmem:[#allocation49_spill] sm:$0xff] }
 0x2d3   :  { %v3054_v53 = vcombine.high %v1430_v36, %v1433_v32  ;;  %v3053_v24 = vcombine.low %v1430_v36, %v1433_v32  ;;  %v4585_v36 = vld [vmem:[#allocation40_spill] sm:$0xff]  ;;  %v4590_v32 = vld [vmem:[#allocation45_spill] sm:$0xff] }
 0x2d5   :  { %2197 = vmatpush2.bf16.msra.mxu0 %v3344_v4  ;;  %v4595_v4 = vld [vmem:[#allocation50_spill] sm:$0xff] }
 0x2d6   :  { %2198 = vmatprep.subr.bf16.mxu0 %v3349_v37  ;;  %v4586_v37 = vld [vmem:[#allocation41_spill] sm:$0xff] }
 0x2d9   :  { %2199 = vmatpush2.bf16.msra.mxu0 %v3347_v35  ;;  %v4584_v35 = vld [vmem:[#allocation39_spill] sm:$0xff] }
 0x2da   :  { %2344 = vmatprep.subr.mxu0 %v4132_v31 }
 0x2dc   :  { %2201 = vmatmul.mubr.bf16.vlgmr.msra.gmra.mxu0 %v3051_v39  ;;  %v4597_v39 = vld [vmem:[#allocation52_spill] sm:$0xff] }
 0x2dd   :  { %2210 = vmatprep.mubr.bf16.mxu0 %v3054_v53  ;;  %2345 = vmatpush1.msra.mxu0 %v3911_v26  ;;  %v4598_v53 = vld [vmem:[#allocation53_spill] sm:$0xff] }
 0x2de   :  { %2346 = vmatprep.subr.mxu0 %v3915_v17 }
 0x2df   :  { %2347 = vmatpush1.msra.mxu0 %v3918_v30 }
 0x2e0   :  { %2348 = vmatprep.subr.mxu0 %v3923_v45 }
 0x2e1   :  { %2349 = vmatpush1.msra.mxu0 %v3927_v48 }
 0x2e2   :  { %2350 = vmatprep.subr.mxu0 %v3935_v56 }
 0x2e3   :  { %2351 = vmatpush1.msra.mxu0 %v3938_v60 }
 0x2e4   :  { %2211 = vmatmul.mubr.bf16.gmra.mxu0 %v3053_v24  ;;  %2352 = vmatprep.subr.mxu0 %v3941_v38  ;;  %v4599_v24 = vld [vmem:[#allocation54_spill] sm:$0xff] }
 0x2e5   :  { %2353 = vmatpush1.msra.mxu0 %v3950_v3 }
 0x2e6   :  { %2354 = vmatprep.subr.mxu0 %v3954_v13 }
 0x2e7   :  { %2355 = vmatpush1.msra.mxu0 %v3958_v16 }
 0x2e8   :  { %2356 = vmatprep.subr.mxu0 %v3961_v19 }
 0x2e9   :  { %2357 = vmatpush1.msra.mxu0 %v3965_v21 }
 0x2ea   :  { %2358 = vmatprep.subr.mxu0 %v3972_v22 }
 0x2eb   :  { %2359 = vmatpush1.msra.mxu0 %v3975_v8 }
 0x2ec   :  { %2360 = vmatprep.subr.mxu0 %v3978_v28 }
 0x2ed   :  { %2361 = vmatpush1.msra.mxu0 %v3989_v27 }
 0x2ee   :  { %2362 = vmatprep.subr.mxu0 %v3992_v41 }
 0x2ef   :  { %2363 = vmatpush1.msra.mxu0 %v3995_v47 }
 0x2f0   :  { %2364 = vmatprep.subr.mxu0 %v4000_v54 }
 0x2f1   :  { %2365 = vmatpush1.msra.mxu0 %v4003_v55 }
 0x2f2   :  { %2366 = vmatprep.subr.mxu0 %v4006_v62 }
 0x2f3   :  { %2367 = vmatpush1.msra.mxu0 %v4009_v1 }
 0x2f4   :  { %2368 = vmatprep.subr.mxu0 %v4012_v2 }
 0x2f5   :  { %2369 = vmatpush1.msra.mxu0 %v4015_v6 }
 0x2f6   :  { %2370 = vmatprep.subr.mxu0 %v4018_v11 }
 0x2f7   :  { %2371 = vmatpush1.msra.mxu0 %v4021_v12 }
 0x2f8   :  { %2372 = vmatprep.subr.mxu0 %v4024_v33 }
 0x2f9   :  { %2373 = vmatpush1.msra.mxu0 %v4027_v15 }
 0x2fa   :  { %2374 = vmatprep.subr.mxu0 %v4030_v61 }
 0x2fb   :  { %2375 = vmatpush1.msra.mxu0 %v4033_v63 }
 0x2fc   :  { %2376 = vmatprep.subr.mxu0 %v4036_v20 }
 0x2fd   :  { %2377 = vmatpush2.msra.mxu0 %v4039_v59 }
 0x2fe   :  { %2378 = vmatprep.subr.mxu0 %v4042_v25 }
 0x2ff   :  { %2379 = vmatpush2.msra.mxu0 %v4045_v10 }
 0x300   :  { %2380 = vmatprep.subr.mxu0 %v4048_v5 }
 0x301   :  { %2381 = vmatpush2.msra.mxu0 %v4051_v43 }
 0x302   :  { %2382 = vmatprep.subr.mxu0 %v4054_v49 }
 0x303   :  { %2383 = vmatpush2.msra.mxu0 %v4057_v57 }
 0x304   :  { %2384 = vmatprep.subr.mxu0 %v4060_v58 }
 0x305   :  { %2385 = vmatpush2.msra.mxu0 %v4063_v9 }
 0x306   :  { %2386 = vmatprep.subr.mxu0 %v4066_v18 }
 0x307   :  { %2387 = vmatpush2.msra.mxu0 %v4069_v7 }
 0x308   :  { %2388 = vmatprep.subr.mxu0 %v4072_v0 }
 0x309   :  { %2389 = vmatpush2.msra.mxu0 %v4075_v52 }
 0x30a   :  { %2390 = vmatprep.subr.mxu0 %v4078_v50 }
 0x30b   :  { %2391 = vmatpush2.msra.mxu0 %v4583_v34 }
 0x30c   :  { %2392 = vmatprep.subr.mxu0 %v4584_v35 }
 0x30d   :  { %2393 = vmatpush2.msra.mxu0 %v4585_v36 }
 0x30e   :  { %2394 = vmatprep.subr.mxu0 %v4586_v37 }
 0x30f   :  { %2395 = vmatpush2.msra.mxu0 %v4587_v40 }
 0x310   :  { %2396 = vmatprep.subr.mxu0 %v4588_v42 }
 0x311   :  { %2397 = vmatpush2.msra.mxu0 %v4589_v44 }
 0x312   :  { %2398 = vmatprep.subr.mxu0 %v4590_v32 }
 0x313   :  { %2399 = vmatpush2.msra.mxu0 %v4591_v23 }
 0x314   :  { %2400 = vmatprep.subr.mxu0 %v4592_v14 }
 0x315   :  { %2401 = vmatpush2.msra.mxu0 %v4593_v29 }
 0x316   :  { %2402 = vmatprep.subr.mxu0 %v4594_v46 }
 0x317   :  { %2403 = vmatpush2.msra.mxu0 %v4595_v4 }
 0x318   :  { %2404 = vmatprep.subr.mxu0 %v4596_v51 }
 0x319   :  { %2405 = vmatpush2.msra.mxu0 %v4597_v39 }
 0x31a   :  { %2406 = vmatprep.subr.mxu0 %v4598_v53 }
 0x31b   :  { %2407 = vmatpush2.msra.mxu0 %v4599_v24 }
 0x31c   :  { %2658 = vmatprep.subr.mxu0 %v4132_v31 }
 0x34f   :  { %v1940_v42 = vpop.f32.mrf.mxu1 }
 0x351   :  { %v1942_v40 = vpop.f32.mrf.mxu1 }
 0x353   :  { %v1944_v37 = vpop.f32.mrf.mxu1 }
 0x355   :  { %v1946_v36 = vpop.f32.mrf.mxu1 }
 0x357   :  { %v1950_v53 = vpop.f32.mrf.mxu1 }
 0x359   :  { %v1952_v18 = vpop.f32.mrf.mxu1 }
 0x35c   :  { %v1709_v32 = vpop.f32.mrf.mxu0 }
 0x35d   :  { %v1941_v35 = vadd.f32 %v1940_v42, %v1709_v32 }
 0x35e   :  { %v1711_v23 = vpop.f32.mrf.mxu0 }
 0x35f   :  { %v1943_v34 = vadd.f32 %v1942_v40, %v1711_v23 }
 0x360   :  { %v1713_v44 = vpop.f32.mrf.mxu0 }
 0x361   :  { %v1945_v9 = vadd.f32 %v1944_v37, %v1713_v44  ;;  %v1954_v44 = vpop.f32.mrf.mxu1 }
 0x362   :  { %v1715_v14 = vpop.f32.mrf.mxu0 }
 0x363   :  { %v1947_v0 = vadd.f32 %v1946_v36, %v1715_v14 }
 0x364   :  { %v1719_v29 = vpop.f32.mrf.mxu0 }
 0x366   :  { %v1721_v46 = vpop.f32.mrf.mxu0 }
 0x367   :  { %v1953_v40 = vadd.f32 %v1952_v18, %v1721_v46 }
 0x368   :  { %v1723_v4 = vpop.f32.mrf.mxu0 }
 0x36a   :  { %v1725_v51 = vpop.f32.mrf.mxu0 }
 0x39c   :  { %v2202_v39 = vpop.f32.mrf.mxu0 }
 0x39d   :  { %v4208_v50 = vadd.f32 %v2202_v39, %v1941_v35  ;;  %v4629_v39 = vld [vmem:[#allocation28_spill] sm:$0xff] }
 0x39e   :  { %v2204_v24 = vpop.f32.mrf.mxu0 }
 0x39f   :  { %v4210_v31 = vadd.f32 %v2204_v24, %v1943_v34  ;;  %v2336_v42 = vmul.f32 %v4208_v50, %v4208_v50  ;;  %v4630_v24 = vld [vmem:[#allocation27_spill] sm:$0xff] }
 0x3a0   :  { %v2206_v52 = vpop.f32.mrf.mxu0 }
 0x3a1   :  { %2293 = vmatprep.mubr.f32.mxu1 %v4210_v31  ;;  %v2337_v7 = vmul.f32 %v4210_v31, %v4210_v31  ;;  %v4221_v34 = vadd.f32 %v2206_v52, %v1945_v9  ;;  %v1951_v9 = vadd.f32 %v1950_v53, %v1719_v29  ;;  %v2657_v53 = vmul.f32 %v4629_v39, %v4629_v39 }
 0x3a2   :  { %v2208_v32 = vpop.f32.mrf.mxu0  ;;  %2294 = vmatmul.mubr.f32.vlgmr.msra.gmra.mxu1 %v4208_v50 }
 0x3a3   :  { %v4218_v35 = vadd.f32 %v2208_v32, %v1947_v0  ;;  %2544 = vmatpush1.msra.mxu1 %v3911_v26  ;;  %2408 = vmatprep.mubr.f32.mxu0 %v2337_v7  ;;  %v2338_v18 = vmul.f32 %v4221_v34, %v4221_v34  ;;  %v1956_v0 = vpop.f32.mrf.mxu1 }
 0x3a4   :  { %2545 = vmatprep.subr.mxu1 %v3915_v17  ;;  %v2212_v36 = vpop.f32.mrf.mxu0  ;;  %2409 = vmatmul.mubr.f32.vlgmr.msra.gmra.mxu0 %v2336_v42  ;;  %v1957_v14 = vadd.f32 %v1956_v0, %v1725_v51  ;;  %v2656_v42 = vmul.f32 %v4630_v24, %v4630_v24 }
 0x3a5   :  { %2546 = vmatpush1.msra.mxu1 %v3918_v30  ;;  %2659 = vmatpush1.msra.mxu0 %v3911_v26  ;;  %v2339_v37 = vmul.f32 %v4218_v35, %v4218_v35  ;;  %v4239_v23 = vadd.f32 %v2212_v36, %v1951_v9 }
 0x3a6   :  { %2299 = vmatprep.mubr.f32.mxu1 %v4218_v35  ;;  %2547 = vmatprep.subr.mxu1 %v3923_v45  ;;  %v2214_v7 = vpop.f32.mrf.mxu0 }
 0x3a7   :  { %2660 = vmatprep.subr.mxu0 %v3915_v17  ;;  %v4231_v52 = vadd.f32 %v2214_v7, %v1953_v40  ;;  %2300 = vmatmul.mubr.f32.gmra.mxu1 %v4221_v34 }
 0x3a8   :  { %2548 = vmatpush1.msra.mxu1 %v3927_v48  ;;  %2661 = vmatpush1.msra.mxu0 %v3918_v30  ;;  %v2216_v26 = vpop.f32.mrf.mxu0 }
 0x3a9   :  { %2414 = vmatprep.mubr.f32.mxu0 %v2339_v37  ;;  %2549 = vmatprep.subr.mxu1 %v3935_v56  ;;  %v2341_v30 = vmul.f32 %v4231_v52, %v4231_v52 }
 0x3aa   :  { %2662 = vmatprep.subr.mxu0 %v3923_v45  ;;  %2415 = vmatmul.mubr.f32.gmra.mxu0 %v2338_v18  ;;  %v2218_v17 = vpop.f32.mrf.mxu0  ;;  %v2340_v45 = vmul.f32 %v4239_v23, %v4239_v23 }
 0x3ab   :  { %2550 = vmatpush1.msra.mxu1 %v3938_v60  ;;  %2663 = vmatpush1.msra.mxu0 %v3927_v48  ;;  %v4249_v29 = vadd.f32 %v2218_v17, %v1957_v14  ;;  %v1955_v48 = vadd.f32 %v1954_v44, %v1723_v4  ;;  %v4628_v4 = vld [vmem:[#allocation25_spill] sm:$0xff] }
 0x3ac   :  { %2305 = vmatprep.mubr.f32.mxu1 %v4231_v52  ;;  %2551 = vmatprep.subr.mxu1 %v3941_v38  ;;  %v2654_v51 = vmul.f32 %v4628_v4, %v4628_v4 }
 0x3ad   :  { %2664 = vmatprep.subr.mxu0 %v3935_v56  ;;  %2306 = vmatmul.mubr.f32.gmra.mxu1 %v4239_v23  ;;  %v4258_v46 = vadd.f32 %v2216_v26, %v1955_v48  ;;  %v2343_v56 = vmul.f32 %v4249_v29, %v4249_v29 }
 0x3ae   :  { %2552 = vmatpush1.msra.mxu1 %v3950_v3  ;;  %2665 = vmatpush1.msra.mxu0 %v3938_v60 }
 0x3af   :  { %2420 = vmatprep.mubr.f32.mxu0 %v2341_v30  ;;  %2553 = vmatprep.subr.mxu1 %v3954_v13  ;;  %v2342_v60 = vmul.f32 %v4258_v46, %v4258_v46 }
 0x3b0   :  { %2666 = vmatprep.subr.mxu0 %v3941_v38  ;;  %2421 = vmatmul.mubr.f32.gmra.mxu0 %v2340_v45  ;;  %v4600_v38 = vld [vmem:[#allocation22_spill] sm:$0xff] }
 0x3b1   :  { %2554 = vmatpush1.msra.mxu1 %v3958_v16  ;;  %2667 = vmatpush1.msra.mxu0 %v3950_v3  ;;  %v2651_v3 = vmul.f32 %v4600_v38, %v4600_v38 }
 0x3b2   :  { %2311 = vmatprep.mubr.f32.mxu1 %v4249_v29  ;;  %2555 = vmatprep.subr.mxu1 %v3961_v19 }
 0x3b3   :  { %2668 = vmatprep.subr.mxu0 %v3954_v13  ;;  %2312 = vmatmul.mubr.f32.gmra.mxu1 %v4258_v46  ;;  %v4601_v13 = vld [vmem:[#allocation32_spill] sm:$0xff] }
 0x3b4   :  { %2556 = vmatpush1.msra.mxu1 %v3965_v21  ;;  %2669 = vmatpush1.msra.mxu0 %v3958_v16  ;;  %v4602_v16 = vld [vmem:[#allocation33_spill] sm:$0xff] }
 0x3b5   :  { %2426 = vmatprep.mubr.f32.mxu0 %v2343_v56  ;;  %2557 = vmatprep.subr.mxu1 %v3972_v22 }
 0x3b6   :  { %2607 = vmatprep.mubr.f32.mxu1 %v4600_v38  ;;  %2670 = vmatprep.subr.mxu0 %v3961_v19  ;;  %v4603_v19 = vld [vmem:[#allocation34_spill] sm:$0xff] }
 0x3b7   :  { %2427 = vmatmul.mubr.f32.gmra.mxu0 %v2342_v60  ;;  %2558 = vmatpush1.msra.mxu1 %v3975_v8 }
 0x3b8   :  { %2671 = vmatpush1.msra.mxu0 %v3965_v21  ;;  %2559 = vmatprep.subr.mxu1 %v3978_v28  ;;  %v4604_v21 = vld [vmem:[#allocation35_spill] sm:$0xff] }
 0x3b9   :  { %2672 = vmatprep.subr.mxu0 %v3972_v22  ;;  %2722 = vmatprep.mubr.f32.mxu0 %v2651_v3  ;;  %v4605_v22 = vld [vmem:[#allocation36_spill] sm:$0xff] }
 0x3ba   :  { %2560 = vmatpush1.msra.mxu1 %v3989_v27  ;;  %2673 = vmatpush1.msra.mxu0 %v3975_v8  ;;  %v4606_v8 = vld [vmem:[#allocation37_spill] sm:$0xff] }
 0x3bb   :  { %2561 = vmatprep.subr.mxu1 %v3992_v41  ;;  %2674 = vmatprep.subr.mxu0 %v3978_v28  ;;  %v4607_v28 = vld [vmem:[#allocation38_spill] sm:$0xff] }
 0x3bc   :  { %2562 = vmatpush1.msra.mxu1 %v3995_v47  ;;  %2675 = vmatpush1.msra.mxu0 %v3989_v27  ;;  %v4608_v27 = vld [vmem:[#allocation39_spill] sm:$0xff] }
 0x3bd   :  { %2563 = vmatprep.subr.mxu1 %v4000_v54  ;;  %2676 = vmatprep.subr.mxu0 %v3992_v41  ;;  %v4609_v41 = vld [vmem:[#allocation40_spill] sm:$0xff] }
 0x3be   :  { %2564 = vmatpush1.msra.mxu1 %v4003_v55  ;;  %2677 = vmatpush1.msra.mxu0 %v3995_v47  ;;  %v4610_v47 = vld [vmem:[#allocation41_spill] sm:$0xff] }
 0x3bf   :  { %2565 = vmatprep.subr.mxu1 %v4006_v62  ;;  %2678 = vmatprep.subr.mxu0 %v4000_v54  ;;  %v4611_v54 = vld [vmem:[#allocation42_spill] sm:$0xff] }
 0x3c0   :  { %2566 = vmatpush1.msra.mxu1 %v4009_v1  ;;  %2679 = vmatpush1.msra.mxu0 %v4003_v55  ;;  %v4612_v55 = vld [vmem:[#allocation43_spill] sm:$0xff] }
 0x3c1   :  { %2567 = vmatprep.subr.mxu1 %v4012_v2  ;;  %2680 = vmatprep.subr.mxu0 %v4006_v62  ;;  %v4613_v62 = vld [vmem:[#allocation44_spill] sm:$0xff] }
 0x3c2   :  { %2568 = vmatpush1.msra.mxu1 %v4015_v6  ;;  %2681 = vmatpush1.msra.mxu0 %v4009_v1  ;;  %v4614_v1 = vld [vmem:[#allocation45_spill] sm:$0xff] }
 0x3c3   :  { %2569 = vmatprep.subr.mxu1 %v4018_v11  ;;  %2682 = vmatprep.subr.mxu0 %v4012_v2  ;;  %v4615_v2 = vld [vmem:[#allocation46_spill] sm:$0xff] }
 0x3c4   :  { %2570 = vmatpush1.msra.mxu1 %v4021_v12  ;;  %2683 = vmatpush1.msra.mxu0 %v4015_v6  ;;  %v4616_v6 = vld [vmem:[#allocation47_spill] sm:$0xff] }
 0x3c5   :  { %2571 = vmatprep.subr.mxu1 %v4024_v33  ;;  %2684 = vmatprep.subr.mxu0 %v4018_v11  ;;  %v4617_v11 = vld [vmem:[#allocation48_spill] sm:$0xff] }
 0x3c6   :  { %2572 = vmatpush1.msra.mxu1 %v4027_v15  ;;  %2685 = vmatpush1.msra.mxu0 %v4021_v12  ;;  %v4618_v12 = vld [vmem:[#allocation49_spill] sm:$0xff] }
 0x3c7   :  { %2573 = vmatprep.subr.mxu1 %v4030_v61  ;;  %2686 = vmatprep.subr.mxu0 %v4024_v33  ;;  %v4619_v33 = vld [vmem:[#allocation50_spill] sm:$0xff] }
 0x3c8   :  { %2574 = vmatpush1.msra.mxu1 %v4033_v63  ;;  %2687 = vmatpush1.msra.mxu0 %v4027_v15  ;;  %v4620_v15 = vld [vmem:[#allocation51_spill] sm:$0xff] }
 0x3c9   :  { %2575 = vmatprep.subr.mxu1 %v4036_v20  ;;  %2688 = vmatprep.subr.mxu0 %v4030_v61  ;;  %v4621_v61 = vld [vmem:[#allocation52_spill] sm:$0xff] }
 0x3ca   :  { %2576 = vmatpush2.msra.mxu1 %v4039_v59  ;;  %2689 = vmatpush1.msra.mxu0 %v4033_v63  ;;  %v4622_v63 = vld [vmem:[#allocation53_spill] sm:$0xff] }
 0x3cb   :  { %2577 = vmatprep.subr.mxu1 %v4042_v25  ;;  %2690 = vmatprep.subr.mxu0 %v4036_v20  ;;  %v4623_v20 = vld [vmem:[#allocation54_spill] sm:$0xff] }
 0x3cc   :  { %2578 = vmatpush2.msra.mxu1 %v4045_v10  ;;  %2691 = vmatpush2.msra.mxu0 %v4039_v59  ;;  %v4624_v59 = vld [vmem:[#allocation21_spill] sm:$0xff] }
 0x3cd   :  { %2579 = vmatprep.subr.mxu1 %v4048_v5  ;;  %2692 = vmatprep.subr.mxu0 %v4042_v25  ;;  %v2650_v25 = vmul.f32 %v4624_v59, %v4624_v59 }
 0x3ce   :  { %2580 = vmatpush2.msra.mxu1 %v4051_v43  ;;  %2693 = vmatpush2.msra.mxu0 %v4045_v10  ;;  %v4625_v10 = vld [vmem:[#allocation24_spill] sm:$0xff] }
 0x3cf   :  { %2581 = vmatprep.subr.mxu1 %v4054_v49  ;;  %2694 = vmatprep.subr.mxu0 %v4048_v5  ;;  %v2653_v5 = vmul.f32 %v4625_v10, %v4625_v10 }
 0x3d0   :  { %2582 = vmatpush2.msra.mxu1 %v4057_v57  ;;  %2695 = vmatpush2.msra.mxu0 %v4051_v43  ;;  %v4626_v43 = vld [vmem:[#allocation23_spill] sm:$0xff] }
 0x3d1   :  { %2583 = vmatprep.subr.mxu1 %v4060_v58  ;;  %2696 = vmatprep.subr.mxu0 %v4054_v49  ;;  %v2652_v49 = vmul.f32 %v4626_v43, %v4626_v43 }
 0x3d2   :  { %2584 = vmatpush2.msra.mxu1 %v4601_v13  ;;  %2697 = vmatpush2.msra.mxu0 %v4057_v57  ;;  %v4627_v57 = vld [vmem:[#allocation26_spill] sm:$0xff] }
 0x3d3   :  { %2585 = vmatprep.subr.mxu1 %v4602_v16  ;;  %2698 = vmatprep.subr.mxu0 %v4060_v58  ;;  %v2655_v58 = vmul.f32 %v4627_v57, %v4627_v57 }
 0x3d4   :  { %2586 = vmatpush2.msra.mxu1 %v4603_v19  ;;  %2699 = vmatpush2.msra.mxu0 %v4601_v13 }
 0x3d5   :  { %2587 = vmatprep.subr.mxu1 %v4604_v21  ;;  %2700 = vmatprep.subr.mxu0 %v4602_v16 }
 0x3d6   :  { %2588 = vmatpush2.msra.mxu1 %v4605_v22  ;;  %2701 = vmatpush2.msra.mxu0 %v4603_v19 }
 0x3d7   :  { %2589 = vmatprep.subr.mxu1 %v4606_v8  ;;  %2702 = vmatprep.subr.mxu0 %v4604_v21 }
 0x3d8   :  { %2590 = vmatpush2.msra.mxu1 %v4607_v28  ;;  %2703 = vmatpush2.msra.mxu0 %v4605_v22 }
 0x3d9   :  { %2591 = vmatprep.subr.mxu1 %v4608_v27  ;;  %2704 = vmatprep.subr.mxu0 %v4606_v8 }
 0x3da   :  { %2592 = vmatpush2.msra.mxu1 %v4609_v41  ;;  %2705 = vmatpush2.msra.mxu0 %v4607_v28 }
 0x3db   :  { %2593 = vmatprep.subr.mxu1 %v4610_v47  ;;  %2706 = vmatprep.subr.mxu0 %v4608_v27 }
 0x3dc   :  { %2594 = vmatpush2.msra.mxu1 %v4611_v54  ;;  %2707 = vmatpush2.msra.mxu0 %v4609_v41 }
 0x3dd   :  { %2595 = vmatprep.subr.mxu1 %v4612_v55  ;;  %2708 = vmatprep.subr.mxu0 %v4610_v47 }
 0x3de   :  { %2596 = vmatpush2.msra.mxu1 %v4613_v62  ;;  %2709 = vmatpush2.msra.mxu0 %v4611_v54 }
 0x3df   :  { %2597 = vmatprep.subr.mxu1 %v4614_v1  ;;  %2710 = vmatprep.subr.mxu0 %v4612_v55 }
 0x3e0   :  { %2598 = vmatpush2.msra.mxu1 %v4615_v2  ;;  %2711 = vmatpush2.msra.mxu0 %v4613_v62 }
 0x3e1   :  { %2599 = vmatprep.subr.mxu1 %v4616_v6  ;;  %2712 = vmatprep.subr.mxu0 %v4614_v1 }
 0x3e2   :  { %2600 = vmatpush2.msra.mxu1 %v4617_v11  ;;  %2713 = vmatpush2.msra.mxu0 %v4615_v2 }
 0x3e3   :  { %2601 = vmatprep.subr.mxu1 %v4618_v12  ;;  %2714 = vmatprep.subr.mxu0 %v4616_v6 }
 0x3e4   :  { %2602 = vmatpush2.msra.mxu1 %v4619_v33  ;;  %2715 = vmatpush2.msra.mxu0 %v4617_v11 }
 0x3e5   :  { %2603 = vmatprep.subr.mxu1 %v4620_v15  ;;  %2716 = vmatprep.subr.mxu0 %v4618_v12 }
 0x3e6   :  { %2604 = vmatpush2.msra.mxu1 %v4621_v61  ;;  %2717 = vmatpush2.msra.mxu0 %v4619_v33 }
 0x3e7   :  { %2605 = vmatprep.subr.mxu1 %v4622_v63  ;;  %2718 = vmatprep.subr.mxu0 %v4620_v15 }
 0x3e8   :  { %2606 = vmatpush2.msra.mxu1 %v4623_v20  ;;  %2719 = vmatpush2.msra.mxu0 %v4621_v61 }
 0x3e9   :  { %2608 = vmatmul.mubr.f32.vlgmr.msra.gmra.mxu1 %v4624_v59  ;;  %2720 = vmatprep.subr.mxu0 %v4622_v63 }
 0x3ea   :  { %2613 = vmatprep.mubr.f32.mxu1 %v4625_v10  ;;  %2721 = vmatpush2.msra.mxu0 %v4623_v20 }
 0x3eb   :  { %2723 = vmatmul.mubr.f32.vlgmr.msra.gmra.mxu0 %v2650_v25 }
 0x3ec   :  { %2728 = vmatprep.mubr.f32.mxu0 %v2653_v5 }
 0x3ed   :  { %2614 = vmatmul.mubr.f32.gmra.mxu1 %v4626_v43 }
 0x3ee   :  { %2619 = vmatprep.mubr.f32.mxu1 %v4627_v57 }
 0x3ef   :  { %2729 = vmatmul.mubr.f32.gmra.mxu0 %v2652_v49 }
 0x3f0   :  { %2734 = vmatprep.mubr.f32.mxu0 %v2655_v58 }
 0x3f1   :  { %2620 = vmatmul.mubr.f32.gmra.mxu1 %v4628_v4 }
 0x3f2   :  { %2625 = vmatprep.mubr.f32.mxu1 %v4629_v39 }
 0x3f3   :  { %2735 = vmatmul.mubr.f32.gmra.mxu0 %v2654_v51 }
 0x3f4   :  { %2740 = vmatprep.mubr.f32.mxu0 %v2657_v53 }
 0x3f5   :  { %2626 = vmatmul.mubr.f32.gmra.mxu1 %v4630_v24 }
 0x3f7   :  { %2741 = vmatmul.mubr.f32.gmra.mxu0 %v2656_v42 }
 0x462   :  { %v2295_v32 = vpop.f32.mrf.mxu1 }
 0x464   :  { %v2297_v36 = vpop.f32.mrf.mxu1  ;;  %v2410_v40 = vpop.f32.mrf.mxu0 }
 0x466   :  { %v2412_v44 = vpop.f32.mrf.mxu0 }
 0x467   :  { %v2301_v37 = vpop.f32.mrf.mxu1 }
 0x468   :  { %v2318_v60 = vadd.f32 %v2301_v37, %v2295_v32 }
 0x469   :  { %v2303_v7 = vpop.f32.mrf.mxu1 }
 0x46a   :  { %v2416_v9 = vpop.f32.mrf.mxu0  ;;  %v2327_v45 = vadd.f32 %v2303_v7, %v2297_v36 }
 0x46b   :  { %v2433_v22 = vadd.f32 %v2416_v9, %v2410_v40 }
 0x46c   :  { %v2418_v18 = vpop.f32.mrf.mxu0 }
 0x46d   :  { %v2307_v26 = vpop.f32.mrf.mxu1  ;;  %v2442_v16 = vadd.f32 %v2418_v18, %v2412_v44 }
 0x46e   :  { %v2319_v13 = vadd.f32 %v2318_v60, %v2307_v26 }
 0x46f   :  { %v2309_v0 = vpop.f32.mrf.mxu1 }
 0x470   :  { %v2422_v17 = vpop.f32.mrf.mxu0  ;;  %v2328_v3 = vadd.f32 %v2327_v45, %v2309_v0 }
 0x471   :  { %v2434_v27 = vadd.f32 %v2433_v22, %v2422_v17 }
 0x472   :  { %v2424_v30 = vpop.f32.mrf.mxu0 }
 0x473   :  { %v2313_v14 = vpop.f32.mrf.mxu1  ;;  %v2443_v28 = vadd.f32 %v2442_v16, %v2424_v30 }
 0x474   :  { %v2320_v8 = vadd.f32 %v2319_v13, %v2313_v14 }
 0x475   :  { %v2315_v48 = vpop.f32.mrf.mxu1 }
 0x476   :  { %v2329_v19 = vadd.f32 %v2328_v3, %v2315_v48  ;;  %v2321_v54 = vrot.slane %v2320_v8, 4 }
 0x477   :  { %v2428_v56 = vpop.f32.mrf.mxu0 }
 0x478   :  { %v2330_v41 = vrot.slane %v2329_v19, 4  ;;  %v2435_v55 = vadd.f32 %v2434_v27, %v2428_v56  ;;  %v2322_v2 = vadd.f32 %v2321_v54, %v2320_v8 }
 0x479   :  { %v2430_v21 = vpop.f32.mrf.mxu0 }
 0x47a   :  { %v2444_v47 = vadd.f32 %v2443_v28, %v2430_v21  ;;  %v2331_v62 = vadd.f32 %v2330_v41, %v2329_v19  ;;  %v2436_v6 = vrot.slane %v2435_v55, 4  ;;  %v2323_v33 = vrot.slane %v2322_v2, 2 }
 0x47c   :  { %v2445_v1 = vrot.slane %v2444_v47, 4  ;;  %v2332_v11 = vrot.slane %v2331_v62, 2  ;;  %v2437_v15 = vadd.f32 %v2436_v6, %v2435_v55  ;;  %v2324_v20 = vadd.f32 %v2323_v33, %v2322_v2 }
 0x47e   :  { %v2446_v12 = vadd.f32 %v2445_v1, %v2444_v47  ;;  %v2333_v61 = vadd.f32 %v2332_v11, %v2331_v62  ;;  %v2438_v25 = vrot.slane %v2437_v15, 2  ;;  %v2325_v58 = vrot.slane %v2324_v20, 1 }
 0x480   :  { %v2447_v63 = vrot.slane %v2446_v12, 2  ;;  %v2334_v5 = vrot.slane %v2333_v61, 1  ;;  %v2439_v51 = vadd.f32 %v2438_v25, %v2437_v15  ;;  %v2326_v32 = vadd.f32 %v2325_v58, %v2324_v20 }
 0x482   :  { %v2448_v49 = vadd.f32 %v2447_v63, %v2446_v12  ;;  %v2335_v53 = vadd.f32 %v2334_v5, %v2333_v61  ;;  %v2440_v36 = vrot.slane %v2439_v51, 1  ;;  %v4400_v44 = vmul.f32 0.001953125, %v2326_v32 }
 0x484   :  { %v2449_v42 = vrot.slane %v2448_v49, 1  ;;  %v4398_v40 = vmul.f32 0.001953125, %v2335_v53  ;;  %v2441_v7 = vadd.f32 %v2440_v36, %v2439_v51  ;;  %v2455_v18 = vmul.f32 %v4400_v44, %v4400_v44 }
 0x486   :  { %v2450_v37 = vadd.f32 %v2449_v42, %v2448_v49  ;;  %v2456_v9 = vmul.f32 %v4398_v40, %v4398_v40  ;;  %v2453_v0 = vmul.f32 0.001953125, %v2441_v7 }
 0x488   :  { %v2454_v26 = vmul.f32 0.001953125, %v2450_v37  ;;  %v2457_v30 = vsub.f32 %v2453_v0, %v2455_v18 }
 0x48a   :  { %v2458_v17 = vsub.f32 %v2454_v26, %v2456_v9  ;;  %v2460_v13 = vadd.f32 1e-05, %v2457_v30 }
 0x48c   :  { %v2461_v56 = vadd.f32 1e-05, %v2458_v17 }
 0x48e   :  { %3354 = vrsqrt.f32 %v2461_v56 }
 0x48f   :  { %3356 = vrsqrt.f32 %v2460_v13 }
 0x49b   :  { %v3355_v37 = vpop.eup %3354 }
 0x49c   :  { %v3357_v0 = vpop.eup %3356 }
 0x4a9   :  { %v2609_v14 = vpop.f32.mrf.mxu1 }
 0x4ab   :  { %v2611_v45 = vpop.f32.mrf.mxu1  ;;  %v2724_v48 = vpop.f32.mrf.mxu0 }
 0x4ad   :  { %v2615_v60 = vpop.f32.mrf.mxu1  ;;  %v2726_v3 = vpop.f32.mrf.mxu0 }
 0x4ae   :  { %v2632_v8 = vadd.f32 %v2615_v60, %v2609_v14 }
 0x4af   :  { %v2617_v16 = vpop.f32.mrf.mxu1  ;;  %v2730_v19 = vpop.f32.mrf.mxu0 }
 0x4b0   :  { %v2641_v41 = vadd.f32 %v2617_v16, %v2611_v45  ;;  %v2747_v47 = vadd.f32 %v2730_v19, %v2724_v48  ;;  %v2466_v48 = vcombine.low %v3357_v0, %v3355_v37  ;;  %v2773_v37 = vld [vmem:[%s4467_s9] sm:$0x3] }
 0x4b1   :  { %v2621_v21 = vpop.f32.mrf.mxu1  ;;  %v2732_v22 = vpop.f32.mrf.mxu0 }
 0x4b2   :  { %v2633_v54 = vadd.f32 %v2632_v8, %v2621_v21  ;;  %v2756_v1 = vadd.f32 %v2732_v22, %v2726_v3  ;;  %v4631_v8 = vld [vmem:[#allocation29_spill] sm:$0xff] }
 0x4b3   :  { %v2623_v28 = vpop.f32.mrf.mxu1  ;;  %v2736_v27 = vpop.f32.mrf.mxu0 }
 0x4b4   :  { %v2642_v2 = vadd.f32 %v2641_v41, %v2623_v28  ;;  %v2748_v6 = vadd.f32 %v2747_v47, %v2736_v27  ;;  %v2473_v28 = vrot.slane %v2466_v48, %v4631_v8 }
 0x4b5   :  { %v2627_v55 = vpop.f32.mrf.mxu1  ;;  %v2738_v62 = vpop.f32.mrf.mxu0 }
 0x4b6   :  { %v2634_v11 = vadd.f32 %v2633_v54, %v2627_v55  ;;  %v2757_v61 = vadd.f32 %v2756_v1, %v2738_v62 }
 0x4b7   :  { %v2629_v12 = vpop.f32.mrf.mxu1  ;;  %v2742_v33 = vpop.f32.mrf.mxu0 }
 0x4b8   :  { %v2635_v15 = vrot.slane %v2634_v11, 4  ;;  %v2643_v63 = vadd.f32 %v2642_v2, %v2629_v12  ;;  %v2749_v20 = vadd.f32 %v2748_v6, %v2742_v33  ;;  %v2480_v2 = vrot.slane %v2473_v28, %v4631_v8  ;;  %v2459_v6 = vld [vmem:[%s4465_s7] sm:$0x3] }
 0x4b9   :  { %v2744_v25 = vpop.f32.mrf.mxu0 }
 0x4ba   :  { %v2636_v5 = vadd.f32 %v2635_v15, %v2634_v11  ;;  %v2644_v49 = vrot.slane %v2643_v63, 4  ;;  %v2750_v58 = vrot.slane %v2749_v20, 4  ;;  %v2758_v51 = vadd.f32 %v2757_v61, %v2744_v25  ;;  %v4632_v61 = vld [vmem:[#allocation30_spill] sm:$0xff] }
 0x4bb   :  { %v2482_v15 = vmul.f32 %v2480_v2, %v2459_v6 }
 0x4bc   :  { %v2637_v53 = vrot.slane %v2636_v5, 2  ;;  %v2645_v42 = vadd.f32 %v2644_v49, %v2643_v63  ;;  %v2751_v32 = vadd.f32 %v2750_v58, %v2749_v20  ;;  %v2759_v36 = vrot.slane %v2758_v51, 4  ;;  %v4633_v20 = vld [vmem:[#allocation31_spill] sm:$0xff] }
 0x4bd   :  { %v2488_v63 = vrot.slane %v2482_v15, %v4632_v61  ;;  %v2492_v25 = vrot.slane %v2482_v15, %v4633_v20 }
 0x4be   :  { %v2638_v7 = vadd.f32 %v2637_v53, %v2636_v5  ;;  %v2646_v9 = vrot.slane %v2645_v42, 2  ;;  %v2752_v26 = vrot.slane %v2751_v32, 2  ;;  %v2760_v18 = vadd.f32 %v2759_v36, %v2758_v51 }
 0x4bf   :  { %v2495_v5 = vmul.f32 %v2488_v63, %v4400_v44  ;;  %v2496_v49 = vmul.f32 %v2492_v25, %v4398_v40  ;;  %v2483_v40 = vld [vmem:[%s4466_s8] sm:$0x3]  ;;  %v2522_v28 = vmul.f32 %v2488_v63, %v4258_v46 }
 0x4c0   :  { %v2639_v17 = vrot.slane %v2638_v7, 1  ;;  %v2647_v14 = vadd.f32 %v2646_v9, %v2645_v42  ;;  %v2753_v30 = vadd.f32 %v2752_v26, %v2751_v32  ;;  %v2761_v45 = vrot.slane %v2760_v18, 2 }
 0x4c1   :  { %v2499_v58 = vcombine.low %v2495_v5, %v2496_v49 }
 0x4c2   :  { %v2640_v56 = vadd.f32 %v2639_v17, %v2638_v7  ;;  %v2648_v60 = vrot.slane %v2647_v14, 1  ;;  %v2754_v3 = vrot.slane %v2753_v30, 1  ;;  %v2762_v13 = vadd.f32 %v2761_v45, %v2760_v18 }
 0x4c3   :  { %v2506_v32 = vrot.slane %v2499_v58, %v4631_v8 }
 0x4c4   :  { %v2765_v16 = vmul.f32 0.001953125, %v2640_v56  ;;  %v2649_v19 = vadd.f32 %v2648_v60, %v2647_v14  ;;  %v2755_v21 = vadd.f32 %v2754_v3, %v2753_v30  ;;  %v2763_v22 = vrot.slane %v2762_v13, 1 }
 0x4c5   :  { %v2513_v9 = vrot.slane %v2506_v32, %v4631_v8  ;;  %v2516_v60 = vmul.f32 %v2488_v63, %v4208_v50  ;;  %v2517_v3 = vmul.f32 %v2492_v25, %v4210_v31  ;;  %v2523_v50 = vmul.f32 %v2492_v25, %v4249_v29 }
 0x4c6   :  { %v2769_v27 = vmul.f32 %v2765_v16, %v2765_v16  ;;  %v2766_v41 = vmul.f32 0.001953125, %v2649_v19  ;;  %v2767_v47 = vmul.f32 0.001953125, %v2755_v21  ;;  %v2764_v54 = vadd.f32 %v2763_v22, %v2762_v13 }
 0x4c7   :  { %v2515_v0 = vsub.f32 %v2483_v40, %v2513_v9  ;;  %v2518_v13 = vmul.f32 %v2488_v63, %v4221_v34  ;;  %v2519_v19 = vmul.f32 %v2492_v25, %v4218_v35  ;;  %v2520_v21 = vmul.f32 %v2488_v63, %v4239_v23 }
 0x4c8   :  { %v2770_v55 = vmul.f32 %v2766_v41, %v2766_v41  ;;  %v2771_v62 = vsub.f32 %v2767_v47, %v2769_v27  ;;  %v2768_v1 = vmul.f32 0.001953125, %v2764_v54  ;;  %v2521_v22 = vmul.f32 %v2492_v25, %v4231_v52 }
 0x4c9   :  { %v2528_v45 = vrot.slane %v2515_v0, %v4632_v61  ;;  %v2532_v48 = vrot.slane %v2515_v0, %v4633_v20 }
 0x4ca   :  { %v2774_v11 = vadd.f32 1e-05, %v2771_v62  ;;  %v2772_v12 = vsub.f32 %v2768_v1, %v2770_v55 }
 0x4cb   :  { %v2536_v31 = vadd.f32 %v2532_v48, %v2517_v3  ;;  %v2537_v47 = vadd.f32 %v2528_v45, %v2518_v13  ;;  %v2538_v34 = vadd.f32 %v2532_v48, %v2519_v19  ;;  %v2539_v54 = vadd.f32 %v2528_v45, %v2520_v21 }
 0x4cc   :  { %v2775_v33 = vadd.f32 1e-05, %v2772_v12  ;;  %3358 = vrsqrt.f32 %v2774_v11  ;;  %v2540_v35 = vadd.f32 %v2532_v48, %v2521_v22  ;;  %v2541_v62 = vadd.f32 %v2528_v45, %v2522_v28 }
 0x4cd   :  { %v2542_v1 = vadd.f32 %v2532_v48, %v2523_v50 }
 0x4ce   :  { %3360 = vrsqrt.f32 %v2775_v33 }
 0x4d9   :  { %v3359_v51 = vpop.eup %3358 }
 0x4db   :  { %v3361_v53 = vpop.eup %3360 }
 0x4dc   :  { %v2780_v42 = vcombine.low %v3359_v51, %v3361_v53 }
 0x4de   :  { %v2787_v36 = vrot.slane %v2780_v42, %v4631_v8 }
 0x4e0   :  { %v2794_v7 = vrot.slane %v2787_v36, %v4631_v8 }
 0x4e2   :  { %v2796_v26 = vmul.f32 %v2794_v7, %v2773_v37 }
 0x4e4   :  { %v2802_v44 = vrot.slane %v2796_v26, %v4632_v61  ;;  %v2806_v18 = vrot.slane %v2796_v26, %v4633_v20 }
 0x4e6   :  { %v2809_v17 = vmul.f32 %v2802_v44, %v2765_v16  ;;  %v2810_v14 = vmul.f32 %v2806_v18, %v2766_v41  ;;  %v2797_v16 = vld [vmem:[%s4468_s10] sm:$0x3]  ;;  %v2535_v41 = vadd.f32 %v2528_v45, %v2516_v60  ;;  %v2830_v2 = vmul.f32 %v2802_v44, %v4624_v59  ;;  %s3590_s10 = smov [#allocation15]  }
 0x4e7   :  { %v2831_v23 = vmul.f32 %v2806_v18, %v4600_v38  ;;  %v2832_v52 = vmul.f32 %v2802_v44, %v4626_v43  ;;  %v2833_v46 = vmul.f32 %v2806_v18, %v4625_v10  ;;  %v2834_v6 = vmul.f32 %v2802_v44, %v4628_v4  ;;  %s2886_s21 = sshll.u32 %s3590_s10, 4  ;;  %s2887_s21 = int_to_ptr.vmem [resolvable:$true] %s2886_s21 }
 0x4e8   :  { %v2813_v30 = vcombine.low %v2809_v17, %v2810_v14  ;;  %v2835_v11 = vmul.f32 %v2806_v18, %v4627_v57  ;;  %v2836_v12 = vmul.f32 %v2802_v44, %v4630_v24  ;;  %v2837_v33 = vmul.f32 %v2806_v18, %v4629_v39  ;;  %s3546_s22 = scalar_lea.vmem %s2887_s21, 1024  ;;  %p3551_p3 = scmp.lt.s32.totalorder %s2887_s21, %s2887_s21 }
 0x4e9   :  { %p3547_p2 = scmp.ne.s32.totalorder %s2887_s21, %s3546_s22  ;;  %p3552_p4 = scmp.lt.s32.totalorder %s3546_s22, %s3546_s22 }
 0x4ea   :  { %v2820_v56 = vrot.slane %v2813_v30, %v4631_v8 }
 0x4eb   :  { %p3553_p5 = por %p3552_p4, %p3551_p3 }
 0x4ec   :  { %v2827_v27 = vrot.slane %v2820_v56, %v4631_v8 }
 0x4ed   :  { %p3554_p6 = pnand %p3553_p5, %p3547_p2 }
 0x4ee   :  { %v2829_v55 = vsub.f32 %v2797_v16, %v2827_v27 }
 0x4f0   :  { %v2842_v8 = vrot.slane %v2829_v55, %v4632_v61  ;;  %v2846_v29 = vrot.slane %v2829_v55, %v4633_v20 }
 0x4f2   :  { %v2849_v15 = vadd.f32 %v2842_v8, %v2830_v2  ;;  %v2850_v59 = vadd.f32 %v2846_v29, %v2831_v23  ;;  %v2851_v63 = vadd.f32 %v2842_v8, %v2832_v52  ;;  %v2852_v38 = vadd.f32 %v2846_v29, %v2833_v46 }
 0x4f3   :  { %v2853_v25 = vadd.f32 %v2842_v8, %v2834_v6  ;;  %v2854_v43 = vadd.f32 %v2846_v29, %v2835_v11  ;;  %v2855_v5 = vadd.f32 %v2842_v8, %v2836_v12  ;;  %v2856_v10 = vadd.f32 %v2846_v29, %v2837_v33 }
 0x4f4   :  { %v2857_v49 = vadd.f32 %v2849_v15, %v2535_v41  ;;  %v2858_v61 = vadd.f32 %v2850_v59, %v2536_v31  ;;  %v2859_v58 = vadd.f32 %v2851_v63, %v2537_v47  ;;  %v2860_v20 = vadd.f32 %v2852_v38, %v2538_v34 }
 0x4f5   :  { %v2861_v4 = vadd.f32 %v2853_v25, %v2539_v54  ;;  %v2862_v57 = vadd.f32 %v2854_v43, %v2540_v35  ;;  %v2863_v51 = vadd.f32 %v2855_v5, %v2541_v62  ;;  %v2864_v24 = vadd.f32 %v2856_v10, %v2542_v1 }
 0x4f6   :  { %v2865_v53 = vmax.f32 %v2857_v49, 0.0  ;;  %v2866_v39 = vmax.f32 %v2858_v61, 0.0  ;;  %v2867_v42 = vmax.f32 %v2859_v58, 0.0  ;;  %v2868_v32 = vmax.f32 %v2860_v20, 0.0 }
 0x4f7   :  { %v2869_v36 = vmax.f32 %v2861_v4, 0.0  ;;  %v2870_v37 = vmax.f32 %v2862_v57, 0.0  ;;  %v2871_v7 = vmax.f32 %v2863_v51, 0.0  ;;  %v2872_v9 = vmax.f32 %v2864_v24, 0.0 }
 0x4f8   :  { %2873 = vst [vmem:[#allocation15] sm:$0xff] %v2865_v53  ;;  %2874 = vst [vmem:[#allocation15 + $0x8] sm:$0xff] %v2866_v39 }
 0x4f9   :  { %2875 = vst [vmem:[#allocation15 + $0x10] sm:$0xff] %v2867_v42  ;;  %2876 = vst [vmem:[#allocation15 + $0x18] sm:$0xff] %v2868_v32 }
 0x4fa   :  { %2877 = vst [vmem:[#allocation15 + $0x20] sm:$0xff] %v2869_v36  ;;  %2878 = vst [vmem:[#allocation15 + $0x28] sm:$0xff] %v2870_v37 }
 0x4fb   :  { %2879 = vst [vmem:[#allocation15 + $0x30] sm:$0xff] %v2871_v7  ;;  %2880 = vst [vmem:[#allocation15 + $0x38] sm:$0xff] %v2872_v9 }
 0x4fc   :  { %3557 = shalt.err (!%p3554_p6)
}
 0x4fd   :  { %2892 = dma.vmem_to_hbm [thread:$0]  %s2887_s21, 1024, %s4470_s12, [#allocation6], %s3584_s3, %s3584_s3, %s3585_s26  }
 0x4fe   :  { %3574 = dma.done.wait [#allocation6], 1024  }
 0x4ff   :  { %3575 = vsyncadd [#allocation6], 4294966272 }
 0x500   :  { %2896 = vsyncpa [#allocation5], 1 }
 0x501   :  { %2897 = vsyncpa [#allocation8], 1 }
 0x502   :  { %2898 = vsyncpa [#allocation11], 1 }
 0x503   :  { %2899 = vsyncpa [#allocation14], 1 }
 0x504   :  { %2900 = vsyncpa [#allocation6], 1 }

</bundles_post_ra>
